<compile_context>
chip_gen: v7x
topology: tpu7x:2x2x1
jax: 0.10.0
libtpu: 0.0.40
codegen_flags: <defaults>
</compile_context>

<pallas_src>
import jax
import jax.numpy as jnp
from jax import lax
from jax.experimental import pallas as pl
from jax.experimental.pallas import tpu as pltpu


def _ru8(n):
    return ((n + 7) // 8) * 8


# ----------------------------------------------------------------------------
# Fused Pallas kernel
# ----------------------------------------------------------------------------
def _make_autoencoder_kernel(cfg):
    B, H, W = cfg["B"], cfg["H"], cfg["W"]
    HW = H * W
    BHW = B * HW
    C_act = cfg["C_act"]
    enc_specs = cfg["enc_specs"]          # list of (cin, cout, K, relu)
    dec_specs = cfg["dec_specs"]
    unique_ks = cfg["unique_ks"]
    n_enc, n_dec = len(enc_specs), len(dec_specs)

    def kernel(*refs):
        it = iter(refs)
        x_ref = next(it)                                   # (C_act, BHW), padded
        mask_refs = {k: next(it) for k in unique_ks}       # (k*k*C_act, BHW) f32
        enc_w = [(next(it), next(it)) for _ in range(n_enc)]
        wE_ref, bE_ref = next(it), next(it)
        wD_ref, bD_ref = next(it), next(it)
        dec_w = [(next(it), next(it)) for _ in range(n_dec)]
        o_ref = next(it)                                   # (c_final, BHW)
        act_ref = next(it)
        feat_ref = next(it)
        patch_ref = next(it)

        def conv_layer(act, w_ref, b_ref, K, relu):
            """act: (C_act, B*H*W) value -> (Cout, B*H*W) value."""
            p = (K - 1) // 2
            m_ref = mask_refs[K]
            t = 0
            for ky in range(K):
                for kx in range(K):
                    dy, dx = ky - p, kx - p
                    d = dy * W + dx
                    if d == 0:
                        shifted = act
                    else:
                        shifted = pltpu.roll(act, shift=(-d) % BHW, axis=1)
                    lo, hi = t * C_act, (t + 1) * C_act
                    if dy == 0 and dx == 0:
                        patch_ref[lo:hi, :] = shifted          # center: all valid
                    else:
                        patch_ref[lo:hi, :] = shifted * m_ref[lo:hi, :]
                    t += 1
            rows = K * K * C_act
            out = jnp.dot(w_ref[...], patch_ref[0:rows, :],
                          preferred_element_type=jnp.float32)
            out = out + b_ref[...]
            if relu:
                out = jnp.maximum(out, 0.0)
            return out

        def to_act(out, cout):
            """Pad channel rows to C_act with true zeros (feeds the next conv)."""
            if cout == C_act:
                return out
            act_ref[...] = jnp.zeros_like(act_ref)
            act_ref[0:cout, :] = out
            return act_ref[...]

        # ---- input is already channel-major & zero-padded (single VMEM load) ----
        act = x_ref[...]

        # ---- encoder convs (ReLU after every layer) ----
        out = act
        for li, (_cin, cout, K, relu) in enumerate(enc_specs):
            w_ref, b_ref = enc_w[li]
            out = conv_layer(act, w_ref, b_ref, K, relu)
            if li < n_enc - 1:
                act = to_act(out, cout)

        # ---- flatten in PyTorch (C, H, W) order + encoder linear ----
        c_last = enc_specs[-1][1]
        for b in range(B):
            for c in range(c_last):
                feat_ref[b:b + 1, c * HW:(c + 1) * HW] = \
                    out[c:c + 1, b * HW:(b + 1) * HW]
        z = jnp.dot(feat_ref[...], wE_ref[...],
                    preferred_element_type=jnp.float32) + bE_ref[...]   # (B, latent)

        # ---- decoder linear + reshape back to channel-major conv layout ----
        h = jnp.dot(z, wD_ref[...],
                    preferred_element_type=jnp.float32) + bD_ref[...]   # (B, C0*HW)
        c0 = dec_specs[0][0]
        if c0 < C_act:
            act_ref[...] = jnp.zeros_like(act_ref)
        for b in range(B):
            for c in range(c0):
                act_ref[c:c + 1, b * HW:(b + 1) * HW] = \
                    h[b:b + 1, c * HW:(c + 1) * HW]
        act = act_ref[...]

        # ---- decoder (transposed) convs; no ReLU on the last ----
        for li, (_cin, cout, K, relu) in enumerate(dec_specs):
            w_ref, b_ref = dec_w[li]
            out = conv_layer(act, w_ref, b_ref, K, relu)
            if li < n_dec - 1:
                act = to_act(out, cout)

        # ---- ONE lane-dense channel-major store; wrapper untransposes ----
        o_ref[...] = out.astype(o_ref.dtype)

    return kernel


def _full_spec(shape):
    nd = len(shape)
    return pl.BlockSpec(shape, lambda i, _nd=nd: (0,) * _nd)


def autoencoder_forward(x_nchw, packed):
    """Pallas implementation of AutoEncoder_2D.forward (NCHW in / NCHW out)."""
    cfg = packed["cfg"]
    B, C_in, H, W = x_nchw.shape
    assert (B, C_in, H, W) == (cfg["B"], cfg["C_in"], cfg["H"], cfg["W"])
    HW = H * W
    BHW = B * HW
    C_act = cfg["C_act"]
    c_last = cfg["enc_specs"][-1][1]
    c_final = cfg["dec_specs"][-1][1]
    max_rows = max(k * k * C_act
                   for (_, _, k, _) in cfg["enc_specs"] + cfg["dec_specs"])

    # Channel-major, channel-padded input prepared OUTSIDE the kernel
    # (tiny: C_act * B*H*W * 4 bytes).
    x_cm = jnp.transpose(x_nchw, (1, 0, 2, 3)).reshape(C_in, BHW)
    if C_in < C_act:
        x_cm = jnp.concatenate(
            [x_cm, jnp.zeros((C_act - C_in, BHW), x_cm.dtype)], axis=0)

    arrays = [x_cm]
    arrays += [packed["masks"][k] for k in cfg["unique_ks"]]
    for (w, b) in packed["enc_convs"]:
        arrays += [w, b]
    arrays += [packed["enc_lin_w"], packed["enc_lin_b"],
               packed["dec_lin_w"], packed["dec_lin_b"]]
    for (w, b) in packed["dec_convs"]:
        arrays += [w, b]

    out_cm = pl.pallas_call(
        _make_autoencoder_kernel(cfg),
        out_shape=jax.ShapeDtypeStruct((c_final, BHW), jnp.float32),
        grid=(1,),
        in_specs=[_full_spec(a.shape) for a in arrays],
        out_specs=_full_spec((c_final, BHW)),
        scratch_shapes=[
            pltpu.VMEM((C_act, BHW), jnp.float32),           # act_ref
            pltpu.VMEM((B, c_last * HW), jnp.float32),       # feat_ref
            pltpu.VMEM((max_rows, BHW), jnp.float32),        # patch_ref (im2col)
        ],
        compiler_params=pltpu.CompilerParams(
            dimension_semantics=("arbitrary",)),
    )(*arrays)
    # channel-major (c_final, B*H*W) -> NCHW (free reshape + tiny transpose)
    return jnp.transpose(out_cm.reshape(c_final, B, H, W), (1, 0, 2, 3))


# ----------------------------------------------------------------------------
# Parameters: raw (PyTorch layout, for the reference) + packed (kernel layout)
# ----------------------------------------------------------------------------
def _xavier_uniform(key, shape, fan_in, fan_out):
    bound = (6.0 / (fan_in + fan_out)) ** 0.5
    return jax.random.uniform(key, shape, jnp.float32, -bound, bound)


def init_raw_params(key, dimn_tensor, hidden_layers_list, ksize, latent):
    _, _, H, W = dimn_tensor
    keys = iter(jax.random.split(key, 4 * len(hidden_layers_list) + 8))
    raw = {}

    enc = []
    for i in range(len(hidden_layers_list) - 1):
        cin, cout, k = hidden_layers_list[i], hidden_layers_list[i + 1], ksize[i]
        w = _xavier_uniform(next(keys), (cout, cin, k, k), cin * k * k, cout * k * k)
        b = jax.random.uniform(next(keys), (cout,), jnp.float32, -0.1, 0.1)
        enc.append((w, b))
    raw["enc_convs"] = enc

    feat = hidden_layers_list[-1] * H * W
    raw["enc_lin_w"] = _xavier_uniform(next(keys), (latent, feat), feat, latent)
    raw["enc_lin_b"] = jax.random.uniform(next(keys), (latent,), jnp.float32, -0.1, 0.1)

    dec_ch = hidden_layers_list[::-1]
    dec_k = ksize[::-1]
    fc_out = H * W * dec_ch[0]
    raw["dec_lin_w"] = _xavier_uniform(next(keys), (fc_out, latent), latent, fc_out)
    raw["dec_lin_b"] = jax.random.uniform(next(keys), (fc_out,), jnp.float32, -0.1, 0.1)

    dec = []
    for i in range(len(dec_ch) - 1):
        cin, cout, k = dec_ch[i], dec_ch[i + 1], dec_k[i]
        # ConvTranspose2d weight layout: (Cin, Cout, K, K)
        w = _xavier_uniform(next(keys), (cin, cout, k, k), cin * k * k, cout * k * k)
        b = jax.random.uniform(next(keys), (cout,), jnp.float32, -0.1, 0.1)
        dec.append((w, b))
    raw["dec_convs"] = dec
    return raw


def pack_params(raw, dimn_tensor, hidden_layers_list, ksize, latent):
    B, C_in, H, W = dimn_tensor
    HW = H * W
    BHW = B * HW
    dec_ch = hidden_layers_list[::-1]
    dec_k = ksize[::-1]
    assert all(k % 2 == 1 for k in ksize), "odd kernel sizes required"
    # roll+mask trick requires the kernel halo to stay inside one image
    assert all((k - 1) // 2 < min(H, W) for k in ksize), "kernel too large for image"

    conv_in_channels = hidden_layers_list[:-1] + dec_ch[:-1]
    C_act = max(_ru8(c) for c in conv_in_channels)

    def pack_conv(w_oihw, k, cin, cout):
        # -> (Cout, K*K*C_act), tap-major / channel-minor, padded channels are 0
        wm = jnp.zeros((cout, k, k, C_act), jnp.float32)
        wm = wm.at[:, :, :, :cin].set(jnp.transpose(w_oihw, (0, 2, 3, 1)))
        return wm.reshape(cout, k * k * C_act)

    packed = {}
    enc_specs, enc_packed = [], []
    for i, (w, b) in enumerate(raw["enc_convs"]):
        cin, cout, k = hidden_layers_list[i], hidden_layers_list[i + 1], ksize[i]
        enc_packed.append((pack_conv(w, k, cin, cout), b.reshape(cout, 1)))
        enc_specs.append((cin, cout, k, True))
    packed["enc_convs"] = enc_packed

    packed["enc_lin_w"] = jnp.transpose(raw["enc_lin_w"])            # (feat, latent)
    packed["enc_lin_b"] = raw["enc_lin_b"].reshape(1, latent)
    packed["dec_lin_w"] = jnp.transpose(raw["dec_lin_w"])            # (latent, fc_out)
    packed["dec_lin_b"] = raw["dec_lin_b"].reshape(1, -1)

    dec_specs, dec_packed = [], []
    n_dec = len(dec_ch) - 1
    for i, (wT, b) in enumerate(raw["dec_convs"]):
        cin, cout, k = dec_ch[i], dec_ch[i + 1], dec_k[i]
        # stride-1 ConvTranspose2d(pad=(k-1)//2) == same-pad conv with flipped
        # kernel and swapped in/out channels (holds for odd k).
        w_eq = jnp.transpose(wT[:, :, ::-1, ::-1], (1, 0, 2, 3))     # (Cout,Cin,K,K)
        dec_packed.append((pack_conv(w_eq, k, cin, cout), b.reshape(cout, 1)))
        dec_specs.append((cin, cout, k, i < n_dec - 1))
    packed["dec_convs"] = dec_packed

    # Boundary masks, computed once here (hoisted out of the kernel):
    # 0/1 f32 tiles, tap-major / channel-replicated, matching the patch layout.
    unique_ks = sorted(set(ksize))
    col = jnp.arange(BHW, dtype=jnp.int32)
    x_pos = col % W
    y_pos = (col // W) % H
    masks = {}
    for k in unique_ks:
        p = (k - 1) // 2
        rows = []
        for ky in range(k):
            for kx in range(k):
                dy, dx = ky - p, kx - p
                valid = ((x_pos + dx >= 0) & (x_pos + dx < W) &
                         (y_pos + dy >= 0) & (y_pos + dy < H))
                rows.append(valid.astype(jnp.float32))
        m = jnp.stack(rows, axis=0)                      # (k*k, BHW)
        masks[k] = jnp.repeat(m, C_act, axis=0)          # (k*k*C_act, BHW)
    packed["masks"] = masks

    packed["cfg"] = dict(B=B, H=H, W=W, C_in=C_in, C_act=C_act,
                         enc_specs=enc_specs, dec_specs=dec_specs,
                         unique_ks=unique_ks, latent=latent)
    return packed


# ----------------------------------------------------------------------------
# Pure-JAX reference (identical semantics, for validation)
# ----------------------------------------------------------------------------
def autoencoder_reference(x_nchw, raw):
    hp = lax.Precision.HIGHEST
    B, _, H, W = x_nchw.shape
    h = x_nchw
    for (w, b) in raw["enc_convs"]:
        h = lax.conv_general_dilated(h, w, (1, 1), "SAME",
                                     dimension_numbers=("NCHW", "OIHW", "NCHW"),
                                     precision=hp)
        h = jnp.maximum(h + b[None, :, None, None], 0.0)
    feat = h.reshape(B, -1)                                   # PyTorch CHW order
    z = jnp.dot(feat, raw["enc_lin_w"].T, precision=hp) + raw["enc_lin_b"]
    hd = jnp.dot(z, raw["dec_lin_w"].T, precision=hp) + raw["dec_lin_b"]
    C0 = raw["dec_convs"][0][0].shape[0]
    hd = hd.reshape(B, C0, H, W)
    n = len(raw["dec_convs"])
    for i, (wT, b) in enumerate(raw["dec_convs"]):
        w_eq = jnp.transpose(wT[:, :, ::-1, ::-1], (1, 0, 2, 3))
        hd = lax.conv_general_dilated(hd, w_eq, (1, 1), "SAME",
                                      dimension_numbers=("NCHW", "OIHW", "NCHW"),
                                      precision=hp)
        hd = hd + b[None, :, None, None]
        if i < n - 1:
            hd = jnp.maximum(hd, 0.0)
    return hd


# ----------------------------------------------------------------------------
if __name__ == "__main__":
    # dimn_tensor=[B, C, nX, nY], hidden_layers_list=[C, 8, 8], ksize=[3, 3]
    dimn_tensor = [2, 4, 16, 16]
    hidden_layers_list = [4, 8, 8]
    ksize = [3, 3]
    latent_space_dimn = 32

    key = jax.random.PRNGKey(0)
    k_params, k_x = jax.random.split(key)
    raw = init_raw_params(k_params, dimn_tensor, hidden_layers_list,
                          ksize, latent_space_dimn)
    packed = pack_params(raw, dimn_tensor, hidden_layers_list,
                         ksize, latent_space_dimn)
    x = jax.random.normal(k_x, tuple(dimn_tensor), jnp.float32)

    out = autoencoder_forward(x, packed)
    out = jax.block_until_ready(out)

    ref = autoencoder_reference(x, raw)
    assert out.shape == tuple(dimn_tensor), out.shape
    if not bool(jnp.allclose(out, ref, rtol=1e-4, atol=1e-4)):
        err = float(jnp.max(jnp.abs(out - ref)))
        raise AssertionError(f"Pallas output mismatch, max abs err = {err}")
    print("KERNEL_OK")
</pallas_src>

<mosaic_0001>
module attributes {stable_mosaic.version = 11 : i64} {
  func.func @kernel(%arg0: i32, %arg1: memref<8x512xf32, #tpu.memory_space<vmem>>, %arg2: memref<72x512xf32, #tpu.memory_space<vmem>>, %arg3: memref<8x72xf32, #tpu.memory_space<vmem>>, %arg4: memref<8x1xf32, #tpu.memory_space<vmem>>, %arg5: memref<8x72xf32, #tpu.memory_space<vmem>>, %arg6: memref<8x1xf32, #tpu.memory_space<vmem>>, %arg7: memref<2048x32xf32, #tpu.memory_space<vmem>>, %arg8: memref<1x32xf32, #tpu.memory_space<vmem>>, %arg9: memref<32x2048xf32, #tpu.memory_space<vmem>>, %arg10: memref<1x2048xf32, #tpu.memory_space<vmem>>, %arg11: memref<8x72xf32, #tpu.memory_space<vmem>>, %arg12: memref<8x1xf32, #tpu.memory_space<vmem>>, %arg13: memref<4x72xf32, #tpu.memory_space<vmem>>, %arg14: memref<4x1xf32, #tpu.memory_space<vmem>>, %arg15: memref<4x512xf32, #tpu.memory_space<vmem>>, %arg16: memref<8x512xf32, #tpu.memory_space<vmem>>, %arg17: memref<2x2048xf32, #tpu.memory_space<vmem>>, %arg18: memref<72x512xf32, #tpu.memory_space<vmem>>) attributes {dimension_semantics = [#tpu.dimension_semantics<arbitrary>], iteration_bounds = array<i64: 1>, scalar_prefetch = 0 : i64, scratch_operands = 3 : i64, tpu.core_type = #tpu.core_type<tc>, window_params = [{pipeline_mode = #tpu.pipeline_mode<synchronous>, transform_indices = @transform_0, window_bounds = array<i64: 8, 512>}, {pipeline_mode = #tpu.pipeline_mode<synchronous>, transform_indices = @transform_1, window_bounds = array<i64: 72, 512>}, {pipeline_mode = #tpu.pipeline_mode<synchronous>, transform_indices = @transform_2, window_bounds = array<i64: 8, 72>}, {pipeline_mode = #tpu.pipeline_mode<synchronous>, transform_indices = @transform_3, window_bounds = array<i64: 8, 1>}, {pipeline_mode = #tpu.pipeline_mode<synchronous>, transform_indices = @transform_4, window_bounds = array<i64: 8, 72>}, {pipeline_mode = #tpu.pipeline_mode<synchronous>, transform_indices = @transform_5, window_bounds = array<i64: 8, 1>}, {pipeline_mode = #tpu.pipeline_mode<synchronous>, transform_indices = @transform_6, window_bounds = array<i64: 2048, 32>}, {pipeline_mode = #tpu.pipeline_mode<synchronous>, transform_indices = @transform_7, window_bounds = array<i64: 1, 32>}, {pipeline_mode = #tpu.pipeline_mode<synchronous>, transform_indices = @transform_8, window_bounds = array<i64: 32, 2048>}, {pipeline_mode = #tpu.pipeline_mode<synchronous>, transform_indices = @transform_9, window_bounds = array<i64: 1, 2048>}, {pipeline_mode = #tpu.pipeline_mode<synchronous>, transform_indices = @transform_10, window_bounds = array<i64: 8, 72>}, {pipeline_mode = #tpu.pipeline_mode<synchronous>, transform_indices = @transform_11, window_bounds = array<i64: 8, 1>}, {pipeline_mode = #tpu.pipeline_mode<synchronous>, transform_indices = @transform_12, window_bounds = array<i64: 4, 72>}, {pipeline_mode = #tpu.pipeline_mode<synchronous>, transform_indices = @transform_13, window_bounds = array<i64: 4, 1>}, {pipeline_mode = #tpu.pipeline_mode<synchronous>, transform_indices = @transform_14, window_bounds = array<i64: 4, 512>}]} {
    %c0 = arith.constant 0 : index
    %c0_0 = arith.constant 0 : index
    %0 = vector.load %arg1[%c0, %c0_0] : memref<8x512xf32, #tpu.memory_space<vmem>>, vector<8x512xf32>
    %c17_i32 = arith.constant 17 : i32
    %1 = tpu.dynamic_rotate %0 by %c17_i32 dim 1 : vector<8x512xf32>, i32 -> vector<8x512xf32>
    %c0_1 = arith.constant 0 : index
    %c0_2 = arith.constant 0 : index
    %2 = vector.load %arg2[%c0_1, %c0_2] : memref<72x512xf32, #tpu.memory_space<vmem>>, vector<8x512xf32>
    %3 = arith.mulf %1, %2 : vector<8x512xf32>
    %c0_3 = arith.constant 0 : index
    %c0_4 = arith.constant 0 : index
    %4 = vector.load %arg18[%c0_3, %c0_4] : memref<72x512xf32, #tpu.memory_space<vmem>>, vector<8x512xf32>
    tpu.vector_store %arg18[%c0_3, %c0_4], %3 {strides = array<i32>} : memref<72x512xf32, #tpu.memory_space<vmem>>, vector<8x512xf32>,
    %c16_i32 = arith.constant 16 : i32
    %5 = tpu.dynamic_rotate %0 by %c16_i32 dim 1 : vector<8x512xf32>, i32 -> vector<8x512xf32>
    %c8 = arith.constant 8 : index
    %c0_5 = arith.constant 0 : index
    %6 = vector.load %arg2[%c8, %c0_5] : memref<72x512xf32, #tpu.memory_space<vmem>>, vector<8x512xf32>
    %7 = arith.mulf %5, %6 : vector<8x512xf32>
    %c8_6 = arith.constant 8 : index
    %c0_7 = arith.constant 0 : index
    %8 = vector.load %arg18[%c8_6, %c0_7] : memref<72x512xf32, #tpu.memory_space<vmem>>, vector<8x512xf32>
    tpu.vector_store %arg18[%c8_6, %c0_7], %7 {strides = array<i32>} : memref<72x512xf32, #tpu.memory_space<vmem>>, vector<8x512xf32>,
    %c15_i32 = arith.constant 15 : i32
    %9 = tpu.dynamic_rotate %0 by %c15_i32 dim 1 : vector<8x512xf32>, i32 -> vector<8x512xf32>
    %c16 = arith.constant 16 : index
    %c0_8 = arith.constant 0 : index
    %10 = vector.load %arg2[%c16, %c0_8] : memref<72x512xf32, #tpu.memory_space<vmem>>, vector<8x512xf32>
    %11 = arith.mulf %9, %10 : vector<8x512xf32>
    %c16_9 = arith.constant 16 : index
    %c0_10 = arith.constant 0 : index
    %12 = vector.load %arg18[%c16_9, %c0_10] : memref<72x512xf32, #tpu.memory_space<vmem>>, vector<8x512xf32>
    tpu.vector_store %arg18[%c16_9, %c0_10], %11 {strides = array<i32>} : memref<72x512xf32, #tpu.memory_space<vmem>>, vector<8x512xf32>,
    %c1_i32 = arith.constant 1 : i32
    %13 = tpu.dynamic_rotate %0 by %c1_i32 dim 1 : vector<8x512xf32>, i32 -> vector<8x512xf32>
    %c24 = arith.constant 24 : index
    %c0_11 = arith.constant 0 : index
    %14 = vector.load %arg2[%c24, %c0_11] : memref<72x512xf32, #tpu.memory_space<vmem>>, vector<8x512xf32>
    %15 = arith.mulf %13, %14 : vector<8x512xf32>
    %c24_12 = arith.constant 24 : index
    %c0_13 = arith.constant 0 : index
    %16 = vector.load %arg18[%c24_12, %c0_13] : memref<72x512xf32, #tpu.memory_space<vmem>>, vector<8x512xf32>
    tpu.vector_store %arg18[%c24_12, %c0_13], %15 {strides = array<i32>} : memref<72x512xf32, #tpu.memory_space<vmem>>, vector<8x512xf32>,
    %c32 = arith.constant 32 : index
    %c0_14 = arith.constant 0 : index
    %17 = vector.load %arg18[%c32, %c0_14] : memref<72x512xf32, #tpu.memory_space<vmem>>, vector<8x512xf32>
    tpu.vector_store %arg18[%c32, %c0_14], %0 {strides = array<i32>} : memref<72x512xf32, #tpu.memory_space<vmem>>, vector<8x512xf32>,
    %c511_i32 = arith.constant 511 : i32
    %18 = tpu.dynamic_rotate %0 by %c511_i32 dim 1 : vector<8x512xf32>, i32 -> vector<8x512xf32>
    %c40 = arith.constant 40 : index
    %c0_15 = arith.constant 0 : index
    %19 = vector.load %arg2[%c40, %c0_15] : memref<72x512xf32, #tpu.memory_space<vmem>>, vector<8x512xf32>
    %20 = arith.mulf %18, %19 : vector<8x512xf32>
    %c40_16 = arith.constant 40 : index
    %c0_17 = arith.constant 0 : index
    %21 = vector.load %arg18[%c40_16, %c0_17] : memref<72x512xf32, #tpu.memory_space<vmem>>, vector<8x512xf32>
    tpu.vector_store %arg18[%c40_16, %c0_17], %20 {strides = array<i32>} : memref<72x512xf32, #tpu.memory_space<vmem>>, vector<8x512xf32>,
    %c497_i32 = arith.constant 497 : i32
    %22 = tpu.dynamic_rotate %0 by %c497_i32 dim 1 : vector<8x512xf32>, i32 -> vector<8x512xf32>
    %c48 = arith.constant 48 : index
    %c0_18 = arith.constant 0 : index
    %23 = vector.load %arg2[%c48, %c0_18] : memref<72x512xf32, #tpu.memory_space<vmem>>, vector<8x512xf32>
    %24 = arith.mulf %22, %23 : vector<8x512xf32>
    %c48_19 = arith.constant 48 : index
    %c0_20 = arith.constant 0 : index
    %25 = vector.load %arg18[%c48_19, %c0_20] : memref<72x512xf32, #tpu.memory_space<vmem>>, vector<8x512xf32>
    tpu.vector_store %arg18[%c48_19, %c0_20], %24 {strides = array<i32>} : memref<72x512xf32, #tpu.memory_space<vmem>>, vector<8x512xf32>,
    %c496_i32 = arith.constant 496 : i32
    %26 = tpu.dynamic_rotate %0 by %c496_i32 dim 1 : vector<8x512xf32>, i32 -> vector<8x512xf32>
    %c56 = arith.constant 56 : index
    %c0_21 = arith.constant 0 : index
    %27 = vector.load %arg2[%c56, %c0_21] : memref<72x512xf32, #tpu.memory_space<vmem>>, vector<8x512xf32>
    %28 = arith.mulf %26, %27 : vector<8x512xf32>
    %c56_22 = arith.constant 56 : index
    %c0_23 = arith.constant 0 : index
    %29 = vector.load %arg18[%c56_22, %c0_23] : memref<72x512xf32, #tpu.memory_space<vmem>>, vector<8x512xf32>
    tpu.vector_store %arg18[%c56_22, %c0_23], %28 {strides = array<i32>} : memref<72x512xf32, #tpu.memory_space<vmem>>, vector<8x512xf32>,
    %c495_i32 = arith.constant 495 : i32
    %30 = tpu.dynamic_rotate %0 by %c495_i32 dim 1 : vector<8x512xf32>, i32 -> vector<8x512xf32>
    %c64 = arith.constant 64 : index
    %c0_24 = arith.constant 0 : index
    %31 = vector.load %arg2[%c64, %c0_24] : memref<72x512xf32, #tpu.memory_space<vmem>>, vector<8x512xf32>
    %32 = arith.mulf %30, %31 : vector<8x512xf32>
    %c64_25 = arith.constant 64 : index
    %c0_26 = arith.constant 0 : index
    %33 = vector.load %arg18[%c64_25, %c0_26] : memref<72x512xf32, #tpu.memory_space<vmem>>, vector<8x512xf32>
    tpu.vector_store %arg18[%c64_25, %c0_26], %32 {strides = array<i32>} : memref<72x512xf32, #tpu.memory_space<vmem>>, vector<8x512xf32>,
    %c0_27 = arith.constant 0 : index
    %c0_28 = arith.constant 0 : index
    %34 = vector.load %arg3[%c0_27, %c0_28] : memref<8x72xf32, #tpu.memory_space<vmem>>, vector<8x72xf32>
    %c0_29 = arith.constant 0 : index
    %c0_30 = arith.constant 0 : index
    %35 = vector.load %arg18[%c0_29, %c0_30] : memref<72x512xf32, #tpu.memory_space<vmem>>, vector<72x512xf32>
    %cst = arith.constant dense<0.000000e+00> : vector<8x512xf32>
    %36 = tpu.matmul %34, %35, %cst {dimension_numbers = #tpu.dot_dimension_numbers<[1], [0], [0], [1], [0, 0, 1, 1], [], []>} : vector<8x72xf32>, vector<72x512xf32>, vector<8x512xf32> -> vector<8x512xf32>
    %c0_31 = arith.constant 0 : index
    %c0_32 = arith.constant 0 : index
    %37 = vector.load %arg4[%c0_31, %c0_32] : memref<8x1xf32, #tpu.memory_space<vmem>>, vector<8x1xf32>
    %38 = vector.broadcast %37 : vector<8x1xf32> to vector<8x512xf32>
    %39 = arith.addf %36, %38 : vector<8x512xf32>
    %cst_33 = arith.constant 0.000000e+00 : f32
    %40 = vector.broadcast %cst_33 : f32 to vector<8x512xf32>
    %41 = arith.maximumf %39, %40 : vector<8x512xf32>
    %c17_i32_34 = arith.constant 17 : i32
    %42 = tpu.dynamic_rotate %41 by %c17_i32_34 dim 1 : vector<8x512xf32>, i32 -> vector<8x512xf32>
    %c0_35 = arith.constant 0 : index
    %c0_36 = arith.constant 0 : index
    %43 = vector.load %arg2[%c0_35, %c0_36] : memref<72x512xf32, #tpu.memory_space<vmem>>, vector<8x512xf32>
    %44 = arith.mulf %42, %43 : vector<8x512xf32>
    %c0_37 = arith.constant 0 : index
    %c0_38 = arith.constant 0 : index
    %45 = vector.load %arg18[%c0_37, %c0_38] : memref<72x512xf32, #tpu.memory_space<vmem>>, vector<8x512xf32>
    tpu.vector_store %arg18[%c0_37, %c0_38], %44 {strides = array<i32>} : memref<72x512xf32, #tpu.memory_space<vmem>>, vector<8x512xf32>,
    %c16_i32_39 = arith.constant 16 : i32
    %46 = tpu.dynamic_rotate %41 by %c16_i32_39 dim 1 : vector<8x512xf32>, i32 -> vector<8x512xf32>
    %c8_40 = arith.constant 8 : index
    %c0_41 = arith.constant 0 : index
    %47 = vector.load %arg2[%c8_40, %c0_41] : memref<72x512xf32, #tpu.memory_space<vmem>>, vector<8x512xf32>
    %48 = arith.mulf %46, %47 : vector<8x512xf32>
    %c8_42 = arith.constant 8 : index
    %c0_43 = arith.constant 0 : index
    %49 = vector.load %arg18[%c8_42, %c0_43] : memref<72x512xf32, #tpu.memory_space<vmem>>, vector<8x512xf32>
    tpu.vector_store %arg18[%c8_42, %c0_43], %48 {strides = array<i32>} : memref<72x512xf32, #tpu.memory_space<vmem>>, vector<8x512xf32>,
    %c15_i32_44 = arith.constant 15 : i32
    %50 = tpu.dynamic_rotate %41 by %c15_i32_44 dim 1 : vector<8x512xf32>, i32 -> vector<8x512xf32>
    %c16_45 = arith.constant 16 : index
    %c0_46 = arith.constant 0 : index
    %51 = vector.load %arg2[%c16_45, %c0_46] : memref<72x512xf32, #tpu.memory_space<vmem>>, vector<8x512xf32>
    %52 = arith.mulf %50, %51 : vector<8x512xf32>
    %c16_47 = arith.constant 16 : index
    %c0_48 = arith.constant 0 : index
    %53 = vector.load %arg18[%c16_47, %c0_48] : memref<72x512xf32, #tpu.memory_space<vmem>>, vector<8x512xf32>
    tpu.vector_store %arg18[%c16_47, %c0_48], %52 {strides = array<i32>} : memref<72x512xf32, #tpu.memory_space<vmem>>, vector<8x512xf32>,
    %c1_i32_49 = arith.constant 1 : i32
    %54 = tpu.dynamic_rotate %41 by %c1_i32_49 dim 1 : vector<8x512xf32>, i32 -> vector<8x512xf32>
    %c24_50 = arith.constant 24 : index
    %c0_51 = arith.constant 0 : index
    %55 = vector.load %arg2[%c24_50, %c0_51] : memref<72x512xf32, #tpu.memory_space<vmem>>, vector<8x512xf32>
    %56 = arith.mulf %54, %55 : vector<8x512xf32>
    %c24_52 = arith.constant 24 : index
    %c0_53 = arith.constant 0 : index
    %57 = vector.load %arg18[%c24_52, %c0_53] : memref<72x512xf32, #tpu.memory_space<vmem>>, vector<8x512xf32>
    tpu.vector_store %arg18[%c24_52, %c0_53], %56 {strides = array<i32>} : memref<72x512xf32, #tpu.memory_space<vmem>>, vector<8x512xf32>,
    %c32_54 = arith.constant 32 : index
    %c0_55 = arith.constant 0 : index
    %58 = vector.load %arg18[%c32_54, %c0_55] : memref<72x512xf32, #tpu.memory_space<vmem>>, vector<8x512xf32>
    tpu.vector_store %arg18[%c32_54, %c0_55], %41 {strides = array<i32>} : memref<72x512xf32, #tpu.memory_space<vmem>>, vector<8x512xf32>,
    %c511_i32_56 = arith.constant 511 : i32
    %59 = tpu.dynamic_rotate %41 by %c511_i32_56 dim 1 : vector<8x512xf32>, i32 -> vector<8x512xf32>
    %c40_57 = arith.constant 40 : index
    %c0_58 = arith.constant 0 : index
    %60 = vector.load %arg2[%c40_57, %c0_58] : memref<72x512xf32, #tpu.memory_space<vmem>>, vector<8x512xf32>
    %61 = arith.mulf %59, %60 : vector<8x512xf32>
    %c40_59 = arith.constant 40 : index
    %c0_60 = arith.constant 0 : index
    %62 = vector.load %arg18[%c40_59, %c0_60] : memref<72x512xf32, #tpu.memory_space<vmem>>, vector<8x512xf32>
    tpu.vector_store %arg18[%c40_59, %c0_60], %61 {strides = array<i32>} : memref<72x512xf32, #tpu.memory_space<vmem>>, vector<8x512xf32>,
    %c497_i32_61 = arith.constant 497 : i32
    %63 = tpu.dynamic_rotate %41 by %c497_i32_61 dim 1 : vector<8x512xf32>, i32 -> vector<8x512xf32>
    %c48_62 = arith.constant 48 : index
    %c0_63 = arith.constant 0 : index
    %64 = vector.load %arg2[%c48_62, %c0_63] : memref<72x512xf32, #tpu.memory_space<vmem>>, vector<8x512xf32>
    %65 = arith.mulf %63, %64 : vector<8x512xf32>
    %c48_64 = arith.constant 48 : index
    %c0_65 = arith.constant 0 : index
    %66 = vector.load %arg18[%c48_64, %c0_65] : memref<72x512xf32, #tpu.memory_space<vmem>>, vector<8x512xf32>
    tpu.vector_store %arg18[%c48_64, %c0_65], %65 {strides = array<i32>} : memref<72x512xf32, #tpu.memory_space<vmem>>, vector<8x512xf32>,
    %c496_i32_66 = arith.constant 496 : i32
    %67 = tpu.dynamic_rotate %41 by %c496_i32_66 dim 1 : vector<8x512xf32>, i32 -> vector<8x512xf32>
    %c56_67 = arith.constant 56 : index
    %c0_68 = arith.constant 0 : index
    %68 = vector.load %arg2[%c56_67, %c0_68] : memref<72x512xf32, #tpu.memory_space<vmem>>, vector<8x512xf32>
    %69 = arith.mulf %67, %68 : vector<8x512xf32>
    %c56_69 = arith.constant 56 : index
    %c0_70 = arith.constant 0 : index
    %70 = vector.load %arg18[%c56_69, %c0_70] : memref<72x512xf32, #tpu.memory_space<vmem>>, vector<8x512xf32>
    tpu.vector_store %arg18[%c56_69, %c0_70], %69 {strides = array<i32>} : memref<72x512xf32, #tpu.memory_space<vmem>>, vector<8x512xf32>,
    %c495_i32_71 = arith.constant 495 : i32
    %71 = tpu.dynamic_rotate %41 by %c495_i32_71 dim 1 : vector<8x512xf32>, i32 -> vector<8x512xf32>
    %c64_72 = arith.constant 64 : index
    %c0_73 = arith.constant 0 : index
    %72 = vector.load %arg2[%c64_72, %c0_73] : memref<72x512xf32, #tpu.memory_space<vmem>>, vector<8x512xf32>
    %73 = arith.mulf %71, %72 : vector<8x512xf32>
    %c64_74 = arith.constant 64 : index
    %c0_75 = arith.constant 0 : index
    %74 = vector.load %arg18[%c64_74, %c0_75] : memref<72x512xf32, #tpu.memory_space<vmem>>, vector<8x512xf32>
    tpu.vector_store %arg18[%c64_74, %c0_75], %73 {strides = array<i32>} : memref<72x512xf32, #tpu.memory_space<vmem>>, vector<8x512xf32>,
    %c0_76 = arith.constant 0 : index
    %c0_77 = arith.constant 0 : index
    %75 = vector.load %arg5[%c0_76, %c0_77] : memref<8x72xf32, #tpu.memory_space<vmem>>, vector<8x72xf32>
    %c0_78 = arith.constant 0 : index
    %c0_79 = arith.constant 0 : index
    %76 = vector.load %arg18[%c0_78, %c0_79] : memref<72x512xf32, #tpu.memory_space<vmem>>, vector<72x512xf32>
    %cst_80 = arith.constant dense<0.000000e+00> : vector<8x512xf32>
    %77 = tpu.matmul %75, %76, %cst_80 {dimension_numbers = #tpu.dot_dimension_numbers<[1], [0], [0], [1], [0, 0, 1, 1], [], []>} : vector<8x72xf32>, vector<72x512xf32>, vector<8x512xf32> -> vector<8x512xf32>
    %c0_81 = arith.constant 0 : index
    %c0_82 = arith.constant 0 : index
    %78 = vector.load %arg6[%c0_81, %c0_82] : memref<8x1xf32, #tpu.memory_space<vmem>>, vector<8x1xf32>
    %79 = vector.broadcast %78 : vector<8x1xf32> to vector<8x512xf32>
    %80 = arith.addf %77, %79 : vector<8x512xf32>
    %cst_83 = arith.constant 0.000000e+00 : f32
    %81 = vector.broadcast %cst_83 : f32 to vector<8x512xf32>
    %82 = arith.maximumf %80, %81 : vector<8x512xf32>
    %83 = vector.extract_strided_slice %82 {offsets = [0, 0], sizes = [1, 256], strides = [1, 1]} : vector<8x512xf32> to vector<1x256xf32>
    %c0_84 = arith.constant 0 : index
    %c0_85 = arith.constant 0 : index
    %84 = vector.load %arg17[%c0_84, %c0_85] : memref<2x2048xf32, #tpu.memory_space<vmem>>, vector<1x256xf32>
    tpu.vector_store %arg17[%c0_84, %c0_85], %83 {strides = array<i32>} : memref<2x2048xf32, #tpu.memory_space<vmem>>, vector<1x256xf32>,
    %85 = vector.extract_strided_slice %82 {offsets = [1, 0], sizes = [1, 256], strides = [1, 1]} : vector<8x512xf32> to vector<1x256xf32>
    %c0_86 = arith.constant 0 : index
    %c256 = arith.constant 256 : index
    %86 = vector.load %arg17[%c0_86, %c256] : memref<2x2048xf32, #tpu.memory_space<vmem>>, vector<1x256xf32>
    tpu.vector_store %arg17[%c0_86, %c256], %85 {strides = array<i32>} : memref<2x2048xf32, #tpu.memory_space<vmem>>, vector<1x256xf32>,
    %87 = vector.extract_strided_slice %82 {offsets = [2, 0], sizes = [1, 256], strides = [1, 1]} : vector<8x512xf32> to vector<1x256xf32>
    %c0_87 = arith.constant 0 : index
    %c512 = arith.constant 512 : index
    %88 = vector.load %arg17[%c0_87, %c512] : memref<2x2048xf32, #tpu.memory_space<vmem>>, vector<1x256xf32>
    tpu.vector_store %arg17[%c0_87, %c512], %87 {strides = array<i32>} : memref<2x2048xf32, #tpu.memory_space<vmem>>, vector<1x256xf32>,
    %89 = vector.extract_strided_slice %82 {offsets = [3, 0], sizes = [1, 256], strides = [1, 1]} : vector<8x512xf32> to vector<1x256xf32>
    %c0_88 = arith.constant 0 : index
    %c768 = arith.constant 768 : index
    %90 = vector.load %arg17[%c0_88, %c768] : memref<2x2048xf32, #tpu.memory_space<vmem>>, vector<1x256xf32>
    tpu.vector_store %arg17[%c0_88, %c768], %89 {strides = array<i32>} : memref<2x2048xf32, #tpu.memory_space<vmem>>, vector<1x256xf32>,
    %91 = vector.extract_strided_slice %82 {offsets = [4, 0], sizes = [1, 256], strides = [1, 1]} : vector<8x512xf32> to vector<1x256xf32>
    %c0_89 = arith.constant 0 : index
    %c1024 = arith.constant 1024 : index
    %92 = vector.load %arg17[%c0_89, %c1024] : memref<2x2048xf32, #tpu.memory_space<vmem>>, vector<1x256xf32>
    tpu.vector_store %arg17[%c0_89, %c1024], %91 {strides = array<i32>} : memref<2x2048xf32, #tpu.memory_space<vmem>>, vector<1x256xf32>,
    %93 = vector.extract_strided_slice %82 {offsets = [5, 0], sizes = [1, 256], strides = [1, 1]} : vector<8x512xf32> to vector<1x256xf32>
    %c0_90 = arith.constant 0 : index
    %c1280 = arith.constant 1280 : index
    %94 = vector.load %arg17[%c0_90, %c1280] : memref<2x2048xf32, #tpu.memory_space<vmem>>, vector<1x256xf32>
    tpu.vector_store %arg17[%c0_90, %c1280], %93 {strides = array<i32>} : memref<2x2048xf32, #tpu.memory_space<vmem>>, vector<1x256xf32>,
    %95 = vector.extract_strided_slice %82 {offsets = [6, 0], sizes = [1, 256], strides = [1, 1]} : vector<8x512xf32> to vector<1x256xf32>
    %c0_91 = arith.constant 0 : index
    %c1536 = arith.constant 1536 : index
    %96 = vector.load %arg17[%c0_91, %c1536] : memref<2x2048xf32, #tpu.memory_space<vmem>>, vector<1x256xf32>
    tpu.vector_store %arg17[%c0_91, %c1536], %95 {strides = array<i32>} : memref<2x2048xf32, #tpu.memory_space<vmem>>, vector<1x256xf32>,
    %97 = vector.extract_strided_slice %82 {offsets = [7, 0], sizes = [1, 256], strides = [1, 1]} : vector<8x512xf32> to vector<1x256xf32>
    %c0_92 = arith.constant 0 : index
    %c1792 = arith.constant 1792 : index
    %98 = vector.load %arg17[%c0_92, %c1792] : memref<2x2048xf32, #tpu.memory_space<vmem>>, vector<1x256xf32>
    tpu.vector_store %arg17[%c0_92, %c1792], %97 {strides = array<i32>} : memref<2x2048xf32, #tpu.memory_space<vmem>>, vector<1x256xf32>,
    %99 = vector.extract_strided_slice %82 {offsets = [0, 256], sizes = [1, 256], strides = [1, 1]} : vector<8x512xf32> to vector<1x256xf32>
    %c1 = arith.constant 1 : index
    %c0_93 = arith.constant 0 : index
    %100 = vector.load %arg17[%c1, %c0_93] : memref<2x2048xf32, #tpu.memory_space<vmem>>, vector<1x256xf32>
    tpu.vector_store %arg17[%c1, %c0_93], %99 {strides = array<i32>} : memref<2x2048xf32, #tpu.memory_space<vmem>>, vector<1x256xf32>,
    %101 = vector.extract_strided_slice %82 {offsets = [1, 256], sizes = [1, 256], strides = [1, 1]} : vector<8x512xf32> to vector<1x256xf32>
    %c1_94 = arith.constant 1 : index
    %c256_95 = arith.constant 256 : index
    %102 = vector.load %arg17[%c1_94, %c256_95] : memref<2x2048xf32, #tpu.memory_space<vmem>>, vector<1x256xf32>
    tpu.vector_store %arg17[%c1_94, %c256_95], %101 {strides = array<i32>} : memref<2x2048xf32, #tpu.memory_space<vmem>>, vector<1x256xf32>,
    %103 = vector.extract_strided_slice %82 {offsets = [2, 256], sizes = [1, 256], strides = [1, 1]} : vector<8x512xf32> to vector<1x256xf32>
    %c1_96 = arith.constant 1 : index
    %c512_97 = arith.constant 512 : index
    %104 = vector.load %arg17[%c1_96, %c512_97] : memref<2x2048xf32, #tpu.memory_space<vmem>>, vector<1x256xf32>
    tpu.vector_store %arg17[%c1_96, %c512_97], %103 {strides = array<i32>} : memref<2x2048xf32, #tpu.memory_space<vmem>>, vector<1x256xf32>,
    %105 = vector.extract_strided_slice %82 {offsets = [3, 256], sizes = [1, 256], strides = [1, 1]} : vector<8x512xf32> to vector<1x256xf32>
    %c1_98 = arith.constant 1 : index
    %c768_99 = arith.constant 768 : index
    %106 = vector.load %arg17[%c1_98, %c768_99] : memref<2x2048xf32, #tpu.memory_space<vmem>>, vector<1x256xf32>
    tpu.vector_store %arg17[%c1_98, %c768_99], %105 {strides = array<i32>} : memref<2x2048xf32, #tpu.memory_space<vmem>>, vector<1x256xf32>,
    %107 = vector.extract_strided_slice %82 {offsets = [4, 256], sizes = [1, 256], strides = [1, 1]} : vector<8x512xf32> to vector<1x256xf32>
    %c1_100 = arith.constant 1 : index
    %c1024_101 = arith.constant 1024 : index
    %108 = vector.load %arg17[%c1_100, %c1024_101] : memref<2x2048xf32, #tpu.memory_space<vmem>>, vector<1x256xf32>
    tpu.vector_store %arg17[%c1_100, %c1024_101], %107 {strides = array<i32>} : memref<2x2048xf32, #tpu.memory_space<vmem>>, vector<1x256xf32>,
    %109 = vector.extract_strided_slice %82 {offsets = [5, 256], sizes = [1, 256], strides = [1, 1]} : vector<8x512xf32> to vector<1x256xf32>
    %c1_102 = arith.constant 1 : index
    %c1280_103 = arith.constant 1280 : index
    %110 = vector.load %arg17[%c1_102, %c1280_103] : memref<2x2048xf32, #tpu.memory_space<vmem>>, vector<1x256xf32>
    tpu.vector_store %arg17[%c1_102, %c1280_103], %109 {strides = array<i32>} : memref<2x2048xf32, #tpu.memory_space<vmem>>, vector<1x256xf32>,
    %111 = vector.extract_strided_slice %82 {offsets = [6, 256], sizes = [1, 256], strides = [1, 1]} : vector<8x512xf32> to vector<1x256xf32>
    %c1_104 = arith.constant 1 : index
    %c1536_105 = arith.constant 1536 : index
    %112 = vector.load %arg17[%c1_104, %c1536_105] : memref<2x2048xf32, #tpu.memory_space<vmem>>, vector<1x256xf32>
    tpu.vector_store %arg17[%c1_104, %c1536_105], %111 {strides = array<i32>} : memref<2x2048xf32, #tpu.memory_space<vmem>>, vector<1x256xf32>,
    %113 = vector.extract_strided_slice %82 {offsets = [7, 256], sizes = [1, 256], strides = [1, 1]} : vector<8x512xf32> to vector<1x256xf32>
    %c1_106 = arith.constant 1 : index
    %c1792_107 = arith.constant 1792 : index
    %114 = vector.load %arg17[%c1_106, %c1792_107] : memref<2x2048xf32, #tpu.memory_space<vmem>>, vector<1x256xf32>
    tpu.vector_store %arg17[%c1_106, %c1792_107], %113 {strides = array<i32>} : memref<2x2048xf32, #tpu.memory_space<vmem>>, vector<1x256xf32>,
    %c0_108 = arith.constant 0 : index
    %c0_109 = arith.constant 0 : index
    %115 = vector.load %arg17[%c0_108, %c0_109] : memref<2x2048xf32, #tpu.memory_space<vmem>>, vector<2x2048xf32>
    %c0_110 = arith.constant 0 : index
    %c0_111 = arith.constant 0 : index
    %116 = vector.load %arg7[%c0_110, %c0_111] : memref<2048x32xf32, #tpu.memory_space<vmem>>, vector<2048x32xf32>
    %cst_112 = arith.constant dense<0.000000e+00> : vector<2x32xf32>
    %117 = tpu.matmul %115, %116, %cst_112 {dimension_numbers = #tpu.dot_dimension_numbers<[1], [0], [0], [1], [0, 0, 1, 1], [], []>} : vector<2x2048xf32>, vector<2048x32xf32>, vector<2x32xf32> -> vector<2x32xf32>
    %c0_113 = arith.constant 0 : index
    %c0_114 = arith.constant 0 : index
    %118 = vector.load %arg8[%c0_113, %c0_114] : memref<1x32xf32, #tpu.memory_space<vmem>>, vector<1x32xf32>
    %119 = vector.broadcast %118 : vector<1x32xf32> to vector<2x32xf32>
    %120 = arith.addf %117, %119 : vector<2x32xf32>
    %c0_115 = arith.constant 0 : index
    %c0_116 = arith.constant 0 : index
    %121 = vector.load %arg9[%c0_115, %c0_116] : memref<32x2048xf32, #tpu.memory_space<vmem>>, vector<32x2048xf32>
    %cst_117 = arith.constant dense<0.000000e+00> : vector<2x2048xf32>
    %122 = tpu.matmul %120, %121, %cst_117 {dimension_numbers = #tpu.dot_dimension_numbers<[1], [0], [0], [1], [0, 0, 1, 1], [], []>} : vector<2x32xf32>, vector<32x2048xf32>, vector<2x2048xf32> -> vector<2x2048xf32>
    %c0_118 = arith.constant 0 : index
    %c0_119 = arith.constant 0 : index
    %123 = vector.load %arg10[%c0_118, %c0_119] : memref<1x2048xf32, #tpu.memory_space<vmem>>, vector<1x2048xf32>
    %124 = vector.broadcast %123 : vector<1x2048xf32> to vector<2x2048xf32>
    %125 = arith.addf %122, %124 : vector<2x2048xf32>
    %126 = vector.extract_strided_slice %125 {offsets = [0, 0], sizes = [1, 256], strides = [1, 1]} : vector<2x2048xf32> to vector<1x256xf32>
    %c0_120 = arith.constant 0 : index
    %c0_121 = arith.constant 0 : index
    %127 = vector.load %arg16[%c0_120, %c0_121] : memref<8x512xf32, #tpu.memory_space<vmem>>, vector<1x256xf32>
    tpu.vector_store %arg16[%c0_120, %c0_121], %126 {strides = array<i32>} : memref<8x512xf32, #tpu.memory_space<vmem>>, vector<1x256xf32>,
    %128 = vector.extract_strided_slice %125 {offsets = [0, 256], sizes = [1, 256], strides = [1, 1]} : vector<2x2048xf32> to vector<1x256xf32>
    %c1_122 = arith.constant 1 : index
    %c0_123 = arith.constant 0 : index
    %129 = vector.load %arg16[%c1_122, %c0_123] : memref<8x512xf32, #tpu.memory_space<vmem>>, vector<1x256xf32>
    tpu.vector_store %arg16[%c1_122, %c0_123], %128 {strides = array<i32>} : memref<8x512xf32, #tpu.memory_space<vmem>>, vector<1x256xf32>,
    %130 = vector.extract_strided_slice %125 {offsets = [0, 512], sizes = [1, 256], strides = [1, 1]} : vector<2x2048xf32> to vector<1x256xf32>
    %c2 = arith.constant 2 : index
    %c0_124 = arith.constant 0 : index
    %131 = vector.load %arg16[%c2, %c0_124] : memref<8x512xf32, #tpu.memory_space<vmem>>, vector<1x256xf32>
    tpu.vector_store %arg16[%c2, %c0_124], %130 {strides = array<i32>} : memref<8x512xf32, #tpu.memory_space<vmem>>, vector<1x256xf32>,
    %132 = vector.extract_strided_slice %125 {offsets = [0, 768], sizes = [1, 256], strides = [1, 1]} : vector<2x2048xf32> to vector<1x256xf32>
    %c3 = arith.constant 3 : index
    %c0_125 = arith.constant 0 : index
    %133 = vector.load %arg16[%c3, %c0_125] : memref<8x512xf32, #tpu.memory_space<vmem>>, vector<1x256xf32>
    tpu.vector_store %arg16[%c3, %c0_125], %132 {strides = array<i32>} : memref<8x512xf32, #tpu.memory_space<vmem>>, vector<1x256xf32>,
    %134 = vector.extract_strided_slice %125 {offsets = [0, 1024], sizes = [1, 256], strides = [1, 1]} : vector<2x2048xf32> to vector<1x256xf32>
    %c4 = arith.constant 4 : index
    %c0_126 = arith.constant 0 : index
    %135 = vector.load %arg16[%c4, %c0_126] : memref<8x512xf32, #tpu.memory_space<vmem>>, vector<1x256xf32>
    tpu.vector_store %arg16[%c4, %c0_126], %134 {strides = array<i32>} : memref<8x512xf32, #tpu.memory_space<vmem>>, vector<1x256xf32>,
    %136 = vector.extract_strided_slice %125 {offsets = [0, 1280], sizes = [1, 256], strides = [1, 1]} : vector<2x2048xf32> to vector<1x256xf32>
    %c5 = arith.constant 5 : index
    %c0_127 = arith.constant 0 : index
    %137 = vector.load %arg16[%c5, %c0_127] : memref<8x512xf32, #tpu.memory_space<vmem>>, vector<1x256xf32>
    tpu.vector_store %arg16[%c5, %c0_127], %136 {strides = array<i32>} : memref<8x512xf32, #tpu.memory_space<vmem>>, vector<1x256xf32>,
    %138 = vector.extract_strided_slice %125 {offsets = [0, 1536], sizes = [1, 256], strides = [1, 1]} : vector<2x2048xf32> to vector<1x256xf32>
    %c6 = arith.constant 6 : index
    %c0_128 = arith.constant 0 : index
    %139 = vector.load %arg16[%c6, %c0_128] : memref<8x512xf32, #tpu.memory_space<vmem>>, vector<1x256xf32>
    tpu.vector_store %arg16[%c6, %c0_128], %138 {strides = array<i32>} : memref<8x512xf32, #tpu.memory_space<vmem>>, vector<1x256xf32>,
    %140 = vector.extract_strided_slice %125 {offsets = [0, 1792], sizes = [1, 256], strides = [1, 1]} : vector<2x2048xf32> to vector<1x256xf32>
    %c7 = arith.constant 7 : index
    %c0_129 = arith.constant 0 : index
    %141 = vector.load %arg16[%c7, %c0_129] : memref<8x512xf32, #tpu.memory_space<vmem>>, vector<1x256xf32>
    tpu.vector_store %arg16[%c7, %c0_129], %140 {strides = array<i32>} : memref<8x512xf32, #tpu.memory_space<vmem>>, vector<1x256xf32>,
    %142 = vector.extract_strided_slice %125 {offsets = [1, 0], sizes = [1, 256], strides = [1, 1]} : vector<2x2048xf32> to vector<1x256xf32>
    %c0_130 = arith.constant 0 : index
    %c256_131 = arith.constant 256 : index
    %143 = vector.load %arg16[%c0_130, %c256_131] : memref<8x512xf32, #tpu.memory_space<vmem>>, vector<1x256xf32>
    tpu.vector_store %arg16[%c0_130, %c256_131], %142 {strides = array<i32>} : memref<8x512xf32, #tpu.memory_space<vmem>>, vector<1x256xf32>,
    %144 = vector.extract_strided_slice %125 {offsets = [1, 256], sizes = [1, 256], strides = [1, 1]} : vector<2x2048xf32> to vector<1x256xf32>
    %c1_132 = arith.constant 1 : index
    %c256_133 = arith.constant 256 : index
    %145 = vector.load %arg16[%c1_132, %c256_133] : memref<8x512xf32, #tpu.memory_space<vmem>>, vector<1x256xf32>
    tpu.vector_store %arg16[%c1_132, %c256_133], %144 {strides = array<i32>} : memref<8x512xf32, #tpu.memory_space<vmem>>, vector<1x256xf32>,
    %146 = vector.extract_strided_slice %125 {offsets = [1, 512], sizes = [1, 256], strides = [1, 1]} : vector<2x2048xf32> to vector<1x256xf32>
    %c2_134 = arith.constant 2 : index
    %c256_135 = arith.constant 256 : index
    %147 = vector.load %arg16[%c2_134, %c256_135] : memref<8x512xf32, #tpu.memory_space<vmem>>, vector<1x256xf32>
    tpu.vector_store %arg16[%c2_134, %c256_135], %146 {strides = array<i32>} : memref<8x512xf32, #tpu.memory_space<vmem>>, vector<1x256xf32>,
    %148 = vector.extract_strided_slice %125 {offsets = [1, 768], sizes = [1, 256], strides = [1, 1]} : vector<2x2048xf32> to vector<1x256xf32>
    %c3_136 = arith.constant 3 : index
    %c256_137 = arith.constant 256 : index
    %149 = vector.load %arg16[%c3_136, %c256_137] : memref<8x512xf32, #tpu.memory_space<vmem>>, vector<1x256xf32>
    tpu.vector_store %arg16[%c3_136, %c256_137], %148 {strides = array<i32>} : memref<8x512xf32, #tpu.memory_space<vmem>>, vector<1x256xf32>,
    %150 = vector.extract_strided_slice %125 {offsets = [1, 1024], sizes = [1, 256], strides = [1, 1]} : vector<2x2048xf32> to vector<1x256xf32>
    %c4_138 = arith.constant 4 : index
    %c256_139 = arith.constant 256 : index
    %151 = vector.load %arg16[%c4_138, %c256_139] : memref<8x512xf32, #tpu.memory_space<vmem>>, vector<1x256xf32>
    tpu.vector_store %arg16[%c4_138, %c256_139], %150 {strides = array<i32>} : memref<8x512xf32, #tpu.memory_space<vmem>>, vector<1x256xf32>,
    %152 = vector.extract_strided_slice %125 {offsets = [1, 1280], sizes = [1, 256], strides = [1, 1]} : vector<2x2048xf32> to vector<1x256xf32>
    %c5_140 = arith.constant 5 : index
    %c256_141 = arith.constant 256 : index
    %153 = vector.load %arg16[%c5_140, %c256_141] : memref<8x512xf32, #tpu.memory_space<vmem>>, vector<1x256xf32>
    tpu.vector_store %arg16[%c5_140, %c256_141], %152 {strides = array<i32>} : memref<8x512xf32, #tpu.memory_space<vmem>>, vector<1x256xf32>,
    %154 = vector.extract_strided_slice %125 {offsets = [1, 1536], sizes = [1, 256], strides = [1, 1]} : vector<2x2048xf32> to vector<1x256xf32>
    %c6_142 = arith.constant 6 : index
    %c256_143 = arith.constant 256 : index
    %155 = vector.load %arg16[%c6_142, %c256_143] : memref<8x512xf32, #tpu.memory_space<vmem>>, vector<1x256xf32>
    tpu.vector_store %arg16[%c6_142, %c256_143], %154 {strides = array<i32>} : memref<8x512xf32, #tpu.memory_space<vmem>>, vector<1x256xf32>,
    %156 = vector.extract_strided_slice %125 {offsets = [1, 1792], sizes = [1, 256], strides = [1, 1]} : vector<2x2048xf32> to vector<1x256xf32>
    %c7_144 = arith.constant 7 : index
    %c256_145 = arith.constant 256 : index
    %157 = vector.load %arg16[%c7_144, %c256_145] : memref<8x512xf32, #tpu.memory_space<vmem>>, vector<1x256xf32>
    tpu.vector_store %arg16[%c7_144, %c256_145], %156 {strides = array<i32>} : memref<8x512xf32, #tpu.memory_space<vmem>>, vector<1x256xf32>,
    %c0_146 = arith.constant 0 : index
    %c0_147 = arith.constant 0 : index
    %158 = vector.load %arg16[%c0_146, %c0_147] : memref<8x512xf32, #tpu.memory_space<vmem>>, vector<8x512xf32>
    %c17_i32_148 = arith.constant 17 : i32
    %159 = tpu.dynamic_rotate %158 by %c17_i32_148 dim 1 : vector<8x512xf32>, i32 -> vector<8x512xf32>
    %c0_149 = arith.constant 0 : index
    %c0_150 = arith.constant 0 : index
    %160 = vector.load %arg2[%c0_149, %c0_150] : memref<72x512xf32, #tpu.memory_space<vmem>>, vector<8x512xf32>
    %161 = arith.mulf %159, %160 : vector<8x512xf32>
    %c0_151 = arith.constant 0 : index
    %c0_152 = arith.constant 0 : index
    %162 = vector.load %arg18[%c0_151, %c0_152] : memref<72x512xf32, #tpu.memory_space<vmem>>, vector<8x512xf32>
    tpu.vector_store %arg18[%c0_151, %c0_152], %161 {strides = array<i32>} : memref<72x512xf32, #tpu.memory_space<vmem>>, vector<8x512xf32>,
    %c16_i32_153 = arith.constant 16 : i32
    %163 = tpu.dynamic_rotate %158 by %c16_i32_153 dim 1 : vector<8x512xf32>, i32 -> vector<8x512xf32>
    %c8_154 = arith.constant 8 : index
    %c0_155 = arith.constant 0 : index
    %164 = vector.load %arg2[%c8_154, %c0_155] : memref<72x512xf32, #tpu.memory_space<vmem>>, vector<8x512xf32>
    %165 = arith.mulf %163, %164 : vector<8x512xf32>
    %c8_156 = arith.constant 8 : index
    %c0_157 = arith.constant 0 : index
    %166 = vector.load %arg18[%c8_156, %c0_157] : memref<72x512xf32, #tpu.memory_space<vmem>>, vector<8x512xf32>
    tpu.vector_store %arg18[%c8_156, %c0_157], %165 {strides = array<i32>} : memref<72x512xf32, #tpu.memory_space<vmem>>, vector<8x512xf32>,
    %c15_i32_158 = arith.constant 15 : i32
    %167 = tpu.dynamic_rotate %158 by %c15_i32_158 dim 1 : vector<8x512xf32>, i32 -> vector<8x512xf32>
    %c16_159 = arith.constant 16 : index
    %c0_160 = arith.constant 0 : index
    %168 = vector.load %arg2[%c16_159, %c0_160] : memref<72x512xf32, #tpu.memory_space<vmem>>, vector<8x512xf32>
    %169 = arith.mulf %167, %168 : vector<8x512xf32>
    %c16_161 = arith.constant 16 : index
    %c0_162 = arith.constant 0 : index
    %170 = vector.load %arg18[%c16_161, %c0_162] : memref<72x512xf32, #tpu.memory_space<vmem>>, vector<8x512xf32>
    tpu.vector_store %arg18[%c16_161, %c0_162], %169 {strides = array<i32>} : memref<72x512xf32, #tpu.memory_space<vmem>>, vector<8x512xf32>,
    %c1_i32_163 = arith.constant 1 : i32
    %171 = tpu.dynamic_rotate %158 by %c1_i32_163 dim 1 : vector<8x512xf32>, i32 -> vector<8x512xf32>
    %c24_164 = arith.constant 24 : index
    %c0_165 = arith.constant 0 : index
    %172 = vector.load %arg2[%c24_164, %c0_165] : memref<72x512xf32, #tpu.memory_space<vmem>>, vector<8x512xf32>
    %173 = arith.mulf %171, %172 : vector<8x512xf32>
    %c24_166 = arith.constant 24 : index
    %c0_167 = arith.constant 0 : index
    %174 = vector.load %arg18[%c24_166, %c0_167] : memref<72x512xf32, #tpu.memory_space<vmem>>, vector<8x512xf32>
    tpu.vector_store %arg18[%c24_166, %c0_167], %173 {strides = array<i32>} : memref<72x512xf32, #tpu.memory_space<vmem>>, vector<8x512xf32>,
    %c32_168 = arith.constant 32 : index
    %c0_169 = arith.constant 0 : index
    %175 = vector.load %arg18[%c32_168, %c0_169] : memref<72x512xf32, #tpu.memory_space<vmem>>, vector<8x512xf32>
    tpu.vector_store %arg18[%c32_168, %c0_169], %158 {strides = array<i32>} : memref<72x512xf32, #tpu.memory_space<vmem>>, vector<8x512xf32>,
    %c511_i32_170 = arith.constant 511 : i32
    %176 = tpu.dynamic_rotate %158 by %c511_i32_170 dim 1 : vector<8x512xf32>, i32 -> vector<8x512xf32>
    %c40_171 = arith.constant 40 : index
    %c0_172 = arith.constant 0 : index
    %177 = vector.load %arg2[%c40_171, %c0_172] : memref<72x512xf32, #tpu.memory_space<vmem>>, vector<8x512xf32>
    %178 = arith.mulf %176, %177 : vector<8x512xf32>
    %c40_173 = arith.constant 40 : index
    %c0_174 = arith.constant 0 : index
    %179 = vector.load %arg18[%c40_173, %c0_174] : memref<72x512xf32, #tpu.memory_space<vmem>>, vector<8x512xf32>
    tpu.vector_store %arg18[%c40_173, %c0_174], %178 {strides = array<i32>} : memref<72x512xf32, #tpu.memory_space<vmem>>, vector<8x512xf32>,
    %c497_i32_175 = arith.constant 497 : i32
    %180 = tpu.dynamic_rotate %158 by %c497_i32_175 dim 1 : vector<8x512xf32>, i32 -> vector<8x512xf32>
    %c48_176 = arith.constant 48 : index
    %c0_177 = arith.constant 0 : index
    %181 = vector.load %arg2[%c48_176, %c0_177] : memref<72x512xf32, #tpu.memory_space<vmem>>, vector<8x512xf32>
    %182 = arith.mulf %180, %181 : vector<8x512xf32>
    %c48_178 = arith.constant 48 : index
    %c0_179 = arith.constant 0 : index
    %183 = vector.load %arg18[%c48_178, %c0_179] : memref<72x512xf32, #tpu.memory_space<vmem>>, vector<8x512xf32>
    tpu.vector_store %arg18[%c48_178, %c0_179], %182 {strides = array<i32>} : memref<72x512xf32, #tpu.memory_space<vmem>>, vector<8x512xf32>,
    %c496_i32_180 = arith.constant 496 : i32
    %184 = tpu.dynamic_rotate %158 by %c496_i32_180 dim 1 : vector<8x512xf32>, i32 -> vector<8x512xf32>
    %c56_181 = arith.constant 56 : index
    %c0_182 = arith.constant 0 : index
    %185 = vector.load %arg2[%c56_181, %c0_182] : memref<72x512xf32, #tpu.memory_space<vmem>>, vector<8x512xf32>
    %186 = arith.mulf %184, %185 : vector<8x512xf32>
    %c56_183 = arith.constant 56 : index
    %c0_184 = arith.constant 0 : index
    %187 = vector.load %arg18[%c56_183, %c0_184] : memref<72x512xf32, #tpu.memory_space<vmem>>, vector<8x512xf32>
    tpu.vector_store %arg18[%c56_183, %c0_184], %186 {strides = array<i32>} : memref<72x512xf32, #tpu.memory_space<vmem>>, vector<8x512xf32>,
    %c495_i32_185 = arith.constant 495 : i32
    %188 = tpu.dynamic_rotate %158 by %c495_i32_185 dim 1 : vector<8x512xf32>, i32 -> vector<8x512xf32>
    %c64_186 = arith.constant 64 : index
    %c0_187 = arith.constant 0 : index
    %189 = vector.load %arg2[%c64_186, %c0_187] : memref<72x512xf32, #tpu.memory_space<vmem>>, vector<8x512xf32>
    %190 = arith.mulf %188, %189 : vector<8x512xf32>
    %c64_188 = arith.constant 64 : index
    %c0_189 = arith.constant 0 : index
    %191 = vector.load %arg18[%c64_188, %c0_189] : memref<72x512xf32, #tpu.memory_space<vmem>>, vector<8x512xf32>
    tpu.vector_store %arg18[%c64_188, %c0_189], %190 {strides = array<i32>} : memref<72x512xf32, #tpu.memory_space<vmem>>, vector<8x512xf32>,
    %c0_190 = arith.constant 0 : index
    %c0_191 = arith.constant 0 : index
    %192 = vector.load %arg11[%c0_190, %c0_191] : memref<8x72xf32, #tpu.memory_space<vmem>>, vector<8x72xf32>
    %c0_192 = arith.constant 0 : index
    %c0_193 = arith.constant 0 : index
    %193 = vector.load %arg18[%c0_192, %c0_193] : memref<72x512xf32, #tpu.memory_space<vmem>>, vector<72x512xf32>
    %cst_194 = arith.constant dense<0.000000e+00> : vector<8x512xf32>
    %194 = tpu.matmul %192, %193, %cst_194 {dimension_numbers = #tpu.dot_dimension_numbers<[1], [0], [0], [1], [0, 0, 1, 1], [], []>} : vector<8x72xf32>, vector<72x512xf32>, vector<8x512xf32> -> vector<8x512xf32>
    %c0_195 = arith.constant 0 : index
    %c0_196 = arith.constant 0 : index
    %195 = vector.load %arg12[%c0_195, %c0_196] : memref<8x1xf32, #tpu.memory_space<vmem>>, vector<8x1xf32>
    %196 = vector.broadcast %195 : vector<8x1xf32> to vector<8x512xf32>
    %197 = arith.addf %194, %196 : vector<8x512xf32>
    %cst_197 = arith.constant 0.000000e+00 : f32
    %198 = vector.broadcast %cst_197 : f32 to vector<8x512xf32>
    %199 = arith.maximumf %197, %198 : vector<8x512xf32>
    %c17_i32_198 = arith.constant 17 : i32
    %200 = tpu.dynamic_rotate %199 by %c17_i32_198 dim 1 : vector<8x512xf32>, i32 -> vector<8x512xf32>
    %c0_199 = arith.constant 0 : index
    %c0_200 = arith.constant 0 : index
    %201 = vector.load %arg2[%c0_199, %c0_200] : memref<72x512xf32, #tpu.memory_space<vmem>>, vector<8x512xf32>
    %202 = arith.mulf %200, %201 : vector<8x512xf32>
    %c0_201 = arith.constant 0 : index
    %c0_202 = arith.constant 0 : index
    %203 = vector.load %arg18[%c0_201, %c0_202] : memref<72x512xf32, #tpu.memory_space<vmem>>, vector<8x512xf32>
    tpu.vector_store %arg18[%c0_201, %c0_202], %202 {strides = array<i32>} : memref<72x512xf32, #tpu.memory_space<vmem>>, vector<8x512xf32>,
    %c16_i32_203 = arith.constant 16 : i32
    %204 = tpu.dynamic_rotate %199 by %c16_i32_203 dim 1 : vector<8x512xf32>, i32 -> vector<8x512xf32>
    %c8_204 = arith.constant 8 : index
    %c0_205 = arith.constant 0 : index
    %205 = vector.load %arg2[%c8_204, %c0_205] : memref<72x512xf32, #tpu.memory_space<vmem>>, vector<8x512xf32>
    %206 = arith.mulf %204, %205 : vector<8x512xf32>
    %c8_206 = arith.constant 8 : index
    %c0_207 = arith.constant 0 : index
    %207 = vector.load %arg18[%c8_206, %c0_207] : memref<72x512xf32, #tpu.memory_space<vmem>>, vector<8x512xf32>
    tpu.vector_store %arg18[%c8_206, %c0_207], %206 {strides = array<i32>} : memref<72x512xf32, #tpu.memory_space<vmem>>, vector<8x512xf32>,
    %c15_i32_208 = arith.constant 15 : i32
    %208 = tpu.dynamic_rotate %199 by %c15_i32_208 dim 1 : vector<8x512xf32>, i32 -> vector<8x512xf32>
    %c16_209 = arith.constant 16 : index
    %c0_210 = arith.constant 0 : index
    %209 = vector.load %arg2[%c16_209, %c0_210] : memref<72x512xf32, #tpu.memory_space<vmem>>, vector<8x512xf32>
    %210 = arith.mulf %208, %209 : vector<8x512xf32>
    %c16_211 = arith.constant 16 : index
    %c0_212 = arith.constant 0 : index
    %211 = vector.load %arg18[%c16_211, %c0_212] : memref<72x512xf32, #tpu.memory_space<vmem>>, vector<8x512xf32>
    tpu.vector_store %arg18[%c16_211, %c0_212], %210 {strides = array<i32>} : memref<72x512xf32, #tpu.memory_space<vmem>>, vector<8x512xf32>,
    %c1_i32_213 = arith.constant 1 : i32
    %212 = tpu.dynamic_rotate %199 by %c1_i32_213 dim 1 : vector<8x512xf32>, i32 -> vector<8x512xf32>
    %c24_214 = arith.constant 24 : index
    %c0_215 = arith.constant 0 : index
    %213 = vector.load %arg2[%c24_214, %c0_215] : memref<72x512xf32, #tpu.memory_space<vmem>>, vector<8x512xf32>
    %214 = arith.mulf %212, %213 : vector<8x512xf32>
    %c24_216 = arith.constant 24 : index
    %c0_217 = arith.constant 0 : index
    %215 = vector.load %arg18[%c24_216, %c0_217] : memref<72x512xf32, #tpu.memory_space<vmem>>, vector<8x512xf32>
    tpu.vector_store %arg18[%c24_216, %c0_217], %214 {strides = array<i32>} : memref<72x512xf32, #tpu.memory_space<vmem>>, vector<8x512xf32>,
    %c32_218 = arith.constant 32 : index
    %c0_219 = arith.constant 0 : index
    %216 = vector.load %arg18[%c32_218, %c0_219] : memref<72x512xf32, #tpu.memory_space<vmem>>, vector<8x512xf32>
    tpu.vector_store %arg18[%c32_218, %c0_219], %199 {strides = array<i32>} : memref<72x512xf32, #tpu.memory_space<vmem>>, vector<8x512xf32>,
    %c511_i32_220 = arith.constant 511 : i32
    %217 = tpu.dynamic_rotate %199 by %c511_i32_220 dim 1 : vector<8x512xf32>, i32 -> vector<8x512xf32>
    %c40_221 = arith.constant 40 : index
    %c0_222 = arith.constant 0 : index
    %218 = vector.load %arg2[%c40_221, %c0_222] : memref<72x512xf32, #tpu.memory_space<vmem>>, vector<8x512xf32>
    %219 = arith.mulf %217, %218 : vector<8x512xf32>
    %c40_223 = arith.constant 40 : index
    %c0_224 = arith.constant 0 : index
    %220 = vector.load %arg18[%c40_223, %c0_224] : memref<72x512xf32, #tpu.memory_space<vmem>>, vector<8x512xf32>
    tpu.vector_store %arg18[%c40_223, %c0_224], %219 {strides = array<i32>} : memref<72x512xf32, #tpu.memory_space<vmem>>, vector<8x512xf32>,
    %c497_i32_225 = arith.constant 497 : i32
    %221 = tpu.dynamic_rotate %199 by %c497_i32_225 dim 1 : vector<8x512xf32>, i32 -> vector<8x512xf32>
    %c48_226 = arith.constant 48 : index
    %c0_227 = arith.constant 0 : index
    %222 = vector.load %arg2[%c48_226, %c0_227] : memref<72x512xf32, #tpu.memory_space<vmem>>, vector<8x512xf32>
    %223 = arith.mulf %221, %222 : vector<8x512xf32>
    %c48_228 = arith.constant 48 : index
    %c0_229 = arith.constant 0 : index
    %224 = vector.load %arg18[%c48_228, %c0_229] : memref<72x512xf32, #tpu.memory_space<vmem>>, vector<8x512xf32>
    tpu.vector_store %arg18[%c48_228, %c0_229], %223 {strides = array<i32>} : memref<72x512xf32, #tpu.memory_space<vmem>>, vector<8x512xf32>,
    %c496_i32_230 = arith.constant 496 : i32
    %225 = tpu.dynamic_rotate %199 by %c496_i32_230 dim 1 : vector<8x512xf32>, i32 -> vector<8x512xf32>
    %c56_231 = arith.constant 56 : index
    %c0_232 = arith.constant 0 : index
    %226 = vector.load %arg2[%c56_231, %c0_232] : memref<72x512xf32, #tpu.memory_space<vmem>>, vector<8x512xf32>
    %227 = arith.mulf %225, %226 : vector<8x512xf32>
    %c56_233 = arith.constant 56 : index
    %c0_234 = arith.constant 0 : index
    %228 = vector.load %arg18[%c56_233, %c0_234] : memref<72x512xf32, #tpu.memory_space<vmem>>, vector<8x512xf32>
    tpu.vector_store %arg18[%c56_233, %c0_234], %227 {strides = array<i32>} : memref<72x512xf32, #tpu.memory_space<vmem>>, vector<8x512xf32>,
    %c495_i32_235 = arith.constant 495 : i32
    %229 = tpu.dynamic_rotate %199 by %c495_i32_235 dim 1 : vector<8x512xf32>, i32 -> vector<8x512xf32>
    %c64_236 = arith.constant 64 : index
    %c0_237 = arith.constant 0 : index
    %230 = vector.load %arg2[%c64_236, %c0_237] : memref<72x512xf32, #tpu.memory_space<vmem>>, vector<8x512xf32>
    %231 = arith.mulf %229, %230 : vector<8x512xf32>
    %c64_238 = arith.constant 64 : index
    %c0_239 = arith.constant 0 : index
    %232 = vector.load %arg18[%c64_238, %c0_239] : memref<72x512xf32, #tpu.memory_space<vmem>>, vector<8x512xf32>
    tpu.vector_store %arg18[%c64_238, %c0_239], %231 {strides = array<i32>} : memref<72x512xf32, #tpu.memory_space<vmem>>, vector<8x512xf32>,
    %c0_240 = arith.constant 0 : index
    %c0_241 = arith.constant 0 : index
    %233 = vector.load %arg13[%c0_240, %c0_241] : memref<4x72xf32, #tpu.memory_space<vmem>>, vector<4x72xf32>
    %c0_242 = arith.constant 0 : index
    %c0_243 = arith.constant 0 : index
    %234 = vector.load %arg18[%c0_242, %c0_243] : memref<72x512xf32, #tpu.memory_space<vmem>>, vector<72x512xf32>
    %cst_244 = arith.constant dense<0.000000e+00> : vector<4x512xf32>
    %235 = tpu.matmul %233, %234, %cst_244 {dimension_numbers = #tpu.dot_dimension_numbers<[1], [0], [0], [1], [0, 0, 1, 1], [], []>} : vector<4x72xf32>, vector<72x512xf32>, vector<4x512xf32> -> vector<4x512xf32>
    %c0_245 = arith.constant 0 : index
    %c0_246 = arith.constant 0 : index
    %236 = vector.load %arg14[%c0_245, %c0_246] : memref<4x1xf32, #tpu.memory_space<vmem>>, vector<4x1xf32>
    %237 = vector.broadcast %236 : vector<4x1xf32> to vector<4x512xf32>
    %238 = arith.addf %235, %237 : vector<4x512xf32>
    %c0_247 = arith.constant 0 : index
    %c0_248 = arith.constant 0 : index
    %239 = vector.load %arg15[%c0_247, %c0_248] : memref<4x512xf32, #tpu.memory_space<vmem>>, vector<4x512xf32>
    tpu.vector_store %arg15[%c0_247, %c0_248], %238 {strides = array<i32>} : memref<4x512xf32, #tpu.memory_space<vmem>>, vector<4x512xf32>,
    return
  }
  func.func @transform_0(%arg0: i32) -> (i32, i32) {
    %c0_i32 = arith.constant 0 : i32
    %c0_i32_0 = arith.constant 0 : i32
    %c0_i32_1 = arith.constant 0 : i32
    return %c0_i32, %c0_i32_0 : i32, i32
  }
  func.func @transform_1(%arg0: i32) -> (i32, i32) {
    %c0_i32 = arith.constant 0 : i32
    %c0_i32_0 = arith.constant 0 : i32
    %c0_i32_1 = arith.constant 0 : i32
    return %c0_i32, %c0_i32_0 : i32, i32
  }
  func.func @transform_2(%arg0: i32) -> (i32, i32) {
    %c0_i32 = arith.constant 0 : i32
    %c0_i32_0 = arith.constant 0 : i32
    %c0_i32_1 = arith.constant 0 : i32
    return %c0_i32, %c0_i32_0 : i32, i32
  }
  func.func @transform_3(%arg0: i32) -> (i32, i32) {
    %c0_i32 = arith.constant 0 : i32
    %c0_i32_0 = arith.constant 0 : i32
    %c0_i32_1 = arith.constant 0 : i32
    return %c0_i32, %c0_i32_0 : i32, i32
  }
  func.func @transform_4(%arg0: i32) -> (i32, i32) {
    %c0_i32 = arith.constant 0 : i32
    %c0_i32_0 = arith.constant 0 : i32
    %c0_i32_1 = arith.constant 0 : i32
    return %c0_i32, %c0_i32_0 : i32, i32
  }
  func.func @transform_5(%arg0: i32) -> (i32, i32) {
    %c0_i32 = arith.constant 0 : i32
    %c0_i32_0 = arith.constant 0 : i32
    %c0_i32_1 = arith.constant 0 : i32
    return %c0_i32, %c0_i32_0 : i32, i32
  }
  func.func @transform_6(%arg0: i32) -> (i32, i32) {
    %c0_i32 = arith.constant 0 : i32
    %c0_i32_0 = arith.constant 0 : i32
    %c0_i32_1 = arith.constant 0 : i32
    return %c0_i32, %c0_i32_0 : i32, i32
  }
  func.func @transform_7(%arg0: i32) -> (i32, i32) {
    %c0_i32 = arith.constant 0 : i32
    %c0_i32_0 = arith.constant 0 : i32
    %c0_i32_1 = arith.constant 0 : i32
    return %c0_i32, %c0_i32_0 : i32, i32
  }
  func.func @transform_8(%arg0: i32) -> (i32, i32) {
    %c0_i32 = arith.constant 0 : i32
    %c0_i32_0 = arith.constant 0 : i32
    %c0_i32_1 = arith.constant 0 : i32
    return %c0_i32, %c0_i32_0 : i32, i32
  }
  func.func @transform_9(%arg0: i32) -> (i32, i32) {
    %c0_i32 = arith.constant 0 : i32
    %c0_i32_0 = arith.constant 0 : i32
    %c0_i32_1 = arith.constant 0 : i32
    return %c0_i32, %c0_i32_0 : i32, i32
  }
  func.func @transform_10(%arg0: i32) -> (i32, i32) {
    %c0_i32 = arith.constant 0 : i32
    %c0_i32_0 = arith.constant 0 : i32
    %c0_i32_1 = arith.constant 0 : i32
    return %c0_i32, %c0_i32_0 : i32, i32
  }
  func.func @transform_11(%arg0: i32) -> (i32, i32) {
    %c0_i32 = arith.constant 0 : i32
    %c0_i32_0 = arith.constant 0 : i32
    %c0_i32_1 = arith.constant 0 : i32
    return %c0_i32, %c0_i32_0 : i32, i32
  }
  func.func @transform_12(%arg0: i32) -> (i32, i32) {
    %c0_i32 = arith.constant 0 : i32
    %c0_i32_0 = arith.constant 0 : i32
    %c0_i32_1 = arith.constant 0 : i32
    return %c0_i32, %c0_i32_0 : i32, i32
  }
  func.func @transform_13(%arg0: i32) -> (i32, i32) {
    %c0_i32 = arith.constant 0 : i32
    %c0_i32_0 = arith.constant 0 : i32
    %c0_i32_1 = arith.constant 0 : i32
    return %c0_i32, %c0_i32_0 : i32, i32
  }
  func.func @transform_14(%arg0: i32) -> (i32, i32) {
    %c0_i32 = arith.constant 0 : i32
    %c0_i32_0 = arith.constant 0 : i32
    %c0_i32_1 = arith.constant 0 : i32
    return %c0_i32, %c0_i32_0 : i32, i32
  }
}

</mosaic_0001>

<bundles_post_ra>
// kernel: tpu_custom_call.1
= control target key start
LH: loop header
LB: loop body
LE: loop exit
PB: predicated region body
PF: predicated region fallthrough
CT: control target
= control target key end

     0   :  { %s4480_s17 = smov 17   ;;  %s6850_s0 = inlined_call_operand.vmem [shape: f32[8,512], index: 0, kind: input, shape index: {}]   ;;  %s6851_s1 = inlined_call_operand.vmem [shape: f32[72,512], index: 1, kind: input, shape index: {}]   ;;  %s6852_s2 = inlined_call_operand.vmem [shape: f32[8,72], index: 2, kind: input, shape index: {}]   ;;  %s6853_s3 = inlined_call_operand.vmem [shape: f32[8,1], index: 3, kind: input, shape index: {}]   ;;  %s6854_s4 = inlined_call_operand.vmem [shape: f32[8,72], index: 4, kind: input, shape index: {}]   ;;  %s6855_s5 = inlined_call_operand.vmem [shape: f32[8,1], index: 5, kind: input, shape index: {}]   ;;  %s6856_s6 = inlined_call_operand.vmem [shape: f32[2048,32], index: 6, kind: input, shape index: {}]   ;;  %s6857_s7 = inlined_call_operand.vmem [shape: f32[1,32], index: 7, kind: input, shape index: {}]   ;;  %s6858_s8 = inlined_call_operand.vmem [shape: f32[32,2048], index: 8, kind: input, shape index: {}]   ;;  %s6859_s9 = inlined_call_operand.vmem [shape: f32[1,2048], index: 9, kind: input, shape index: {}]   ;;  %s6860_s10 = inlined_call_operand.vmem [shape: f32[8,72], index: 10, kind: input, shape index: {}]   ;;  %s6861_s11 = inlined_call_operand.vmem [shape: f32[8,1], index: 11, kind: input, shape index: {}]   ;;  %s6862_s12 = inlined_call_operand.vmem [shape: f32[4,72], index: 12, kind: input, shape index: {}]   ;;  %s6863_s13 = inlined_call_operand.vmem [shape: f32[4,1], index: 13, kind: input, shape index: {}]   ;;  %s6864_s14 = inlined_call_operand.hbm [shape: f32[4,512], index: 14, kind: output, shape index: {}]  }
   0x1   :  { %v4571_v0 = vld [vmem:[%s6850_s0 + $0x10] sm:$0xff]  ;;  %v4576_v1 = vld [vmem:[%s6850_s0] sm:$0xff]  ;;  %v4585_v2 = vld [vmem:[%s6850_s0 + $0x18] sm:$0xff] }
   0x2   :  { %56 = vrot.lane.b32.xlu1 %v4571_v0, %s4480_s17  ;;  %52 = vrot.lane.b32.xlu0 %v4576_v1, %s4480_s17  ;;  %v4590_v3 = vld [vmem:[%s6850_s0 + $0x8] sm:$0xff] }
   0x6   :  { %58 = vrot.lane.b32.xlu1 %v4585_v2, %s4480_s17  ;;  %54 = vrot.lane.b32.xlu0 %v4590_v3, %s4480_s17 }
   0x7   :  { %19 = vsyncpa [#allocation6], 0  ;;  %s4481_s22 = smov 16   ;;  %s4482_s0 = smov 15   ;;  %v4487_v4 = vmov 0.0   ;;  %v4488_v5 = vmov 0   ;;  %v60_v7 = vlaneseq }
   0x8   :  { %s4483_s23 = smov 1   ;;  %s4484_s24 = smov 127   ;;  %369 = vmatprep.mubr.f32.mxu0 %v4487_v4  ;;  %440 = vmatprep.mubr.f32.mxu1 %v4487_v4  ;;  %v295_v6 = vld [vmem:[%s6853_s3] sm:$0xff]  ;;  %v4667_v14 = vld [vmem:[%s6851_s1 + $0x8] sm:$0xff]  ;;  %v4695_v25 = vld [vmem:[%s6851_s1 + $0x18] sm:$0xff]  ;;  %vm301_vm8 = vcmask 588800  }
   0x9   :  { %s4485_s25 = smov 113   ;;  %s4486_s26 = smov 112   ;;  %4450 = vset.pattern.permute.xlu0 %v4488_v5  ;;  %4451 = vset.pattern.permute.xlu1 %v4488_v5  ;;  %v4658_v10 = vand.u32 127, %v60_v7  ;;  %v4672_v15 = vld [vmem:[%s6851_s1 + $0x28] sm:$0xff]  ;;  %v4681_v20 = vld [vmem:[%s6851_s1] sm:$0xff]  ;;  %v4702_v27 = vld [vmem:[%s6851_s1 + $0x38] sm:$0xff] }
   0xa   :  { %81 = vrot.lane.b32.xlu1 %v4590_v3, %s4481_s22  ;;  %79 = vrot.lane.b32.xlu0 %v4576_v1, %s4481_s22  ;;  %s4489_s27 = smov 111   ;;  %v4688_v23 = vld [vmem:[%s6851_s1 + $0x20] sm:$0xff]  ;;  %v4707_v28 = vld [vmem:[%s6851_s1 + $0x10] sm:$0xff]  ;;  %vm5328_vm9 = vcmp.lt.s32.totalorder %v60_v7, 256  ;;  %vm2057_vm10 = vcmask 261120  }
   0xb   :  { %vm62_vm0 = vcmp.lt.s32.totalorder %v4658_v10, 17  ;;  %vm87_vm1 = vcmp.lt.s32.totalorder %v4658_v10, 16  ;;  %v4712_v29 = vld [vmem:[%s6851_s1 + $0x30] sm:$0xff]  ;;  %vm112_vm2 = vcmp.lt.s32.totalorder %v4658_v10, 15  ;;  %vm137_vm3 = vcmp.lt.s32.totalorder %v4658_v10, 1  ;;  %v4731_v49 = vld [vmem:[%s6851_s1 + $0x48] sm:$0xff] }
   0xc   :  { %v4738_v51 = vld [vmem:[%s6851_s1 + $0x68] sm:$0xff]  ;;  %v4743_v54 = vld [vmem:[%s6851_s1 + $0x40] sm:$0xff]  ;;  %v4753_v58 = vld [vmem:[%s6851_s1 + $0x50] sm:$0xff]  ;;  %vm166_vm4 = vcmp.lt.s32.totalorder %v4658_v10, 127  ;;  %vm216_vm5 = vcmp.lt.s32.totalorder %v4658_v10, 112  ;;  %vm191_vm6 = vcmp.lt.s32.totalorder %v4658_v10, 113 }
   0xd   :  { %v4758_v59 = vld [vmem:[%s6851_s1 + $0x58] sm:$0xff]  ;;  %v4768_v63 = vld [vmem:[%s6851_s1 + $0x60] sm:$0xff]  ;;  %v4773_v5 = vld [vmem:[%s6851_s1 + $0x70] sm:$0xff]  ;;  %vm241_vm7 = vcmp.lt.s32.totalorder %v4658_v10, 111 }
   0xe   :  { %85 = vrot.lane.b32.xlu1 %v4585_v2, %s4481_s22  ;;  %83 = vrot.lane.b32.xlu0 %v4571_v0, %s4481_s22 }
  0x12   :  { %106 = vrot.lane.b32.xlu1 %v4590_v3, %s4482_s0  ;;  %104 = vrot.lane.b32.xlu0 %v4576_v1, %s4482_s0 }
  0x16   :  { %110 = vrot.lane.b32.xlu1 %v4585_v2, %s4482_s0  ;;  %108 = vrot.lane.b32.xlu0 %v4571_v0, %s4482_s0 }
  0x1a   :  { %131 = vrot.lane.b32.xlu1 %v4590_v3, %s4483_s23  ;;  %129 = vrot.lane.b32.xlu0 %v4576_v1, %s4483_s23 }
  0x1e   :  { %135 = vrot.lane.b32.xlu1 %v4585_v2, %s4483_s23  ;;  %133 = vrot.lane.b32.xlu0 %v4571_v0, %s4483_s23 }
  0x22   :  { %160 = vrot.lane.b32.xlu1 %v4590_v3, %s4484_s24  ;;  %158 = vrot.lane.b32.xlu0 %v4576_v1, %s4484_s24 }
  0x26   :  { %164 = vrot.lane.b32.xlu1 %v4585_v2, %s4484_s24  ;;  %162 = vrot.lane.b32.xlu0 %v4571_v0, %s4484_s24 }
  0x2a   :  { %185 = vrot.lane.b32.xlu1 %v4590_v3, %s4485_s25  ;;  %183 = vrot.lane.b32.xlu0 %v4576_v1, %s4485_s25 }
  0x2e   :  { %189 = vrot.lane.b32.xlu1 %v4585_v2, %s4485_s25  ;;  %187 = vrot.lane.b32.xlu0 %v4571_v0, %s4485_s25 }
  0x32   :  { %210 = vrot.lane.b32.xlu1 %v4590_v3, %s4486_s26  ;;  %208 = vrot.lane.b32.xlu0 %v4576_v1, %s4486_s26 }
  0x36   :  { %214 = vrot.lane.b32.xlu1 %v4585_v2, %s4486_s26  ;;  %212 = vrot.lane.b32.xlu0 %v4571_v0, %s4486_s26 }
  0x3a   :  { %235 = vrot.lane.b32.xlu1 %v4590_v3, %s4489_s27  ;;  %233 = vrot.lane.b32.xlu0 %v4576_v1, %s4489_s27 }
  0x3e   :  { %239 = vrot.lane.b32.xlu1 %v4585_v2, %s4489_s27  ;;  %237 = vrot.lane.b32.xlu0 %v4571_v0, %s4489_s27 }
  0x42   :  { %298 = vperm.xlu0 %4450, %v295_v6   ;;  %v4778_v6 = vld [vmem:[%s6851_s1 + $0x78] sm:$0xff] }
  0x74   :  { %v57_v8 = vpop.permute.xlu1 %56  ;;  %v53_v9 = vpop.permute.xlu0 %52 }
  0x78   :  { %v59_v11 = vpop.permute.xlu1 %58  ;;  %v55_v12 = vpop.permute.xlu0 %54 }
  0x79   :  { %v65_v13 = vsel %vm62_vm0, %v53_v9, %v55_v12  ;;  %v66_v18 = vsel %vm62_vm0, %v59_v11, %v53_v9  ;;  %v63_v24 = vsel %vm62_vm0, %v57_v8, %v59_v11  ;;  %v64_v26 = vsel %vm62_vm0, %v55_v12, %v57_v8 }
  0x7a   :  { %v72_v21 = vmul.f32 %v4667_v14, %v65_v13  ;;  %v71_v33 = vmul.f32 %v4681_v20, %v66_v18  ;;  %v74_v36 = vmul.f32 %v4695_v25, %v63_v24  ;;  %v73_v40 = vmul.f32 %v4707_v28, %v64_v26 }
  0x7c   :  { %v82_v16 = vpop.permute.xlu1 %81  ;;  %v80_v17 = vpop.permute.xlu0 %79 }
  0x7d   :  { %v90_v19 = vsel %vm87_vm1, %v80_v17, %v82_v16 }
  0x7e   :  { %v97_v22 = vmul.f32 %v4672_v15, %v90_v19 }
  0x80   :  { %v86_v30 = vpop.permute.xlu1 %85  ;;  %v84_v31 = vpop.permute.xlu0 %83  ;;  %v3989_v32 = vpack.c.bf16 %v97_v22, %v72_v21 }
  0x81   :  { %v91_v34 = vsel %vm87_vm1, %v86_v30, %v80_v17  ;;  %v89_v35 = vsel %vm87_vm1, %v82_v16, %v84_v31  ;;  %v88_v37 = vsel %vm87_vm1, %v84_v31, %v86_v30 }
  0x82   :  { %3990 = vmatprep.subr.bf16.mxu0 %v3989_v32  ;;  %v96_v38 = vmul.f32 %v4688_v23, %v91_v34  ;;  %v99_v39 = vmul.f32 %v4702_v27, %v88_v37  ;;  %v98_v41 = vmul.f32 %v4712_v29, %v89_v35  ;;  %v4796_v34 = vld [vmem:[%s6851_s1 + $0xa0] sm:$0xff]  ;;  %v4808_v37 = vld [vmem:[%s6851_s1 + $0xa8] sm:$0xff] }
  0x84   :  { %v107_v42 = vpop.permute.xlu1 %106  ;;  %v105_v43 = vpop.permute.xlu0 %104  ;;  %v3991_v44 = vpack.c.bf16 %v96_v38, %v71_v33  ;;  %v4005_v45 = vpack.c.bf16 %v99_v39, %v74_v36  ;;  %v4007_v46 = vpack.c.bf16 %v98_v41, %v73_v40  ;;  %v4803_v36 = vld [vmem:[%s6851_s1 + $0xb8] sm:$0xff]  ;;  %v4813_v38 = vld [vmem:[%s6851_s1 + $0xb0] sm:$0xff] }
  0x85   :  { %v115_v50 = vsel %vm112_vm2, %v105_v43, %v107_v42 }
  0x86   :  { %3992 = vmatpush1.bf16.msra.mxu0 %v3991_v44  ;;  %4006 = vmatprep.subr.bf16.mxu1 %v4005_v45  ;;  %v122_v57 = vmul.f32 %v4731_v49, %v115_v50 }
  0x87   :  { %4008 = vmatpush1.bf16.msra.mxu1 %v4007_v46 }
  0x88   :  { %v111_v47 = vpop.permute.xlu1 %110  ;;  %v109_v48 = vpop.permute.xlu0 %108 }
  0x89   :  { %v116_v55 = vsel %vm112_vm2, %v111_v47, %v105_v43  ;;  %v114_v60 = vsel %vm112_vm2, %v107_v42, %v109_v48  ;;  %v113_v62 = vsel %vm112_vm2, %v109_v48, %v111_v47 }
  0x8a   :  { %v121_v8 = vmul.f32 %v4743_v54, %v116_v55  ;;  %v123_v13 = vmul.f32 %v4753_v58, %v114_v60  ;;  %v124_v19 = vmul.f32 %v4758_v59, %v113_v62 }
  0x8c   :  { %v132_v52 = vpop.permute.xlu1 %131  ;;  %v130_v53 = vpop.permute.xlu0 %129 }
  0x8d   :  { %v140_v56 = vsel %vm137_vm3, %v130_v53, %v132_v52 }
  0x8e   :  { %v147_v61 = vmul.f32 %v4738_v51, %v140_v56 }
  0x90   :  { %v136_v9 = vpop.permute.xlu1 %135  ;;  %v134_v11 = vpop.permute.xlu0 %133  ;;  %v3993_v12 = vpack.c.bf16 %v147_v61, %v122_v57 }
  0x91   :  { %v141_v16 = vsel %vm137_vm3, %v136_v9, %v130_v53  ;;  %v138_v17 = vsel %vm137_vm3, %v134_v11, %v136_v9  ;;  %v139_v18 = vsel %vm137_vm3, %v132_v52, %v134_v11  ;;  %v4853_v9 = vld [vmem:[%s6851_s1 + $0xe0] sm:$0xff] }
  0x92   :  { %v146_v21 = vmul.f32 %v4768_v63, %v141_v16  ;;  %v148_v22 = vmul.f32 %v4773_v5, %v139_v18  ;;  %v149_v24 = vmul.f32 %v4778_v6, %v138_v17  ;;  %3994 = vmatprep.subr.bf16.mxu0 %v3993_v12  ;;  %v4867_v16 = vld [vmem:[%s6851_s1 + $0xe8] sm:$0xff]  ;;  %v4872_v17 = vld [vmem:[%s6851_s1 + $0xf0] sm:$0xff]  ;;  %v4877_v18 = vld [vmem:[%s6851_s1 + $0xc0] sm:$0xff] }
  0x94   :  { %v161_v26 = vpop.permute.xlu1 %160  ;;  %v159_v30 = vpop.permute.xlu0 %158  ;;  %v3995_v31 = vpack.c.bf16 %v146_v21, %v121_v8  ;;  %v4009_v32 = vpack.c.bf16 %v149_v24, %v124_v19  ;;  %v4011_v33 = vpack.c.bf16 %v148_v22, %v123_v13  ;;  %v4848_v8 = vld [vmem:[%s6851_s1 + $0xd0] sm:$0xff]  ;;  %v4862_v13 = vld [vmem:[%s6851_s1 + $0xf8] sm:$0xff] }
  0x95   :  { %v169_v35 = vsel %vm166_vm4, %v159_v30, %v161_v26 }
  0x96   :  { %3996 = vmatpush1.bf16.msra.mxu0 %v3995_v31  ;;  %4010 = vmatprep.subr.bf16.mxu1 %v4009_v32  ;;  %v175_v41 = vmul.f32 %v4796_v34, %v169_v35 }
  0x97   :  { %4012 = vmatpush1.bf16.msra.mxu1 %v4011_v33 }
  0x98   :  { %v165_v39 = vpop.permute.xlu1 %164  ;;  %v163_v40 = vpop.permute.xlu0 %162  ;;  %v3999_v56 = vpack.c.bf16 %v175_v41, %v4576_v1  ;;  %v4841_v1 = vld [vmem:[%s6851_s1 + $0xc8] sm:$0xff] }
  0x99   :  { %v170_v42 = vsel %vm166_vm4, %v165_v39, %v159_v30  ;;  %v167_v43 = vsel %vm166_vm4, %v163_v40, %v165_v39  ;;  %v168_v44 = vsel %vm166_vm4, %v161_v26, %v163_v40 }
  0x9a   :  { %v178_v45 = vmul.f32 %v4803_v36, %v170_v42  ;;  %v176_v46 = vmul.f32 %v4808_v37, %v168_v44  ;;  %v177_v47 = vmul.f32 %v4813_v38, %v167_v43 }
  0x9c   :  { %v186_v48 = vpop.permute.xlu1 %185  ;;  %v184_v50 = vpop.permute.xlu0 %183  ;;  %v3997_v52 = vpack.c.bf16 %v176_v46, %v4590_v3  ;;  %v4013_v53 = vpack.c.bf16 %v178_v45, %v4585_v2  ;;  %v4015_v55 = vpack.c.bf16 %v177_v47, %v4571_v0  ;;  %v4834_v2 = vld [vmem:[%s6851_s1 + $0xd8] sm:$0xff] }
  0x9d   :  { %v194_v19 = vsel %vm191_vm6, %v184_v50, %v186_v48 }
  0x9e   :  { %3998 = vmatprep.subr.bf16.mxu0 %v3997_v52  ;;  %4014 = vmatprep.subr.bf16.mxu1 %v4013_v53  ;;  %v200_v42 = vmul.f32 %v4877_v18, %v194_v19  ;;  %v4904_v52 = vld [vmem:[%s6851_s1 + $0x118] sm:$0xff]  ;;  %v4909_v53 = vld [vmem:[%s6851_s1 + $0x110] sm:$0xff] }
  0x9f   :  { %4000 = vmatpush1.bf16.msra.mxu0 %v3999_v56  ;;  %4016 = vmatpush1.bf16.msra.mxu1 %v4015_v55 }
  0xa0   :  { %v190_v57 = vpop.permute.xlu1 %189  ;;  %v188_v60 = vpop.permute.xlu0 %187 }
  0xa1   :  { %v195_v0 = vsel %vm191_vm6, %v190_v57, %v184_v50  ;;  %v193_v3 = vsel %vm191_vm6, %v186_v48, %v188_v60  ;;  %v192_v12 = vsel %vm191_vm6, %v188_v60, %v190_v57  ;;  %v4899_v50 = vld [vmem:[%s6851_s1 + $0x108] sm:$0xff]  ;;  %v4916_v60 = vld [vmem:[%s6851_s1 + $0x100] sm:$0xff] }
  0xa2   :  { %v203_v21 = vmul.f32 %v4834_v2, %v195_v0  ;;  %v201_v22 = vmul.f32 %v4841_v1, %v193_v3  ;;  %v202_v35 = vmul.f32 %v4848_v8, %v192_v12 }
  0xa4   :  { %v211_v61 = vpop.permute.xlu1 %210  ;;  %v209_v62 = vpop.permute.xlu0 %208 }
  0xa5   :  { %v219_v11 = vsel %vm216_vm5, %v209_v62, %v211_v61 }
  0xa6   :  { %v225_v30 = vmul.f32 %v4853_v9, %v219_v11 }
  0xa8   :  { %v215_v24 = vpop.permute.xlu1 %214  ;;  %v213_v26 = vpop.permute.xlu0 %212  ;;  %v4003_v48 = vpack.c.bf16 %v225_v30, %v200_v42 }
  0xa9   :  { %v220_v31 = vsel %vm216_vm5, %v215_v24, %v209_v62  ;;  %v217_v32 = vsel %vm216_vm5, %v213_v26, %v215_v24  ;;  %v218_v33 = vsel %vm216_vm5, %v211_v61, %v213_v26 }
  0xaa   :  { %v228_v39 = vmul.f32 %v4862_v13, %v220_v31  ;;  %v226_v40 = vmul.f32 %v4867_v16, %v218_v33  ;;  %v227_v41 = vmul.f32 %v4872_v17, %v217_v32 }
  0xac   :  { %v236_v43 = vpop.permute.xlu1 %235  ;;  %v234_v44 = vpop.permute.xlu0 %233  ;;  %v4001_v45 = vpack.c.bf16 %v226_v40, %v201_v22  ;;  %v4017_v46 = vpack.c.bf16 %v228_v39, %v203_v21  ;;  %v4019_v47 = vpack.c.bf16 %v227_v41, %v202_v35  ;;  %v258_v21 = vld [vmem:[%s6852_s2] sm:$0xff] }
  0xad   :  { %v244_v55 = vsel %vm241_vm7, %v234_v44, %v236_v43 }
  0xae   :  { %4002 = vmatprep.subr.bf16.mxu0 %v4001_v45  ;;  %4018 = vmatprep.subr.bf16.mxu1 %v4017_v46  ;;  %v250_v19 = vmul.f32 %v4916_v60, %v244_v55 }
  0xaf   :  { %4004 = vmatpush1.bf16.msra.mxu0 %v4003_v48  ;;  %4020 = vmatpush1.bf16.msra.mxu1 %v4019_v47 }
  0xb0   :  { %v240_v56 = vpop.permute.xlu1 %239  ;;  %v238_v57 = vpop.permute.xlu0 %237 }
  0xb1   :  { %v245_v61 = vsel %vm241_vm7, %v240_v56, %v234_v44  ;;  %v242_v62 = vsel %vm241_vm7, %v238_v57, %v240_v56  ;;  %v243_v0 = vsel %vm241_vm7, %v236_v43, %v238_v57  ;;  %v684_v44 = vld [vmem:[%s6855_s5] sm:$0xff] }
  0xb2   :  { %v251_v3 = vmul.f32 %v4899_v50, %v243_v0  ;;  %v253_v11 = vmul.f32 %v4904_v52, %v245_v61  ;;  %v252_v12 = vmul.f32 %v4909_v53, %v242_v62 }
  0xb4   :  { %321 = vmatprep.subr.mxu0 %v251_v3  ;;  %392 = vmatprep.subr.mxu1 %v253_v11 }
  0xb5   :  { %322 = vmatpush1.msra.mxu0 %v250_v19  ;;  %393 = vmatpush1.msra.mxu1 %v252_v12 }
  0xb6   :  { %3692 = vmatmul.mubr.msk.f32.vlgmr.msra.gmra.mrb[0].mxu0 %vm301_vm8, %v258_v21  ;;  %3693 = vmatmul.mubr.msk.f32.vlgmr.msra.gmra.mrb[0].mxu1 %vm301_vm8, %v258_v21 }
  0xb7   :  { %757 = vmatprep.mubr.f32.mxu0 %v4487_v4  ;;  %828 = vmatprep.mubr.f32.mxu1 %v4487_v4 }
  0xc1   :  { %v299_v22 = vpop.permute.xlu0 %298 }
 0x189   :  { %v371_v24 = vpop.f32.mrb[0].mxu0  ;;  %v442_v26 = vpop.f32.mrb[0].mxu1 }
 0x18a   :  { %v372_v30 = vadd.f32 %v371_v24, %v299_v22  ;;  %v443_v31 = vadd.f32 %v442_v26, %v299_v22  ;;  %v373_v32 = vpop.f32.mrb[1].mxu0  ;;  %v444_v33 = vpop.f32.mrb[1].mxu1 }
 0x18b   :  { %v374_v40 = vadd.f32 %v373_v32, %v299_v22  ;;  %v445_v42 = vadd.f32 %v444_v33, %v299_v22 }
 0x18c   :  { %v4935_v35 = vmax.f32 %v372_v30, 0.0  ;;  %v4937_v39 = vmax.f32 %v443_v31, 0.0 }
 0x18d   :  { %v4943_v41 = vmax.f32 %v374_v40, 0.0  ;;  %v4949_v43 = vmax.f32 %v445_v42, 0.0 }
 0x18e   :  { %455 = vrot.lane.b32.xlu0 %v4937_v39, %s4480_s17  ;;  %451 = vrot.lane.b32.xlu1 %v4935_v35, %s4480_s17 }
 0x192   :  { %475 = vrot.lane.b32.xlu0 %v4935_v35, %s4481_s22  ;;  %453 = vrot.lane.b32.xlu1 %v4943_v41, %s4480_s17 }
 0x196   :  { %479 = vrot.lane.b32.xlu0 %v4937_v39, %s4481_s22  ;;  %457 = vrot.lane.b32.xlu1 %v4949_v43, %s4480_s17 }
 0x19a   :  { %499 = vrot.lane.b32.xlu0 %v4935_v35, %s4482_s0  ;;  %477 = vrot.lane.b32.xlu1 %v4943_v41, %s4481_s22 }
 0x19e   :  { %503 = vrot.lane.b32.xlu0 %v4937_v39, %s4482_s0  ;;  %481 = vrot.lane.b32.xlu1 %v4949_v43, %s4481_s22 }
 0x1a2   :  { %523 = vrot.lane.b32.xlu0 %v4935_v35, %s4483_s23  ;;  %501 = vrot.lane.b32.xlu1 %v4943_v41, %s4482_s0 }
 0x1a6   :  { %527 = vrot.lane.b32.xlu0 %v4937_v39, %s4483_s23  ;;  %505 = vrot.lane.b32.xlu1 %v4949_v43, %s4482_s0 }
 0x1aa   :  { %551 = vrot.lane.b32.xlu0 %v4935_v35, %s4484_s24  ;;  %525 = vrot.lane.b32.xlu1 %v4943_v41, %s4483_s23 }
 0x1ae   :  { %555 = vrot.lane.b32.xlu0 %v4937_v39, %s4484_s24  ;;  %529 = vrot.lane.b32.xlu1 %v4949_v43, %s4483_s23 }
 0x1b2   :  { %575 = vrot.lane.b32.xlu0 %v4935_v35, %s4485_s25  ;;  %553 = vrot.lane.b32.xlu1 %v4943_v41, %s4484_s24 }
 0x1b6   :  { %579 = vrot.lane.b32.xlu0 %v4937_v39, %s4485_s25  ;;  %557 = vrot.lane.b32.xlu1 %v4949_v43, %s4484_s24 }
 0x1ba   :  { %599 = vrot.lane.b32.xlu0 %v4935_v35, %s4486_s26  ;;  %577 = vrot.lane.b32.xlu1 %v4943_v41, %s4485_s25 }
 0x1be   :  { %603 = vrot.lane.b32.xlu0 %v4937_v39, %s4486_s26  ;;  %581 = vrot.lane.b32.xlu1 %v4949_v43, %s4485_s25 }
 0x1c2   :  { %623 = vrot.lane.b32.xlu0 %v4935_v35, %s4489_s27  ;;  %601 = vrot.lane.b32.xlu1 %v4943_v41, %s4486_s26 }
 0x1c6   :  { %627 = vrot.lane.b32.xlu0 %v4937_v39, %s4489_s27  ;;  %605 = vrot.lane.b32.xlu1 %v4949_v43, %s4486_s26 }
 0x1ca   :  { %687 = vperm.xlu0 %4450, %v684_v44   ;;  %625 = vrot.lane.b32.xlu1 %v4943_v41, %s4489_s27 }
 0x1ce   :  { %629 = vrot.lane.b32.xlu1 %v4949_v43, %s4489_s27 }
 0x200   :  { %v456_v45 = vpop.permute.xlu0 %455  ;;  %v452_v46 = vpop.permute.xlu1 %451 }
 0x204   :  { %v476_v47 = vpop.permute.xlu0 %475  ;;  %v454_v48 = vpop.permute.xlu1 %453 }
 0x205   :  { %v461_v57 = vsel %vm62_vm0, %v452_v46, %v454_v48  ;;  %v460_v22 = vsel %vm62_vm0, %v454_v48, %v456_v45 }
 0x206   :  { %v468_v3 = vmul.f32 %v461_v57, %v4667_v14  ;;  %v469_v44 = vmul.f32 %v460_v22, %v4707_v28 }
 0x208   :  { %v480_v55 = vpop.permute.xlu0 %479  ;;  %v458_v56 = vpop.permute.xlu1 %457 }
 0x209   :  { %v459_v19 = vsel %vm62_vm0, %v456_v45, %v458_v56  ;;  %v462_v21 = vsel %vm62_vm0, %v458_v56, %v452_v46 }
 0x20a   :  { %v467_v32 = vmul.f32 %v462_v21, %v4681_v20  ;;  %v470_v33 = vmul.f32 %v459_v19, %v4695_v25 }
 0x20c   :  { %v500_v61 = vpop.permute.xlu0 %499  ;;  %v478_v62 = vpop.permute.xlu1 %477 }
 0x20d   :  { %v485_v0 = vsel %vm87_vm1, %v476_v47, %v478_v62  ;;  %v484_v11 = vsel %vm87_vm1, %v478_v62, %v480_v55 }
 0x20e   :  { %v492_v12 = vmul.f32 %v485_v0, %v4672_v15  ;;  %v493_v31 = vmul.f32 %v484_v11, %v4712_v29 }
 0x210   :  { %v504_v24 = vpop.permute.xlu0 %503  ;;  %v482_v26 = vpop.permute.xlu1 %481  ;;  %v4021_v30 = vpack.c.bf16 %v492_v12, %v468_v3  ;;  %v4039_v56 = vpack.c.bf16 %v493_v31, %v469_v44 }
 0x211   :  { %v483_v14 = vsel %vm87_vm1, %v480_v55, %v482_v26  ;;  %v486_v15 = vsel %vm87_vm1, %v482_v26, %v476_v47 }
 0x212   :  { %v491_v40 = vmul.f32 %v486_v15, %v4688_v23  ;;  %v494_v42 = vmul.f32 %v483_v14, %v4702_v27  ;;  %4022 = vmatprep.subr.bf16.mxu0 %v4021_v30 }
 0x214   :  { %v4023_v45 = vpack.c.bf16 %v491_v40, %v467_v32  ;;  %v524_v46 = vpop.permute.xlu0 %523  ;;  %v502_v29 = vpop.permute.xlu1 %501  ;;  %v4037_v48 = vpack.c.bf16 %v494_v42, %v470_v33 }
 0x215   :  { %v509_v20 = vsel %vm112_vm2, %v500_v61, %v502_v29  ;;  %v508_v11 = vsel %vm112_vm2, %v502_v29, %v504_v24 }
 0x216   :  { %4024 = vmatpush1.bf16.msra.mxu0 %v4023_v45  ;;  %4038 = vmatprep.subr.bf16.mxu1 %v4037_v48  ;;  %v516_v28 = vmul.f32 %v509_v20, %v4731_v49 }
 0x217   :  { %4040 = vmatpush1.bf16.msra.mxu1 %v4039_v56 }
 0x218   :  { %v528_v47 = vpop.permute.xlu0 %527  ;;  %v506_v55 = vpop.permute.xlu1 %505 }
 0x219   :  { %v507_v0 = vsel %vm112_vm2, %v504_v24, %v506_v55  ;;  %v510_v3 = vsel %vm112_vm2, %v506_v55, %v500_v61  ;;  %v517_v24 = vmul.f32 %v508_v11, %v4753_v58 }
 0x21a   :  { %v515_v26 = vmul.f32 %v510_v3, %v4743_v54  ;;  %v518_v30 = vmul.f32 %v507_v0, %v4758_v59 }
 0x21c   :  { %v552_v25 = vpop.permute.xlu0 %551  ;;  %v526_v23 = vpop.permute.xlu1 %525 }
 0x21d   :  { %v533_v27 = vsel %vm137_vm3, %v524_v46, %v526_v23  ;;  %v532_v57 = vsel %vm137_vm3, %v526_v23, %v528_v47 }
 0x21e   :  { %v540_v62 = vmul.f32 %v533_v27, %v4738_v51  ;;  %v541_v22 = vmul.f32 %v532_v57, %v4773_v5 }
 0x220   :  { %v556_v12 = vpop.permute.xlu0 %555  ;;  %v530_v19 = vpop.permute.xlu1 %529  ;;  %v4025_v21 = vpack.c.bf16 %v540_v62, %v516_v28  ;;  %v4043_v33 = vpack.c.bf16 %v541_v22, %v517_v24  ;;  %v1015_v22 = vld [vmem:[%s6856_s6 + $0x88] sm:$0xff] }
 0x221   :  { %v531_v49 = vsel %vm137_vm3, %v528_v47, %v530_v19  ;;  %v534_v51 = vsel %vm137_vm3, %v530_v19, %v524_v46 }
 0x222   :  { %v539_v61 = vmul.f32 %v534_v51, %v4768_v63  ;;  %v542_v31 = vmul.f32 %v531_v49, %v4778_v6  ;;  %4026 = vmatprep.subr.bf16.mxu0 %v4025_v21  ;;  %v1014_v21 = vld [vmem:[%s6856_s6 + $0x80] sm:$0xff] }
 0x223   :  { %v4053_v24 = vpack.c.bf16 %v1015_v22, %v1014_v21  ;;  %v1022_v22 = vld [vmem:[%s6856_s6 + $0xc0] sm:$0xff] }
 0x224   :  { %v4027_v14 = vpack.c.bf16 %v539_v61, %v515_v26  ;;  %v576_v15 = vpop.permute.xlu0 %575  ;;  %v554_v5 = vpop.permute.xlu1 %553  ;;  %v4041_v32 = vpack.c.bf16 %v542_v31, %v518_v30 }
 0x225   :  { %v560_v40 = vsel %vm166_vm4, %v554_v5, %v556_v12  ;;  %v561_v54 = vsel %vm166_vm4, %v552_v25, %v554_v5 }
 0x226   :  { %v567_v59 = vmul.f32 %v561_v54, %v4796_v34  ;;  %v568_v63 = vmul.f32 %v560_v40, %v4808_v37  ;;  %4028 = vmatpush1.bf16.msra.mxu0 %v4027_v14  ;;  %4042 = vmatprep.subr.bf16.mxu1 %v4041_v32  ;;  %v647_v14 = vld [vmem:[%s6854_s4] sm:$0xff]  ;;  %v1047_v54 = vld [vmem:[%s6856_s6 + $0x188] sm:$0xff] }
 0x227   :  { %4044 = vmatpush1.bf16.msra.mxu1 %v4043_v33  ;;  %v1046_v40 = vld [vmem:[%s6856_s6 + $0x180] sm:$0xff] }
 0x228   :  { %v4031_v58 = vpack.c.bf16 %v567_v59, %v4935_v35  ;;  %v580_v6 = vpop.permute.xlu0 %579  ;;  %v558_v42 = vpop.permute.xlu1 %557  ;;  %v4029_v44 = vpack.c.bf16 %v568_v63, %v4943_v41  ;;  %v4085_v59 = vpack.c.bf16 %v1047_v54, %v1046_v40  ;;  %v1057_v40 = vld [vmem:[%s6856_s6 + $0x1d8] sm:$0xff] }
 0x229   :  { %v559_v45 = vsel %vm166_vm4, %v556_v12, %v558_v42  ;;  %v562_v46 = vsel %vm166_vm4, %v558_v42, %v552_v25 }
 0x22a   :  { %v569_v29 = vmul.f32 %v559_v45, %v4813_v38  ;;  %v570_v34 = vmul.f32 %v562_v46, %v4803_v36  ;;  %4030 = vmatprep.subr.bf16.mxu0 %v4029_v44  ;;  %v1000_v44 = vld [vmem:[%s6856_s6 + $0x10] sm:$0xff]  ;;  %v1001_v45 = vld [vmem:[%s6856_s6 + $0x18] sm:$0xff] }
 0x22b   :  { %4032 = vmatpush1.bf16.msra.mxu0 %v4031_v58  ;;  %v1016_v58 = vld [vmem:[%s6856_s6 + $0x90] sm:$0xff]  ;;  %v4059_v46 = vpack.c.bf16 %v1001_v45, %v1000_v44  ;;  %v1011_v44 = vld [vmem:[%s6856_s6 + $0x68] sm:$0xff]  ;;  %v1058_v45 = vld [vmem:[%s6856_s6 + $0x1e0] sm:$0xff] }
 0x22c   :  { %v4047_v37 = vpack.c.bf16 %v569_v29, %v4937_v39  ;;  %v600_v48 = vpop.permute.xlu0 %599  ;;  %v578_v35 = vpop.permute.xlu1 %577  ;;  %v4045_v56 = vpack.c.bf16 %v570_v34, %v4949_v43  ;;  %v1048_v29 = vld [vmem:[%s6856_s6 + $0x190] sm:$0xff]  ;;  %v1049_v34 = vld [vmem:[%s6856_s6 + $0x198] sm:$0xff] }
 0x22d   :  { %v584_v55 = vsel %vm191_vm6, %v578_v35, %v580_v6  ;;  %v585_v38 = vsel %vm191_vm6, %v576_v15, %v578_v35  ;;  %v1033_v35 = vld [vmem:[%s6856_s6 + $0x118] sm:$0xff] }
 0x22e   :  { %4046 = vmatprep.subr.bf16.mxu1 %v4045_v56  ;;  %v591_v25 = vmul.f32 %v585_v38, %v4877_v18  ;;  %v592_v43 = vmul.f32 %v584_v55, %v4841_v1  ;;  %v1002_v38 = vld [vmem:[%s6856_s6 + $0x20] sm:$0xff] }
 0x22f   :  { %4048 = vmatpush1.bf16.msra.mxu1 %v4047_v37  ;;  %v4089_v37 = vpack.c.bf16 %v1049_v34, %v1048_v29  ;;  %v1059_v29 = vld [vmem:[%s6856_s6 + $0x1e8] sm:$0xff]  ;;  %v1042_v34 = vld [vmem:[%s6856_s6 + $0x160] sm:$0xff] }
 0x230   :  { %v604_v41 = vpop.permute.xlu0 %603  ;;  %v582_v47 = vpop.permute.xlu1 %581 }
 0x231   :  { %v583_v57 = vsel %vm191_vm6, %v580_v6, %v582_v47  ;;  %v586_v62 = vsel %vm191_vm6, %v582_v47, %v576_v15  ;;  %v1017_v6 = vld [vmem:[%s6856_s6 + $0x98] sm:$0xff]  ;;  %v1019_v47 = vld [vmem:[%s6856_s6 + $0xa8] sm:$0xff] }
 0x232   :  { %v593_v18 = vmul.f32 %v583_v57, %v4848_v8  ;;  %v4057_v42 = vpack.c.bf16 %v1017_v6, %v1016_v58  ;;  %v1020_v57 = vld [vmem:[%s6856_s6 + $0xb0] sm:$0xff]  ;;  %v1027_v58 = vld [vmem:[%s6856_s6 + $0xe8] sm:$0xff] }
 0x234   :  { %v602_v20 = vpop.permute.xlu1 %601  ;;  %v624_v23 = vpop.permute.xlu0 %623 }
 0x235   :  { %v608_v36 = vsel %vm216_vm5, %v602_v20, %v604_v41  ;;  %v609_v39 = vsel %vm216_vm5, %v600_v48, %v602_v20  ;;  %v1003_v20 = vld [vmem:[%s6856_s6 + $0x28] sm:$0xff] }
 0x236   :  { %v615_v27 = vmul.f32 %v609_v39, %v4853_v9  ;;  %v616_v28 = vmul.f32 %v608_v36, %v4867_v16  ;;  %v594_v9 = vmul.f32 %v586_v62, %v4834_v2  ;;  %v998_v2 = vld [vmem:[%s6856_s6] sm:$0xff]  ;;  %v4063_v36 = vpack.c.bf16 %v1003_v20, %v1002_v38  ;;  %v1021_v62 = vld [vmem:[%s6856_s6 + $0xb8] sm:$0xff]  ;;  %v1060_v20 = vld [vmem:[%s6856_s6 + $0x1f0] sm:$0xff] }
 0x237   :  { %v1050_v39 = vld [vmem:[%s6856_s6 + $0x1a0] sm:$0xff]  ;;  %v1013_v38 = vld [vmem:[%s6856_s6 + $0x78] sm:$0xff] }
 0x238   :  { %v4035_v0 = vpack.c.bf16 %v615_v27, %v591_v25  ;;  %v606_v3 = vpop.permute.xlu1 %605  ;;  %v4033_v11 = vpack.c.bf16 %v616_v28, %v592_v43  ;;  %v628_v49 = vpop.permute.xlu0 %627  ;;  %v1051_v25 = vld [vmem:[%s6856_s6 + $0x1a8] sm:$0xff] }
 0x239   :  { %v607_v12 = vsel %vm216_vm5, %v604_v41, %v606_v3  ;;  %v610_v1 = vsel %vm216_vm5, %v606_v3, %v600_v48  ;;  %v1032_v48 = vld [vmem:[%s6856_s6 + $0x110] sm:$0xff]  ;;  %v1018_v41 = vld [vmem:[%s6856_s6 + $0xa0] sm:$0xff]  ;;  %v4093_v43 = vpack.c.bf16 %v1051_v25, %v1050_v39  ;;  %v1035_v27 = vld [vmem:[%s6856_s6 + $0x128] sm:$0xff] }
 0x23a   :  { %v617_v16 = vmul.f32 %v607_v12, %v4872_v17  ;;  %v618_v19 = vmul.f32 %v610_v1, %v4862_v13  ;;  %4034 = vmatprep.subr.bf16.mxu0 %v4033_v11  ;;  %v999_v13 = vld [vmem:[%s6856_s6 + $0x8] sm:$0xff]  ;;  %v4091_v56 = vpack.c.bf16 %v1033_v35, %v1032_v48  ;;  %v4061_v55 = vpack.c.bf16 %v1019_v47, %v1018_v41  ;;  %v1004_v3 = vld [vmem:[%s6856_s6 + $0x30] sm:$0xff]  ;;  %v1005_v11 = vld [vmem:[%s6856_s6 + $0x38] sm:$0xff] }
 0x23b   :  { %4036 = vmatpush1.bf16.msra.mxu0 %v4035_v0  ;;  %v4055_v15 = vpack.c.bf16 %v999_v13, %v998_v2  ;;  %v4065_v0 = vpack.c.bf16 %v1021_v62, %v1020_v57  ;;  %v4067_v12 = vpack.c.bf16 %v1005_v11, %v1004_v3  ;;  %v1052_v1 = vld [vmem:[%s6856_s6 + $0x1b0] sm:$0xff]  ;;  %v1054_v13 = vld [vmem:[%s6856_s6 + $0x1c0] sm:$0xff]  ;;  %v4109_v48 = vpack.c.bf16 %v1059_v29, %v1058_v45  ;;  %v1029_v41 = vld [vmem:[%s6856_s6 + $0xf8] sm:$0xff] }
 0x23c   :  { %v4051_v51 = vpack.c.bf16 %v617_v16, %v593_v18  ;;  %v626_v26 = vpop.permute.xlu1 %625  ;;  %v4049_v8 = vpack.c.bf16 %v618_v19, %v594_v9  ;;  %v1053_v18 = vld [vmem:[%s6856_s6 + $0x1b8] sm:$0xff]  ;;  %v1036_v16 = vld [vmem:[%s6856_s6 + $0x130] sm:$0xff]  ;;  %v1079_v57 = vld [vmem:[%s6856_s6 + $0x288] sm:$0xff]  ;;  %v4491_v45 = vmov 1983009808  }
 0x23d   :  { %v632_v17 = vsel %vm241_vm7, %v626_v26, %v628_v49  ;;  %v633_v30 = vsel %vm241_vm7, %v624_v23, %v626_v26  ;;  %v4097_v9 = vpack.c.bf16 %v1053_v18, %v1052_v1  ;;  %v1037_v19 = vld [vmem:[%s6856_s6 + $0x138] sm:$0xff]  ;;  %v1006_v26 = vld [vmem:[%s6856_s6 + $0x40] sm:$0xff]  ;;  %v1012_v47 = vld [vmem:[%s6856_s6 + $0x70] sm:$0xff] }
 0x23e   :  { %v639_v61 = vmul.f32 %v633_v30, %v4916_v60  ;;  %v640_v31 = vmul.f32 %v632_v17, %v4899_v50  ;;  %4050 = vmatprep.subr.bf16.mxu1 %v4049_v8  ;;  %v4099_v21 = vpack.c.bf16 %v1037_v19, %v1036_v16  ;;  %v1007_v8 = vld [vmem:[%s6856_s6 + $0x48] sm:$0xff]  ;;  %v4083_v39 = vpack.c.bf16 %v1013_v38, %v1012_v47 }
 0x23f   :  { %4052 = vmatpush1.bf16.msra.mxu1 %v4051_v51  ;;  %v4071_v2 = vpack.c.bf16 %v1007_v8, %v1006_v26  ;;  %v1055_v17 = vld [vmem:[%s6856_s6 + $0x1c8] sm:$0xff]  ;;  %v5320_v19 = vshrl.u32 %v60_v7, 7 }
 0x240   :  { %709 = vmatprep.subr.mxu0 %v640_v31  ;;  %v630_v5 = vpop.permute.xlu1 %629  ;;  %v4101_v30 = vpack.c.bf16 %v1055_v17, %v1054_v13  ;;  %v1039_v31 = vld [vmem:[%s6856_s6 + $0x148] sm:$0xff] }
 0x241   :  { %v631_v32 = vsel %vm241_vm7, %v628_v49, %v630_v5  ;;  %v634_v33 = vsel %vm241_vm7, %v630_v5, %v624_v23  ;;  %710 = vmatpush1.msra.mxu0 %v639_v61  ;;  %v1034_v23 = vld [vmem:[%s6856_s6 + $0x120] sm:$0xff]  ;;  %v1023_v49 = vld [vmem:[%s6856_s6 + $0xc8] sm:$0xff] }
 0x242   :  { %v641_v60 = vmul.f32 %v631_v32, %v4909_v53  ;;  %v642_v50 = vmul.f32 %v634_v33, %v4904_v52  ;;  %3694 = vmatmul.mubr.msk.f32.vlgmr.msra.gmra.mrb[2].mxu0 %vm301_vm8, %v647_v14  ;;  %4054 = vmatprep.subr.bf16.mxu0 %v4053_v24  ;;  %v1030_v52 = vld [vmem:[%s6856_s6 + $0x100] sm:$0xff]  ;;  %v1031_v53 = vld [vmem:[%s6856_s6 + $0x108] sm:$0xff]  ;;  %v4095_v28 = vpack.c.bf16 %v1035_v27, %v1034_v23  ;;  %v1008_v32 = vld [vmem:[%s6856_s6 + $0x50] sm:$0xff] }
 0x243   :  { %4056 = vmatpush3.bf16.msra.mxu0 %v4055_v15  ;;  %v4087_v63 = vpack.c.bf16 %v1031_v53, %v1030_v52  ;;  %v4069_v51 = vpack.c.bf16 %v1023_v49, %v1022_v22  ;;  %v1038_v61 = vld [vmem:[%s6856_s6 + $0x140] sm:$0xff]  ;;  %v1025_v15 = vld [vmem:[%s6856_s6 + $0xd8] sm:$0xff]  ;;  %v1111_v3 = vld [vmem:[%s6856_s6 + $0x388] sm:$0xff] }
 0x244   :  { %780 = vmatprep.subr.mxu1 %v642_v50  ;;  %4058 = vmatprep.subr.bf16.mxu0 %v4057_v42  ;;  %v4103_v24 = vpack.c.bf16 %v1039_v31, %v1038_v61  ;;  %v1009_v33 = vld [vmem:[%s6856_s6 + $0x58] sm:$0xff]  ;;  %v1056_v50 = vld [vmem:[%s6856_s6 + $0x1d0] sm:$0xff]  ;;  %v1010_v42 = vld [vmem:[%s6856_s6 + $0x60] sm:$0xff] }
 0x245   :  { %781 = vmatpush1.msra.mxu1 %v641_v60  ;;  %v4075_v60 = vpack.c.bf16 %v1009_v33, %v1008_v32  ;;  %v4105_v54 = vpack.c.bf16 %v1057_v40, %v1056_v50  ;;  %v1041_v52 = vld [vmem:[%s6856_s6 + $0x158] sm:$0xff] }
 0x246   :  { %3695 = vmatmul.mubr.msk.f32.vlgmr.msra.gmra.mrb[2].mxu1 %vm301_vm8, %v647_v14  ;;  %4086 = vmatprep.subr.bf16.mxu1 %v4085_v59  ;;  %v1024_v14 = vld [vmem:[%s6856_s6 + $0xd0] sm:$0xff]  ;;  %v1045_v23 = vld [vmem:[%s6856_s6 + $0x178] sm:$0xff] }
 0x247   :  { %4088 = vmatpush3.bf16.msra.mxu1 %v4087_v63  ;;  %4060 = vmatpush3.bf16.msra.mxu0 %v4059_v46  ;;  %v4073_v5 = vpack.c.bf16 %v1025_v15, %v1024_v14  ;;  %v1040_v59 = vld [vmem:[%s6856_s6 + $0x150] sm:$0xff]  ;;  %v1026_v63 = vld [vmem:[%s6856_s6 + $0xe0] sm:$0xff]  ;;  %v4079_v46 = vpack.c.bf16 %v1011_v44, %v1010_v42 }
 0x248   :  { %4090 = vmatprep.subr.bf16.mxu1 %v4089_v37  ;;  %4062 = vmatprep.subr.bf16.mxu0 %v4061_v55  ;;  %v4107_v53 = vpack.c.bf16 %v1041_v52, %v1040_v59  ;;  %v4077_v6 = vpack.c.bf16 %v1027_v58, %v1026_v63  ;;  %v1043_v37 = vld [vmem:[%s6856_s6 + $0x168] sm:$0xff] }
 0x249   :  { %v4111_v35 = vpack.c.bf16 %v1043_v37, %v1042_v34  ;;  %v688_v18 = vpop.permute.xlu0 %687 }
 0x24b   :  { %4092 = vmatpush3.bf16.msra.mxu1 %v4091_v56  ;;  %4064 = vmatpush3.bf16.msra.mxu0 %v4063_v36  ;;  %v1028_v56 = vld [vmem:[%s6856_s6 + $0xf0] sm:$0xff]  ;;  %v1061_v36 = vld [vmem:[%s6856_s6 + $0x1f8] sm:$0xff] }
 0x24c   :  { %4094 = vmatprep.subr.bf16.mxu1 %v4093_v43  ;;  %4066 = vmatprep.subr.bf16.mxu0 %v4065_v0  ;;  %v4081_v55 = vpack.c.bf16 %v1029_v41, %v1028_v56  ;;  %v4113_v25 = vpack.c.bf16 %v1061_v36, %v1060_v20  ;;  %v1044_v43 = vld [vmem:[%s6856_s6 + $0x170] sm:$0xff]  ;;  %v1110_v0 = vld [vmem:[%s6856_s6 + $0x380] sm:$0xff] }
 0x24d   :  { %v4115_v27 = vpack.c.bf16 %v1045_v23, %v1044_v43  ;;  %v4149_v11 = vpack.c.bf16 %v1111_v3, %v1110_v0  ;;  %v1080_v3 = vld [vmem:[%s6856_s6 + $0x290] sm:$0xff] }
 0x24f   :  { %4096 = vmatpush3.bf16.msra.mxu1 %v4095_v28  ;;  %4068 = vmatpush3.bf16.msra.mxu0 %v4067_v12  ;;  %v1078_v28 = vld [vmem:[%s6856_s6 + $0x280] sm:$0xff]  ;;  %v4490_v12 = vmov 1966171168  }
 0x250   :  { %4098 = vmatprep.subr.bf16.mxu1 %v4097_v9  ;;  %4070 = vmatprep.subr.bf16.mxu0 %v4069_v51  ;;  %v4117_v62 = vpack.c.bf16 %v1079_v57, %v1078_v28  ;;  %v843_v1 = vunpack.c.l.s4 %v4490_v12  ;;  %v1094_v28 = vld [vmem:[%s6856_s6 + $0x300] sm:$0xff]  ;;  %v1095_v57 = vld [vmem:[%s6856_s6 + $0x308] sm:$0xff] }
 0x252   :  { %v844_v16 = vunpack.c.0.s8 %v843_v1 }
 0x253   :  { %4100 = vmatpush3.bf16.msra.mxu1 %v4099_v21  ;;  %4072 = vmatpush3.bf16.msra.mxu0 %v4071_v2 }
 0x254   :  { %4102 = vmatprep.subr.bf16.mxu1 %v4101_v30  ;;  %4074 = vmatprep.subr.bf16.mxu0 %v4073_v5  ;;  %v5323_v8 = vsub.s32 %v844_v16, %v5320_v19  ;;  %v1112_v16 = vld [vmem:[%s6856_s6 + $0x390] sm:$0xff] }
 0x257   :  { %4104 = vmatpush3.bf16.msra.mxu1 %v4103_v24  ;;  %4076 = vmatpush3.bf16.msra.mxu0 %v4075_v60 }
 0x258   :  { %4106 = vmatprep.subr.bf16.mxu1 %v4105_v54  ;;  %4078 = vmatprep.subr.bf16.mxu0 %v4077_v6 }
 0x25b   :  { %4108 = vmatpush3.bf16.msra.mxu1 %v4107_v53  ;;  %4080 = vmatpush3.bf16.msra.mxu0 %v4079_v46  ;;  %v1267_v46 = vunpack.c.l.s4 %v4491_v45 }
 0x25c   :  { %4110 = vmatprep.subr.bf16.mxu1 %v4109_v48  ;;  %4082 = vmatprep.subr.bf16.mxu0 %v4081_v55 }
 0x25d   :  { %v1268_v20 = vunpack.c.0.s8 %v1267_v46  ;;  %v1068_v46 = vld [vmem:[%s6856_s6 + $0x230] sm:$0xff] }
 0x25f   :  { %4112 = vmatpush3.bf16.msra.mxu1 %v4111_v35  ;;  %4084 = vmatpush3.bf16.msra.mxu0 %v4083_v39  ;;  %v5375_v36 = vsub.s32 %v1268_v20, %v5320_v19  ;;  %v1062_v39 = vld [vmem:[%s6856_s6 + $0x200] sm:$0xff] }
 0x260   :  { %4114 = vmatprep.subr.bf16.mxu1 %v4113_v25  ;;  %4118 = vmatprep.subr.bf16.mxu0 %v4117_v62  ;;  %v1063_v25 = vld [vmem:[%s6856_s6 + $0x208] sm:$0xff] }
 0x261   :  { %v4119_v62 = vpack.c.bf16 %v1063_v25, %v1062_v39  ;;  %v1070_v39 = vld [vmem:[%s6856_s6 + $0x240] sm:$0xff]  ;;  %v1071_v25 = vld [vmem:[%s6856_s6 + $0x248] sm:$0xff] }
 0x263   :  { %4116 = vmatpush3.bf16.msra.mxu1 %v4115_v27 }
 0x264   :  { %4150 = vmatprep.subr.bf16.mxu1 %v4149_v11  ;;  %v1081_v11 = vld [vmem:[%s6856_s6 + $0x298] sm:$0xff] }
 0x315   :  { %v759_v9 = vpop.f32.mrb[2].mxu0 }
 0x316   :  { %v760_v21 = vadd.f32 %v759_v9, %v688_v18  ;;  %v761_v22 = vpop.f32.mrb[3].mxu0 }
 0x317   :  { %v762_v49 = vadd.f32 %v761_v22, %v688_v18  ;;  %v4151_v22 = vpack.c.bf16 %v1095_v57, %v1094_v28  ;;  %v1102_v57 = vld [vmem:[%s6856_s6 + $0x340] sm:$0xff] }
 0x318   :  { %v835_v51 = vmax.f32 %v760_v21, 0.0  ;;  %v1113_v21 = vld [vmem:[%s6856_s6 + $0x398] sm:$0xff] }
 0x319   :  { %v836_v26 = vmax.f32 %v762_v49, 0.0  ;;  %v830_v2 = vpop.f32.mrb[2].mxu1  ;;  %v1064_v49 = vld [vmem:[%s6856_s6 + $0x210] sm:$0xff] }
 0x31a   :  { %v831_v13 = vadd.f32 %v830_v2, %v688_v18  ;;  %v832_v17 = vpop.f32.mrb[3].mxu1 }
 0x31b   :  { %v841_v30 = vcombine.low %v835_v51, %v836_v26  ;;  %v881_v61 = vcombine.high %v835_v51, %v836_v26  ;;  %v833_v31 = vadd.f32 %v832_v17, %v688_v18  ;;  %v1065_v51 = vld [vmem:[%s6856_s6 + $0x218] sm:$0xff] }
 0x31c   :  { %v837_v24 = vmax.f32 %v831_v13, 0.0  ;;  %v4121_v13 = vpack.c.bf16 %v1081_v11, %v1080_v3  ;;  %v1120_v3 = vld [vmem:[%s6856_s6 + $0x3d0] sm:$0xff]  ;;  %v1121_v11 = vld [vmem:[%s6856_s6 + $0x3d8] sm:$0xff] }
 0x31d   :  { %v848_v14 = vrot.slane %v841_v30, %v5323_v8  ;;  %v888_v15 = vrot.slane %v881_v61, %v5323_v8  ;;  %v838_v5 = vmax.f32 %v833_v31, 0.0  ;;  %v1082_v30 = vld [vmem:[%s6856_s6 + $0x2a0] sm:$0xff]  ;;  %v1083_v61 = vld [vmem:[%s6856_s6 + $0x2a8] sm:$0xff]  ;;  %v4153_v31 = vpack.c.bf16 %v1113_v21, %v1112_v16 }
 0x31e   :  { %v1090_v21 = vld [vmem:[%s6856_s6 + $0x2e0] sm:$0xff] }
 0x31f   :  { %v855_v33 = vrot.slane %v848_v14, %v5323_v8  ;;  %v862_v60 = vcombine.high %v848_v14, %v848_v14  ;;  %v895_v50 = vrot.slane %v888_v15, %v5323_v8  ;;  %v899_v40 = vcombine.high %v888_v15, %v888_v15  ;;  %v1097_v14 = vld [vmem:[%s6856_s6 + $0x318] sm:$0xff] }
 0x320   :  { %v920_v54 = vcombine.low %v837_v24, %v838_v5  ;;  %v957_v59 = vcombine.high %v837_v24, %v838_v5  ;;  %v1096_v24 = vld [vmem:[%s6856_s6 + $0x310] sm:$0xff]  ;;  %v4123_v5 = vpack.c.bf16 %v1065_v51, %v1064_v49  ;;  %v4169_v49 = vpack.c.bf16 %v1121_v11, %v1120_v3  ;;  %v1129_v3 = vld [vmem:[%s6856_s6 + $0x418] sm:$0xff] }
 0x321   :  { %861 = vst.msk [vmem:[#allocation3] ss:$2 sm:$0x3] %vm5328_vm9, %v855_v33  ;;  %v869_v52 = vrot.slane %v862_v60, %v5323_v8  ;;  %v873_v53 = vcombine.high %v855_v33, %v855_v33  ;;  %898 = vst.msk [vmem:[#allocation3 + $0x10] ss:$2 sm:$0x3] %vm5328_vm9, %v895_v50  ;;  %v906_v7 = vrot.slane %v899_v40, %v5323_v8 }
 0x322   :  { %v910_v63 = vcombine.high %v895_v50, %v895_v50  ;;  %v927_v58 = vrot.slane %v920_v54, %v5323_v8  ;;  %v964_v6 = vrot.slane %v957_v59, %v5323_v8  ;;  %v1114_v33 = vld [vmem:[%s6856_s6 + $0x3a0] sm:$0xff]  ;;  %v1115_v60 = vld [vmem:[%s6856_s6 + $0x3a8] sm:$0xff]  ;;  %v4125_v50 = vpack.c.bf16 %v1083_v61, %v1082_v30  ;;  %v1104_v51 = vld [vmem:[%s6856_s6 + $0x350] sm:$0xff] }
 0x323   :  { %872 = vst.msk [vmem:[#allocation3 + $0x4] ss:$2 sm:$0x3] %vm5328_vm9, %v869_v52  ;;  %876 = vst.msk [vmem:[#allocation3 + $0x8] ss:$2 sm:$0x3] %vm5328_vm9, %v873_v53  ;;  %v877_v42 = vcombine.high %v869_v52, %v869_v52  ;;  %v914_v44 = vcombine.high %v906_v7, %v906_v7  ;;  %v4155_v59 = vpack.c.bf16 %v1097_v14, %v1096_v24 }
 0x324   :  { %909 = vst.msk [vmem:[#allocation3 + $0x14] ss:$2 sm:$0x3] %vm5328_vm9, %v906_v7  ;;  %913 = vst.msk [vmem:[#allocation3 + $0x18] ss:$2 sm:$0x3] %vm5328_vm9, %v910_v63  ;;  %v934_v29 = vrot.slane %v927_v58, %v5323_v8  ;;  %v938_v34 = vcombine.high %v927_v58, %v927_v58  ;;  %v971_v37 = vrot.slane %v964_v6, %v5323_v8 }
 0x325   :  { %v975_v48 = vcombine.high %v964_v6, %v964_v6  ;;  %880 = vst.msk [vmem:[#allocation3 + $0xc] ss:$2 sm:$0x3] %vm5328_vm9, %v877_v42  ;;  %917 = vst.msk [vmem:[#allocation3 + $0x1c] ss:$2 sm:$0x3] %vm5328_vm9, %v914_v44  ;;  %v4157_v7 = vpack.c.bf16 %v1115_v60, %v1114_v33 }
 0x326   :  { %937 = vst.msk [vmem:[#allocation3 + $0x1] ss:$2 sm:$0x3] %vm5328_vm9, %v934_v29  ;;  %v945_v35 = vrot.slane %v938_v34, %v5323_v8  ;;  %v949_v56 = vcombine.high %v934_v29, %v934_v29  ;;  %974 = vst.msk [vmem:[#allocation3 + $0x11] ss:$2 sm:$0x3] %vm5328_vm9, %v971_v37  ;;  %v986_v47 = vcombine.high %v971_v37, %v971_v37 }
 0x327   :  { %v982_v41 = vrot.slane %v975_v48, %v5323_v8  ;;  %v1066_v40 = vld [vmem:[%s6856_s6 + $0x220] sm:$0xff]  ;;  %v1067_v54 = vld [vmem:[%s6856_s6 + $0x228] sm:$0xff]  ;;  %v1084_v52 = vld [vmem:[%s6856_s6 + $0x2b0] sm:$0xff] }
 0x328   :  { %948 = vst.msk [vmem:[#allocation3 + $0x5] ss:$2 sm:$0x3] %vm5328_vm9, %v945_v35  ;;  %952 = vst.msk [vmem:[#allocation3 + $0x9] ss:$2 sm:$0x3] %vm5328_vm9, %v949_v56  ;;  %v953_v55 = vcombine.high %v945_v35, %v945_v35  ;;  %v4127_v6 = vpack.c.bf16 %v1067_v54, %v1066_v40 }
 0x329   :  { %985 = vst.msk [vmem:[#allocation3 + $0x15] ss:$2 sm:$0x3] %vm5328_vm9, %v982_v41  ;;  %989 = vst.msk [vmem:[#allocation3 + $0x19] ss:$2 sm:$0x3] %vm5328_vm9, %v986_v47  ;;  %v990_v38 = vcombine.high %v982_v41, %v982_v41 }
 0x32a   :  { %956 = vst.msk [vmem:[#allocation3 + $0xd] ss:$2 sm:$0x3] %vm5328_vm9, %v953_v55  ;;  %v1085_v53 = vld [vmem:[%s6856_s6 + $0x2b8] sm:$0xff]  ;;  %v1098_v63 = vld [vmem:[%s6856_s6 + $0x320] sm:$0xff]  ;;  %v1099_v58 = vld [vmem:[%s6856_s6 + $0x328] sm:$0xff] }
 0x32b   :  { %993 = vst.msk [vmem:[#allocation3 + $0x1d] ss:$2 sm:$0x3] %vm5328_vm9, %v990_v38  ;;  %v1116_v42 = vld [vmem:[%s6856_s6 + $0x3b0] sm:$0xff]  ;;  %v1117_v44 = vld [vmem:[%s6856_s6 + $0x3b8] sm:$0xff]  ;;  %v4129_v45 = vpack.c.bf16 %v1085_v53, %v1084_v52  ;;  %v4159_v34 = vpack.c.bf16 %v1099_v58, %v1098_v63  ;;  %v1086_v37 = vld [vmem:[%s6856_s6 + $0x2c0] sm:$0xff] }
 0x32c   :  { %v1069_v29 = vld [vmem:[%s6856_s6 + $0x238] sm:$0xff]  ;;  %v1087_v48 = vld [vmem:[%s6856_s6 + $0x2c8] sm:$0xff]  ;;  %v4161_v35 = vpack.c.bf16 %v1117_v44, %v1116_v42  ;;  %v1100_v56 = vld [vmem:[%s6856_s6 + $0x330] sm:$0xff] }
 0x32d   :  { %v1101_v41 = vld [vmem:[%s6856_s6 + $0x338] sm:$0xff]  ;;  %v4131_v47 = vpack.c.bf16 %v1069_v29, %v1068_v46  ;;  %v1118_v55 = vld [vmem:[%s6856_s6 + $0x3c0] sm:$0xff]  ;;  %v1119_v38 = vld [vmem:[%s6856_s6 + $0x3c8] sm:$0xff]  ;;  %v4133_v20 = vpack.c.bf16 %v1087_v48, %v1086_v37 }
 0x32e   :  { %v4165_v28 = vpack.c.bf16 %v1119_v38, %v1118_v55  ;;  %v1123_v30 = vld [vmem:[%s6856_s6 + $0x3e8] sm:$0xff]  ;;  %v1106_v60 = vld [vmem:[%s6856_s6 + $0x360] sm:$0xff]  ;;  %v1124_v54 = vld [vmem:[%s6856_s6 + $0x3f0] sm:$0xff] }
 0x32f   :  { %v994_v43 = vld [vmem:[#allocation3] sm:$0xff]  ;;  %v1075_v24 = vld [vmem:[%s6856_s6 + $0x268] sm:$0xff]  ;;  %v1076_v53 = vld [vmem:[%s6856_s6 + $0x270] sm:$0xff] }
 0x330   :  { %v1272_v23 = vrot.slane %v994_v43, %v5375_v36  ;;  %v1265_v27 = vcombine.high %v994_v43, %v994_v43  ;;  %v4163_v43 = vpack.c.bf16 %v1101_v41, %v1100_v56  ;;  %v996_v63 = vld [vmem:[#allocation3 + $0x10] sm:$0xff]  ;;  %v1143_v42 = vld [vmem:[%s6856_s6 + $0x488] sm:$0xff]  ;;  %v1109_v46 = vld [vmem:[%s6856_s6 + $0x378] sm:$0xff] }
 0x331   :  { %v995_v0 = vld [vmem:[#allocation3 + $0x8] sm:$0xff]  ;;  %v1299_v48 = vcombine.high %v996_v63, %v996_v63  ;;  %v1126_v56 = vld [vmem:[%s6856_s6 + $0x400] sm:$0xff]  ;;  %v5588_v55 = vrot.slane %v996_v63, %v5375_v36  ;;  %v1144_v38 = vld [vmem:[%s6856_s6 + $0x490] sm:$0xff] }
 0x332   :  { %v1280_v12 = vcombine.high %v1272_v23, %v1272_v23  ;;  %v1279_v1 = vrot.slane %v1265_v27, %v5375_v36  ;;  %v5398_v18 = vrot.slane %v995_v0, %v5375_v36  ;;  %v1282_v9 = vcombine.high %v995_v0, %v995_v0  ;;  %v1089_v27 = vld [vmem:[%s6856_s6 + $0x2d8] sm:$0xff]  ;;  %v1175_v37 = vld [vmem:[%s6856_s6 + $0x588] sm:$0xff]  ;;  %v1164_v63 = vld [vmem:[%s6856_s6 + $0x530] sm:$0xff] }
 0x333   :  { %v4135_v0 = vpack.c.bf16 %v1071_v25, %v1070_v39  ;;  %v1127_v41 = vld [vmem:[%s6856_s6 + $0x408] sm:$0xff]  ;;  %v1158_v25 = vld [vmem:[%s6856_s6 + $0x500] sm:$0xff]  ;;  %v1314_v11 = vcombine.high %v5588_v55, %v5588_v55 }
 0x334   :  { %1413 = vmatprep.mubr.f32.mxu0 %v1280_v12  ;;  %v1281_v26 = vcombine.high %v1279_v1, %v1279_v1  ;;  %v1297_v2 = vcombine.high %v5398_v18, %v5398_v18  ;;  %v5415_v17 = vrot.slane %v1282_v9, %v5375_v36  ;;  %v1073_v9 = vld [vmem:[%s6856_s6 + $0x258] sm:$0xff] }
 0x335   :  { %1414 = vmatmul.mubr.f32.vlgmr.msra.gmra.mrb[4].mxu0 %v1272_v23  ;;  %v1088_v23 = vld [vmem:[%s6856_s6 + $0x2d0] sm:$0xff] }
 0x336   :  { %4120 = vmatpush3.bf16.msra.mxu0 %v4119_v62  ;;  %1483 = vmatprep.mubr.f32.mxu1 %v1281_v26  ;;  %v1298_v15 = vcombine.high %v5415_v17, %v5415_v17  ;;  %v1103_v62 = vld [vmem:[%s6856_s6 + $0x348] sm:$0xff]  ;;  %v4137_v12 = vpack.c.bf16 %v1089_v27, %v1088_v23  ;;  %v1105_v26 = vld [vmem:[%s6856_s6 + $0x358] sm:$0xff]  ;;  %v4183_v23 = vpack.c.bf16 %v1127_v41, %v1126_v56  ;;  %v1166_v56 = vld [vmem:[%s6856_s6 + $0x540] sm:$0xff] }
 0x337   :  { %1553 = vmatprep.mubr.f32.mxu0 %v1297_v2  ;;  %1484 = vmatmul.mubr.f32.vlgmr.msra.gmra.mrb[4].mxu1 %v1279_v1  ;;  %v1072_v1 = vld [vmem:[%s6856_s6 + $0x250] sm:$0xff]  ;;  %v4167_v16 = vpack.c.bf16 %v1103_v62, %v1102_v57  ;;  %v4171_v14 = vpack.c.bf16 %v1105_v26, %v1104_v51  ;;  %v5603_v27 = vrot.slane %v1299_v48, %v5375_v36  ;;  %v1177_v57 = vld [vmem:[%s6856_s6 + $0x598] sm:$0xff]  ;;  %v1179_v26 = vld [vmem:[%s6856_s6 + $0x5a8] sm:$0xff] }
 0x338   :  { %4152 = vmatpush3.bf16.msra.mxu1 %v4151_v22  ;;  %4122 = vmatprep.subr.bf16.mxu0 %v4121_v13  ;;  %v1091_v22 = vld [vmem:[%s6856_s6 + $0x2e8] sm:$0xff]  ;;  %v4139_v2 = vpack.c.bf16 %v1073_v9, %v1072_v1  ;;  %v1122_v13 = vld [vmem:[%s6856_s6 + $0x3e0] sm:$0xff]  ;;  %v1153_v48 = vld [vmem:[%s6856_s6 + $0x4d8] sm:$0xff] }
 0x339   :  { %1623 = vmatprep.mubr.f32.mxu1 %v1298_v15  ;;  %4154 = vmatprep.subr.bf16.mxu1 %v4153_v31  ;;  %v4141_v61 = vpack.c.bf16 %v1091_v22, %v1090_v21  ;;  %v1074_v31 = vld [vmem:[%s6856_s6 + $0x260] sm:$0xff]  ;;  %v1092_v15 = vld [vmem:[%s6856_s6 + $0x2f0] sm:$0xff]  ;;  %v4173_v33 = vpack.c.bf16 %v1123_v30, %v1122_v13  ;;  %v1147_v9 = vld [vmem:[%s6856_s6 + $0x4a8] sm:$0xff] }
 0x33a   :  { %4124 = vmatpush3.bf16.msra.mxu0 %v4123_v5  ;;  %v1093_v5 = vld [vmem:[%s6856_s6 + $0x2f8] sm:$0xff]  ;;  %v4143_v40 = vpack.c.bf16 %v1075_v24, %v1074_v31  ;;  %v1146_v1 = vld [vmem:[%s6856_s6 + $0x4a0] sm:$0xff]  ;;  %v1160_v21 = vld [vmem:[%s6856_s6 + $0x510] sm:$0xff] }
 0x33b   :  { %4126 = vmatprep.subr.bf16.mxu0 %v4125_v50  ;;  %v1107_v50 = vld [vmem:[%s6856_s6 + $0x368] sm:$0xff]  ;;  %v4145_v52 = vpack.c.bf16 %v1093_v5, %v1092_v15  ;;  %v1161_v22 = vld [vmem:[%s6856_s6 + $0x518] sm:$0xff]  ;;  %v1130_v13 = vld [vmem:[%s6856_s6 + $0x420] sm:$0xff] }
 0x33c   :  { %4156 = vmatpush3.bf16.msra.mxu1 %v4155_v59  ;;  %v1125_v59 = vld [vmem:[%s6856_s6 + $0x3f8] sm:$0xff]  ;;  %v4175_v58 = vpack.c.bf16 %v1107_v50, %v1106_v60  ;;  %v1131_v30 = vld [vmem:[%s6856_s6 + $0x428] sm:$0xff]  ;;  %v1148_v31 = vld [vmem:[%s6856_s6 + $0x4b0] sm:$0xff] }
 0x33d   :  { %4158 = vmatprep.subr.bf16.mxu1 %v4157_v7  ;;  %v1077_v7 = vld [vmem:[%s6856_s6 + $0x278] sm:$0xff]  ;;  %v4177_v44 = vpack.c.bf16 %v1125_v59, %v1124_v54  ;;  %v1163_v15 = vld [vmem:[%s6856_s6 + $0x528] sm:$0xff]  ;;  %v4191_v5 = vpack.c.bf16 %v1131_v30, %v1130_v13  ;;  %v1188_v30 = vld [vmem:[%s6856_s6 + $0x5f0] sm:$0xff] }
 0x33e   :  { %4128 = vmatpush3.bf16.msra.mxu0 %v4127_v6  ;;  %v1142_v6 = vld [vmem:[%s6856_s6 + $0x480] sm:$0xff]  ;;  %v4147_v29 = vpack.c.bf16 %v1077_v7, %v1076_v53  ;;  %v1181_v60 = vld [vmem:[%s6856_s6 + $0x5b8] sm:$0xff]  ;;  %v1151_v53 = vld [vmem:[%s6856_s6 + $0x4c8] sm:$0xff] }
 0x33f   :  { %4130 = vmatprep.subr.bf16.mxu0 %v4129_v45  ;;  %v1108_v45 = vld [vmem:[%s6856_s6 + $0x370] sm:$0xff]  ;;  %v1133_v54 = vld [vmem:[%s6856_s6 + $0x438] sm:$0xff]  ;;  %v1167_v41 = vld [vmem:[%s6856_s6 + $0x548] sm:$0xff] }
 0x340   :  { %4160 = vmatpush3.bf16.msra.mxu1 %v4159_v34  ;;  %v1174_v34 = vld [vmem:[%s6856_s6 + $0x580] sm:$0xff] }
 0x341   :  { %4162 = vmatprep.subr.bf16.mxu1 %v4161_v35  ;;  %v4181_v35 = vpack.c.bf16 %v1143_v42, %v1142_v6  ;;  %v4213_v39 = vpack.c.bf16 %v1175_v37, %v1174_v34  ;;  %v1182_v42 = vld [vmem:[%s6856_s6 + $0x5c0] sm:$0xff]  ;;  %v1152_v37 = vld [vmem:[%s6856_s6 + $0x4d0] sm:$0xff] }
 0x342   :  { %4132 = vmatpush3.bf16.msra.mxu0 %v4131_v47  ;;  %v4179_v47 = vpack.c.bf16 %v1109_v46, %v1108_v45  ;;  %v1134_v46 = vld [vmem:[%s6856_s6 + $0x440] sm:$0xff] }
 0x343   :  { %4134 = vmatprep.subr.bf16.mxu0 %v4133_v20  ;;  %v1145_v20 = vld [vmem:[%s6856_s6 + $0x498] sm:$0xff] }
 0x344   :  { %4164 = vmatpush3.bf16.msra.mxu1 %v4163_v43  ;;  %v1159_v43 = vld [vmem:[%s6856_s6 + $0x508] sm:$0xff]  ;;  %v4185_v62 = vpack.c.bf16 %v1145_v20, %v1144_v38  ;;  %v1184_v38 = vld [vmem:[%s6856_s6 + $0x5d0] sm:$0xff]  ;;  %v1185_v20 = vld [vmem:[%s6856_s6 + $0x5d8] sm:$0xff] }
 0x345   :  { %4166 = vmatprep.subr.bf16.mxu1 %v4165_v28  ;;  %v1176_v28 = vld [vmem:[%s6856_s6 + $0x590] sm:$0xff] }
 0x346   :  { %4136 = vmatpush3.bf16.msra.mxu0 %v4135_v0  ;;  %v1128_v0 = vld [vmem:[%s6856_s6 + $0x410] sm:$0xff] }
 0x347   :  { %4138 = vmatprep.subr.bf16.mxu0 %v4137_v12  ;;  %v4215_v12 = vpack.c.bf16 %v1159_v43, %v1158_v25  ;;  %v4187_v51 = vpack.c.bf16 %v1129_v3, %v1128_v0  ;;  %v1136_v25 = vld [vmem:[%s6856_s6 + $0x450] sm:$0xff]  ;;  %v1137_v43 = vld [vmem:[%s6856_s6 + $0x458] sm:$0xff] }
 0x348   :  { %4168 = vmatpush3.bf16.msra.mxu1 %v4167_v16  ;;  %v4217_v16 = vpack.c.bf16 %v1177_v57, %v1176_v28  ;;  %v1154_v28 = vld [vmem:[%s6856_s6 + $0x4e0] sm:$0xff]  ;;  %v1155_v57 = vld [vmem:[%s6856_s6 + $0x4e8] sm:$0xff]  ;;  %v1168_v0 = vld [vmem:[%s6856_s6 + $0x550] sm:$0xff] }
 0x349   :  { %4170 = vmatprep.subr.bf16.mxu1 %v4169_v49  ;;  %v1315_v49 = vcombine.high %v5603_v27, %v5603_v27  ;;  %v1169_v3 = vld [vmem:[%s6856_s6 + $0x558] sm:$0xff] }
 0x34a   :  { %4140 = vmatpush3.bf16.msra.mxu0 %v4139_v2  ;;  %v4189_v2 = vpack.c.bf16 %v1147_v9, %v1146_v1  ;;  %v1187_v1 = vld [vmem:[%s6856_s6 + $0x5e8] sm:$0xff]  ;;  %v4205_v9 = vpack.c.bf16 %v1155_v57, %v1154_v28  ;;  %v1225_v28 = vld [vmem:[%s6856_s6 + $0x718] sm:$0xff] }
 0x34b   :  { %4142 = vmatprep.subr.bf16.mxu0 %v4141_v61  ;;  %v4219_v61 = vpack.c.bf16 %v1161_v22, %v1160_v21  ;;  %v1139_v21 = vld [vmem:[%s6856_s6 + $0x468] sm:$0xff]  ;;  %v4235_v22 = vpack.c.bf16 %v1169_v3, %v1168_v0 }
 0x34c   :  { %4172 = vmatpush3.bf16.msra.mxu1 %v4171_v14  ;;  %v1162_v14 = vld [vmem:[%s6856_s6 + $0x520] sm:$0xff]  ;;  %v1243_v0 = vld [vmem:[%s6856_s6 + $0x7a8] sm:$0xff] }
 0x34d   :  { %4174 = vmatprep.subr.bf16.mxu1 %v4173_v33  ;;  %v1180_v33 = vld [vmem:[%s6856_s6 + $0x5b0] sm:$0xff]  ;;  %v4223_v59 = vpack.c.bf16 %v1163_v15, %v1162_v14  ;;  %v997_v14 = vld [vmem:[#allocation3 + $0x18] sm:$0xff] }
 0x34e   :  { %4144 = vmatpush3.bf16.msra.mxu0 %v4143_v40  ;;  %v1132_v40 = vld [vmem:[%s6856_s6 + $0x430] sm:$0xff]  ;;  %v4225_v7 = vpack.c.bf16 %v1181_v60, %v1180_v33  ;;  %v1207_v33 = vld [vmem:[%s6856_s6 + $0x688] sm:$0xff] }
 0x34f   :  { %4146 = vmatprep.subr.bf16.mxu0 %v4145_v52  ;;  %v1150_v52 = vld [vmem:[%s6856_s6 + $0x4c0] sm:$0xff]  ;;  %v4195_v6 = vpack.c.bf16 %v1133_v54, %v1132_v40  ;;  %v1173_v40 = vld [vmem:[%s6856_s6 + $0x578] sm:$0xff] }
 0x350   :  { %4176 = vmatpush3.bf16.msra.mxu1 %v4175_v58  ;;  %v1165_v58 = vld [vmem:[%s6856_s6 + $0x538] sm:$0xff]  ;;  %v4197_v45 = vpack.c.bf16 %v1151_v53, %v1150_v52  ;;  %v1239_v52 = vld [vmem:[%s6856_s6 + $0x788] sm:$0xff]  ;;  %v1316_v53 = vcombine.high %v997_v14, %v997_v14 }
 0x351   :  { %4178 = vmatprep.subr.bf16.mxu1 %v4177_v44  ;;  %v1183_v44 = vld [vmem:[%s6856_s6 + $0x5c8] sm:$0xff]  ;;  %v4227_v34 = vpack.c.bf16 %v1165_v58, %v1164_v63  ;;  %v1190_v63 = vld [vmem:[%s6856_s6 + $0x600] sm:$0xff] }
 0x352   :  { %4148 = vmatpush3.bf16.msra.mxu0 %v4147_v29  ;;  %v1135_v29 = vld [vmem:[%s6856_s6 + $0x448] sm:$0xff] }
 0x353   :  { %4182 = vmatprep.subr.bf16.mxu0 %v4181_v35  ;;  %v4229_v35 = vpack.c.bf16 %v1183_v44, %v1182_v42  ;;  %v1191_v58 = vld [vmem:[%s6856_s6 + $0x608] sm:$0xff]  ;;  %v5792_v42 = vrot.slane %v997_v14, %v5375_v36  ;;  %v1208_v44 = vld [vmem:[%s6856_s6 + $0x690] sm:$0xff]  ;;  %v1229_v14 = vld [vmem:[%s6856_s6 + $0x738] sm:$0xff] }
 0x354   :  { %4180 = vmatpush3.bf16.msra.mxu1 %v4179_v47  ;;  %v4199_v47 = vpack.c.bf16 %v1135_v29, %v1134_v46  ;;  %v1222_v29 = vld [vmem:[%s6856_s6 + $0x700] sm:$0xff] }
 0x355   :  { %1554 = vmatmul.mubr.f32.vlgmr.msra.gmra.mrb[6].mxu0 %v5398_v18  ;;  %4214 = vmatprep.subr.bf16.mxu1 %v4213_v39  ;;  %v1178_v18 = vld [vmem:[%s6856_s6 + $0x5a0] sm:$0xff]  ;;  %v4201_v39 = vpack.c.bf16 %v1153_v48, %v1152_v37  ;;  %v4247_v37 = vpack.c.bf16 %v1191_v58, %v1190_v63  ;;  %v5807_v48 = vrot.slane %v1316_v53, %v5375_v36  ;;  %v1231_v63 = vld [vmem:[%s6856_s6 + $0x748] sm:$0xff] }
 0x356   :  { %4184 = vmatpush3.bf16.msra.mxu0 %v4183_v23  ;;  %1693 = vmatprep.mubr.f32.mxu0 %v1314_v11  ;;  %v4221_v24 = vpack.c.bf16 %v1179_v26, %v1178_v18  ;;  %v4231_v23 = vpack.c.bf16 %v1167_v41, %v1166_v56  ;;  %v4203_v11 = vpack.c.bf16 %v1137_v43, %v1136_v25  ;;  %v1170_v26 = vld [vmem:[%s6856_s6 + $0x560] sm:$0xff]  ;;  %v1241_v56 = vld [vmem:[%s6856_s6 + $0x798] sm:$0xff]  ;;  %v1211_v25 = vld [vmem:[%s6856_s6 + $0x6a8] sm:$0xff] }
 0x357   :  { %1624 = vmatmul.mubr.f32.vlgmr.msra.gmra.mrb[6].mxu1 %v5415_v17  ;;  %4186 = vmatprep.subr.bf16.mxu0 %v4185_v62  ;;  %v1149_v17 = vld [vmem:[%s6856_s6 + $0x4b8] sm:$0xff]  ;;  %v4233_v62 = vpack.c.bf16 %v1185_v20, %v1184_v38  ;;  %v1331_v36 = vcombine.high %v5792_v42, %v5792_v42  ;;  %v1332_v57 = vcombine.high %v5807_v48, %v5807_v48 }
 0x358   :  { %4216 = vmatpush3.bf16.msra.mxu1 %v4215_v12  ;;  %1763 = vmatprep.mubr.f32.mxu1 %v1315_v49  ;;  %v4193_v50 = vpack.c.bf16 %v1149_v17, %v1148_v31  ;;  %v1186_v12 = vld [vmem:[%s6856_s6 + $0x5e0] sm:$0xff]  ;;  %v1156_v49 = vld [vmem:[%s6856_s6 + $0x4f0] sm:$0xff]  ;;  %v1193_v38 = vld [vmem:[%s6856_s6 + $0x618] sm:$0xff] }
 0x359   :  { %4218 = vmatprep.subr.bf16.mxu1 %v4217_v16  ;;  %v1138_v16 = vld [vmem:[%s6856_s6 + $0x460] sm:$0xff]  ;;  %v4237_v18 = vpack.c.bf16 %v1187_v1, %v1186_v12  ;;  %v1140_v17 = vld [vmem:[%s6856_s6 + $0x470] sm:$0xff]  ;;  %v1195_v12 = vld [vmem:[%s6856_s6 + $0x628] sm:$0xff] }
 0x35a   :  { %4188 = vmatpush3.bf16.msra.mxu0 %v4187_v51  ;;  %v1157_v51 = vld [vmem:[%s6856_s6 + $0x4f8] sm:$0xff]  ;;  %v4207_v13 = vpack.c.bf16 %v1139_v21, %v1138_v16  ;;  %v1226_v21 = vld [vmem:[%s6856_s6 + $0x720] sm:$0xff] }
 0x35b   :  { %4190 = vmatprep.subr.bf16.mxu0 %v4189_v2  ;;  %v1171_v2 = vld [vmem:[%s6856_s6 + $0x568] sm:$0xff]  ;;  %v4209_v31 = vpack.c.bf16 %v1157_v51, %v1156_v49  ;;  %v1244_v51 = vld [vmem:[%s6856_s6 + $0x7b0] sm:$0xff] }
 0x35c   :  { %4220 = vmatpush3.bf16.msra.mxu1 %v4219_v61  ;;  %v1189_v61 = vld [vmem:[%s6856_s6 + $0x5f8] sm:$0xff]  ;;  %v4239_v15 = vpack.c.bf16 %v1171_v2, %v1170_v26  ;;  %v1196_v2 = vld [vmem:[%s6856_s6 + $0x630] sm:$0xff] }
 0x35d   :  { %4222 = vmatprep.subr.bf16.mxu1 %v4221_v24  ;;  %v1141_v24 = vld [vmem:[%s6856_s6 + $0x478] sm:$0xff]  ;;  %v4241_v60 = vpack.c.bf16 %v1189_v61, %v1188_v30  ;;  %v1214_v61 = vld [vmem:[%s6856_s6 + $0x6c0] sm:$0xff] }
 0x35e   :  { %4192 = vmatpush3.bf16.msra.mxu0 %v4191_v5  ;;  %v1206_v5 = vld [vmem:[%s6856_s6 + $0x680] sm:$0xff]  ;;  %v4211_v54 = vpack.c.bf16 %v1141_v24, %v1140_v17  ;;  %v1228_v24 = vld [vmem:[%s6856_s6 + $0x730] sm:$0xff] }
 0x35f   :  { %4194 = vmatprep.subr.bf16.mxu0 %v4193_v50  ;;  %v1172_v50 = vld [vmem:[%s6856_s6 + $0x570] sm:$0xff] }
 0x360   :  { %4224 = vmatpush3.bf16.msra.mxu1 %v4223_v59  ;;  %v1238_v59 = vld [vmem:[%s6856_s6 + $0x780] sm:$0xff] }
 0x361   :  { %4226 = vmatprep.subr.bf16.mxu1 %v4225_v7  ;;  %v4245_v7 = vpack.c.bf16 %v1207_v33, %v1206_v5  ;;  %v4277_v46 = vpack.c.bf16 %v1239_v52, %v1238_v59  ;;  %v1246_v5 = vld [vmem:[%s6856_s6 + $0x7c0] sm:$0xff]  ;;  %v1247_v33 = vld [vmem:[%s6856_s6 + $0x7c8] sm:$0xff]  ;;  %v1216_v59 = vld [vmem:[%s6856_s6 + $0x6d0] sm:$0xff] }
 0x362   :  { %4196 = vmatpush3.bf16.msra.mxu0 %v4195_v6  ;;  %v4243_v6 = vpack.c.bf16 %v1173_v40, %v1172_v50  ;;  %v1198_v50 = vld [vmem:[%s6856_s6 + $0x640] sm:$0xff]  ;;  %v1199_v40 = vld [vmem:[%s6856_s6 + $0x648] sm:$0xff]  ;;  %v1217_v52 = vld [vmem:[%s6856_s6 + $0x6d8] sm:$0xff]  ;;  %v4293_v53 = vpack.c.bf16 %v1247_v33, %v1246_v5 }
 0x363   :  { %4198 = vmatprep.subr.bf16.mxu0 %v4197_v45  ;;  %v1209_v45 = vld [vmem:[%s6856_s6 + $0x698] sm:$0xff]  ;;  %v4263_v58 = vpack.c.bf16 %v1199_v40, %v1198_v50  ;;  %v1942_v5 = vld [vmem:[%s6858_s8 + $0x108] sm:$0xff] }
 0x364   :  { %4228 = vmatpush3.bf16.msra.mxu1 %v4227_v34  ;;  %v1223_v34 = vld [vmem:[%s6856_s6 + $0x708] sm:$0xff]  ;;  %v4249_v41 = vpack.c.bf16 %v1209_v45, %v1208_v44  ;;  %v1249_v44 = vld [vmem:[%s6856_s6 + $0x7d8] sm:$0xff]  ;;  %v4265_v45 = vpack.c.bf16 %v1217_v52, %v1216_v59  ;;  %v1957_v59 = vld [vmem:[%s6858_s8 + $0x180] sm:$0xff] }
 0x365   :  { %4230 = vmatprep.subr.bf16.mxu1 %v4229_v35  ;;  %v1240_v35 = vld [vmem:[%s6856_s6 + $0x790] sm:$0xff]  ;;  %v4279_v20 = vpack.c.bf16 %v1223_v34, %v1222_v29  ;;  %v1201_v29 = vld [vmem:[%s6856_s6 + $0x658] sm:$0xff]  ;;  %v1958_v33 = vld [vmem:[%s6858_s8 + $0x188] sm:$0xff] }
 0x366   :  { %4200 = vmatpush3.bf16.msra.mxu0 %v4199_v47  ;;  %v1192_v47 = vld [vmem:[%s6856_s6 + $0x610] sm:$0xff]  ;;  %v4281_v43 = vpack.c.bf16 %v1241_v56, %v1240_v35  ;;  %v1219_v35 = vld [vmem:[%s6856_s6 + $0x6e8] sm:$0xff]  ;;  %v4313_v50 = vpack.c.bf16 %v1958_v33, %v1942_v5  ;;  %v1960_v40 = vld [vmem:[%s6858_s8 + $0x198] sm:$0xff] }
 0x367   :  { %4202 = vmatprep.subr.bf16.mxu0 %v4201_v39  ;;  %v1210_v39 = vld [vmem:[%s6856_s6 + $0x6a0] sm:$0xff] }
 0x368   :  { %4232 = vmatpush3.bf16.msra.mxu1 %v4231_v23  ;;  %v1224_v23 = vld [vmem:[%s6856_s6 + $0x710] sm:$0xff]  ;;  %v4253_v3 = vpack.c.bf16 %v1211_v25, %v1210_v39  ;;  %v1202_v25 = vld [vmem:[%s6856_s6 + $0x660] sm:$0xff] }
 0x369   :  { %4234 = vmatprep.subr.bf16.mxu1 %v4233_v62  ;;  %v4251_v62 = vpack.c.bf16 %v1193_v38, %v1192_v47  ;;  %v4283_v1 = vpack.c.bf16 %v1225_v28, %v1224_v23  ;;  %v1233_v47 = vld [vmem:[%s6856_s6 + $0x758] sm:$0xff]  ;;  %v1220_v28 = vld [vmem:[%s6856_s6 + $0x6f0] sm:$0xff]  ;;  %v1945_v33 = vld [vmem:[%s6858_s8 + $0x120] sm:$0xff] }
 0x36a   :  { %4204 = vmatpush3.bf16.msra.mxu0 %v4203_v11  ;;  %v1194_v11 = vld [vmem:[%s6856_s6 + $0x620] sm:$0xff] }
 0x36b   :  { %4206 = vmatprep.subr.bf16.mxu0 %v4205_v9  ;;  %v1212_v9 = vld [vmem:[%s6856_s6 + $0x6b0] sm:$0xff]  ;;  %v4255_v49 = vpack.c.bf16 %v1195_v12, %v1194_v11  ;;  %v1253_v12 = vld [vmem:[%s6856_s6 + $0x7f8] sm:$0xff] }
 0x36c   :  { %4236 = vmatpush3.bf16.msra.mxu1 %v4235_v22  ;;  %v1227_v22 = vld [vmem:[%s6856_s6 + $0x728] sm:$0xff]  ;;  %v1252_v11 = vld [vmem:[%s6856_s6 + $0x7f0] sm:$0xff] }
 0x36d   :  { %4238 = vmatprep.subr.bf16.mxu1 %v4237_v18  ;;  %v1245_v18 = vld [vmem:[%s6856_s6 + $0x7b8] sm:$0xff]  ;;  %v4287_v30 = vpack.c.bf16 %v1227_v22, %v1226_v21  ;;  %v4305_v21 = vpack.c.bf16 %v1253_v12, %v1252_v11  ;;  %v1236_v22 = vld [vmem:[%s6856_s6 + $0x770] sm:$0xff] }
 0x36e   :  { %4208 = vmatpush3.bf16.msra.mxu0 %v4207_v13  ;;  %v1197_v13 = vld [vmem:[%s6856_s6 + $0x638] sm:$0xff]  ;;  %v4289_v17 = vpack.c.bf16 %v1245_v18, %v1244_v51 }
 0x36f   :  { %4210 = vmatprep.subr.bf16.mxu0 %v4209_v31  ;;  %v1215_v31 = vld [vmem:[%s6856_s6 + $0x6c8] sm:$0xff] }
 0x370   :  { %4240 = vmatpush3.bf16.msra.mxu1 %v4239_v15  ;;  %v4259_v15 = vpack.c.bf16 %v1197_v13, %v1196_v2  ;;  %v1926_v2 = vld [vmem:[%s6858_s8 + $0x88] sm:$0xff]  ;;  %v1912_v13 = vld [vmem:[%s6858_s8 + $0x18] sm:$0xff] }
 0x371   :  { %4242 = vmatprep.subr.bf16.mxu1 %v4241_v60  ;;  %v4261_v60 = vpack.c.bf16 %v1215_v31, %v1214_v61  ;;  %v1909_v61 = vld [vmem:[%s6858_s8] sm:$0xff] }
 0x372   :  { %4212 = vmatpush3.bf16.msra.mxu0 %v4211_v54  ;;  %v4291_v54 = vpack.c.bf16 %v1229_v14, %v1228_v24  ;;  %v1925_v31 = vld [vmem:[%s6858_s8 + $0x80] sm:$0xff]  ;;  %v1927_v14 = vld [vmem:[%s6858_s8 + $0x90] sm:$0xff] }
 0x373   :  { %4246 = vmatprep.subr.bf16.mxu0 %v4245_v7  ;;  %v1230_v7 = vld [vmem:[%s6856_s6 + $0x740] sm:$0xff]  ;;  %v4311_v24 = vpack.c.bf16 %v1925_v31, %v1909_v61  ;;  %v1962_v61 = vld [vmem:[%s6858_s8 + $0x1a8] sm:$0xff]  ;;  %v1948_v31 = vld [vmem:[%s6858_s8 + $0x138] sm:$0xff] }
 0x374   :  { %4244 = vmatpush3.bf16.msra.mxu1 %v4243_v6  ;;  %v1248_v6 = vld [vmem:[%s6856_s6 + $0x7d0] sm:$0xff]  ;;  %v4295_v34 = vpack.c.bf16 %v1231_v63, %v1230_v7 }
 0x375   :  { %1694 = vmatmul.mubr.f32.vlgmr.msra.gmra.mrb[8].mxu0 %v5588_v55  ;;  %4278 = vmatprep.subr.bf16.mxu1 %v4277_v46  ;;  %v1242_v55 = vld [vmem:[%s6856_s6 + $0x7a0] sm:$0xff]  ;;  %v1200_v46 = vld [vmem:[%s6856_s6 + $0x650] sm:$0xff]  ;;  %v4297_v56 = vpack.c.bf16 %v1249_v44, %v1248_v6  ;;  %v1914_v6 = vld [vmem:[%s6858_s8 + $0x28] sm:$0xff] }
 0x376   :  { %4248 = vmatpush3.bf16.msra.mxu0 %v4247_v37  ;;  %1833 = vmatprep.mubr.f32.mxu0 %v1331_v36  ;;  %v4285_v16 = vpack.c.bf16 %v1243_v0, %v1242_v55  ;;  %v1218_v37 = vld [vmem:[%s6856_s6 + $0x6e0] sm:$0xff]  ;;  %v4267_v38 = vpack.c.bf16 %v1201_v29, %v1200_v46  ;;  %v1235_v0 = vld [vmem:[%s6856_s6 + $0x768] sm:$0xff]  ;;  %v1943_v7 = vld [vmem:[%s6858_s8 + $0x110] sm:$0xff] }
 0x377   :  { %1764 = vmatmul.mubr.f32.vlgmr.msra.gmra.mrb[8].mxu1 %v5603_v27  ;;  %4250 = vmatprep.subr.bf16.mxu0 %v4249_v41  ;;  %v1213_v27 = vld [vmem:[%s6856_s6 + $0x6b8] sm:$0xff]  ;;  %v1232_v41 = vld [vmem:[%s6856_s6 + $0x750] sm:$0xff]  ;;  %v1250_v36 = vld [vmem:[%s6856_s6 + $0x7e0] sm:$0xff]  ;;  %v4269_v39 = vpack.c.bf16 %v1219_v35, %v1218_v37 }
 0x378   :  { %4280 = vmatpush3.bf16.msra.mxu1 %v4279_v20  ;;  %1903 = vmatprep.mubr.f32.mxu1 %v1332_v57  ;;  %v4257_v26 = vpack.c.bf16 %v1213_v27, %v1212_v9  ;;  %v1251_v20 = vld [vmem:[%s6856_s6 + $0x7e8] sm:$0xff]  ;;  %v4299_v23 = vpack.c.bf16 %v1233_v47, %v1232_v41  ;;  %v1221_v57 = vld [vmem:[%s6856_s6 + $0x6f8] sm:$0xff]  ;;  %v1234_v55 = vld [vmem:[%s6856_s6 + $0x760] sm:$0xff] }
 0x379   :  { %4282 = vmatprep.subr.bf16.mxu1 %v4281_v43  ;;  %v1203_v43 = vld [vmem:[%s6856_s6 + $0x668] sm:$0xff]  ;;  %v1204_v9 = vld [vmem:[%s6856_s6 + $0x670] sm:$0xff]  ;;  %v1205_v27 = vld [vmem:[%s6856_s6 + $0x678] sm:$0xff] }
 0x37a   :  { %4252 = vmatpush3.bf16.msra.mxu0 %v4251_v62  ;;  %v4301_v62 = vpack.c.bf16 %v1251_v20, %v1250_v36  ;;  %v4275_v51 = vpack.c.bf16 %v1205_v27, %v1204_v9  ;;  %v1959_v63 = vld [vmem:[%s6858_s8 + $0x190] sm:$0xff]  ;;  %v1930_v44 = vld [vmem:[%s6858_s8 + $0xa8] sm:$0xff]  ;;  %v1932_v29 = vld [vmem:[%s6858_s8 + $0xb8] sm:$0xff] }
 0x37b   :  { %4254 = vmatprep.subr.bf16.mxu0 %v4253_v3  ;;  %v4271_v3 = vpack.c.bf16 %v1203_v43, %v1202_v25  ;;  %v4325_v46 = vpack.c.bf16 %v1930_v44, %v1914_v6  ;;  %v3696_v35 = vld [vmem:[%s6857_s7] ss:$0 sm:$0xff] }
 0x37c   :  { %4284 = vmatpush3.bf16.msra.mxu1 %v4283_v1  ;;  %v4273_v1 = vpack.c.bf16 %v1221_v57, %v1220_v28 }
 0x37d   :  { %4286 = vmatprep.subr.bf16.mxu1 %v4285_v16  ;;  %v4303_v16 = vpack.c.bf16 %v1235_v0, %v1234_v55 }
 0x37e   :  { %4256 = vmatpush3.bf16.msra.mxu0 %v4255_v49  ;;  %v1237_v49 = vld [vmem:[%s6856_s6 + $0x778] sm:$0xff] }
 0x37f   :  { %4258 = vmatprep.subr.bf16.mxu0 %v4257_v26  ;;  %v4307_v18 = vpack.c.bf16 %v1237_v49, %v1236_v22  ;;  %v1910_v26 = vld [vmem:[%s6858_s8 + $0x8] sm:$0xff] }
 0x380   :  { %4288 = vmatpush3.bf16.msra.mxu1 %v4287_v30  ;;  %v4309_v30 = vpack.c.bf16 %v1926_v2, %v1910_v26 }
 0x381   :  { %4290 = vmatprep.subr.bf16.mxu1 %v4289_v17  ;;  %v1911_v17 = vld [vmem:[%s6858_s8 + $0x10] sm:$0xff] }
 0x382   :  { %4260 = vmatpush3.bf16.msra.mxu0 %v4259_v15  ;;  %v4319_v15 = vpack.c.bf16 %v1927_v14, %v1911_v17  ;;  %v1964_v17 = vld [vmem:[%s6858_s8 + $0x1b8] sm:$0xff] }
 0x383   :  { %4262 = vmatprep.subr.bf16.mxu0 %v4261_v60  ;;  %v1944_v60 = vld [vmem:[%s6858_s8 + $0x118] sm:$0xff] }
 0x384   :  { %4292 = vmatpush3.bf16.msra.mxu1 %v4291_v54  ;;  %v1941_v54 = vld [vmem:[%s6858_s8 + $0x100] sm:$0xff]  ;;  %v4321_v52 = vpack.c.bf16 %v1960_v40, %v1944_v60 }
 0x385   :  { %4294 = vmatprep.subr.bf16.mxu1 %v4293_v53  ;;  %v4315_v53 = vpack.c.bf16 %v1957_v59, %v1941_v54  ;;  %v1961_v60 = vld [vmem:[%s6858_s8 + $0x1a0] sm:$0xff]  ;;  %v4337_v54 = vpack.c.bf16 %v1964_v17, %v1948_v31  ;;  %v1947_v59 = vld [vmem:[%s6858_s8 + $0x130] sm:$0xff] }
 0x386   :  { %4264 = vmatpush3.bf16.msra.mxu0 %v4263_v58  ;;  %v4323_v58 = vpack.c.bf16 %v1959_v63, %v1943_v7  ;;  %v1934_v7 = vld [vmem:[%s6858_s8 + $0xc8] sm:$0xff]  ;;  %v1920_v63 = vld [vmem:[%s6858_s8 + $0x58] sm:$0xff]  ;;  %v4331_v6 = vpack.c.bf16 %v1961_v60, %v1945_v33  ;;  %v1955_v31 = vld [vmem:[%s6858_s8 + $0x170] sm:$0xff]  ;;  %v1983_v60 = vsub.s32 1, %v5320_v19 }
 0x387   :  { %4266 = vmatprep.subr.bf16.mxu0 %v4265_v45  ;;  %v1916_v45 = vld [vmem:[%s6858_s8 + $0x38] sm:$0xff]  ;;  %v1971_v17 = vld [vmem:[%s6858_s8 + $0x1f0] sm:$0xff]  ;;  %v1973_v33 = vld [vmem:[%s6859_s9] sm:$0xff] }
 0x388   :  { %4296 = vmatpush3.bf16.msra.mxu1 %v4295_v34  ;;  %v4333_v34 = vpack.c.bf16 %v1932_v29, %v1916_v45  ;;  %v1917_v45 = vld [vmem:[%s6858_s8 + $0x40] sm:$0xff] }
 0x389   :  { %4298 = vmatprep.subr.bf16.mxu1 %v4297_v56 }
 0x38a   :  { %4268 = vmatpush3.bf16.msra.mxu0 %v4267_v38 }
 0x38b   :  { %4270 = vmatprep.subr.bf16.mxu0 %v4269_v39 }
 0x38c   :  { %4300 = vmatpush3.bf16.msra.mxu1 %v4299_v23 }
 0x38d   :  { %4302 = vmatprep.subr.bf16.mxu1 %v4301_v62 }
 0x38e   :  { %4272 = vmatpush3.bf16.msra.mxu0 %v4271_v3 }
 0x38f   :  { %4274 = vmatprep.subr.bf16.mxu0 %v4273_v1 }
 0x390   :  { %4304 = vmatpush3.bf16.msra.mxu1 %v4303_v16 }
 0x391   :  { %4306 = vmatprep.subr.bf16.mxu1 %v4305_v21 }
 0x392   :  { %4276 = vmatpush3.bf16.msra.mxu0 %v4275_v51  ;;  %v1913_v51 = vld [vmem:[%s6858_s8 + $0x20] sm:$0xff] }
 0x393   :  { %4310 = vmatprep.subr.bf16.mxu0 %v4309_v30  ;;  %v1931_v30 = vld [vmem:[%s6858_s8 + $0xb0] sm:$0xff] }
 0x394   :  { %4308 = vmatpush3.bf16.msra.mxu1 %v4307_v18  ;;  %v1929_v18 = vld [vmem:[%s6858_s8 + $0xa0] sm:$0xff] }
 0x395   :  { %1834 = vmatmul.mubr.f32.vlgmr.msra.gmra.mrb[10].mxu0 %v5792_v42  ;;  %v1928_v42 = vld [vmem:[%s6858_s8 + $0x98] sm:$0xff] }
 0x396   :  { %2125 = vmatprep.mubr.f32.mxu0 %v4487_v4  ;;  %4312 = vmatpush1.bf16.msra.mxu0 %v4311_v24 }
 0x397   :  { %1904 = vmatmul.mubr.f32.vlgmr.msra.gmra.mrb[10].mxu1 %v5807_v48  ;;  %v4317_v48 = vpack.c.bf16 %v1928_v42, %v1912_v13  ;;  %4314 = vmatprep.subr.bf16.mxu0 %v4313_v50  ;;  %v1915_v13 = vld [vmem:[%s6858_s8 + $0x30] sm:$0xff]  ;;  %v1946_v42 = vld [vmem:[%s6858_s8 + $0x128] sm:$0xff] }
 0x398   :  { %2196 = vmatprep.mubr.f32.mxu1 %v4487_v4  ;;  %v4335_v5 = vpack.c.bf16 %v1931_v30, %v1915_v13  ;;  %v4329_v40 = vpack.c.bf16 %v1962_v61, %v1946_v42  ;;  %v1953_v30 = vld [vmem:[%s6858_s8 + $0x160] sm:$0xff] }
 0x399   :  { %4318 = vmatprep.subr.bf16.mxu1 %v4317_v48  ;;  %v1969_v61 = vld [vmem:[%s6858_s8 + $0x1e0] sm:$0xff] }
 0x39a   :  { %4320 = vmatpush1.bf16.msra.mxu1 %v4319_v15  ;;  %4316 = vmatpush1.bf16.msra.mxu0 %v4315_v53  ;;  %v4327_v15 = vpack.c.bf16 %v1929_v18, %v1913_v51  ;;  %v1918_v53 = vld [vmem:[%s6858_s8 + $0x48] sm:$0xff]  ;;  %v1956_v18 = vld [vmem:[%s6858_s8 + $0x178] sm:$0xff] }
 0x39b   :  { %4322 = vmatprep.subr.bf16.mxu1 %v4321_v52  ;;  %4326 = vmatprep.subr.bf16.mxu0 %v4325_v46  ;;  %v1963_v52 = vld [vmem:[%s6858_s8 + $0x1b0] sm:$0xff]  ;;  %v1933_v46 = vld [vmem:[%s6858_s8 + $0xc0] sm:$0xff]  ;;  %v4341_v29 = vpack.c.bf16 %v1934_v7, %v1918_v53  ;;  %v1970_v51 = vld [vmem:[%s6858_s8 + $0x1e8] sm:$0xff] }
 0x39c   :  { %v4339_v44 = vpack.c.bf16 %v1963_v52, %v1947_v59  ;;  %v1984_v52 = vrot.slane %v1973_v33, %v1983_v60 }
 0x39e   :  { %4324 = vmatpush1.bf16.msra.mxu1 %v4323_v58  ;;  %v1936_v58 = vld [vmem:[%s6858_s8 + $0xd8] sm:$0xff] }
 0x39f   :  { %4334 = vmatprep.subr.bf16.mxu1 %v4333_v34  ;;  %v4349_v34 = vpack.c.bf16 %v1936_v58, %v1920_v63 }
 0x408   :  { %v3741_v37 = vpop.f32.mrb[4].mxu0 }
 0x409   :  { %v3742_v56 = vpop.f32.mrb[5].mxu0 }
 0x40a   :  { %v3743_v41 = vadd.f32 %v3742_v56, %v3741_v37  ;;  %v3776_v47 = vpop.f32.mrb[4].mxu1  ;;  %v1919_v37 = vld [vmem:[%s6858_s8 + $0x50] sm:$0xff]  ;;  %v1950_v56 = vld [vmem:[%s6858_s8 + $0x148] sm:$0xff] }
 0x40b   :  { %v3777_v38 = vpop.f32.mrb[5].mxu1 }
 0x40c   :  { %v1416_v36 = vadd.f32 %v3743_v41, %v3696_v35  ;;  %v3778_v20 = vadd.f32 %v3777_v38, %v3776_v47  ;;  %v1935_v35 = vld [vmem:[%s6858_s8 + $0xd0] sm:$0xff]  ;;  %v1966_v41 = vld [vmem:[%s6858_s8 + $0x1c8] sm:$0xff]  ;;  %v1952_v47 = vld [vmem:[%s6858_s8 + $0x158] sm:$0xff] }
 0x40d   :  { %v1968_v38 = vld [vmem:[%s6858_s8 + $0x1d8] sm:$0xff] }
 0x40e   :  { %v1486_v39 = vadd.f32 %v3778_v20, %v1416_v36  ;;  %v4343_v36 = vpack.c.bf16 %v1933_v46, %v1917_v45  ;;  %v4351_v20 = vpack.c.bf16 %v1935_v35, %v1919_v37  ;;  %v1995_v45 = vsub.s32 4, %v5320_v19 }
 0x40f   :  { %v2003_v46 = vsub.s32 6, %v5320_v19  ;;  %v1999_v37 = vsub.s32 5, %v5320_v19  ;;  %v2007_v35 = vsub.s32 7, %v5320_v19 }
 0x428   :  { %v3811_v25 = vpop.f32.mrb[6].mxu0 }
 0x429   :  { %v3812_v43 = vpop.f32.mrb[7].mxu0 }
 0x42a   :  { %v3813_v23 = vadd.f32 %v3812_v43, %v3811_v25  ;;  %v3846_v28 = vpop.f32.mrb[6].mxu1  ;;  %v1965_v25 = vld [vmem:[%s6858_s8 + $0x1c0] sm:$0xff]  ;;  %v4345_v43 = vpack.c.bf16 %v1966_v41, %v1950_v56 }
 0x42b   :  { %v3847_v57 = vpop.f32.mrb[7].mxu1 }
 0x42c   :  { %v1556_v62 = vadd.f32 %v3813_v23, %v1486_v39  ;;  %v3848_v55 = vadd.f32 %v3847_v57, %v3846_v28  ;;  %v1949_v39 = vld [vmem:[%s6858_s8 + $0x140] sm:$0xff]  ;;  %v4353_v23 = vpack.c.bf16 %v1968_v38, %v1952_v47  ;;  %v1951_v28 = vld [vmem:[%s6858_s8 + $0x150] sm:$0xff]  ;;  %v1996_v47 = vrot.slane %v1973_v33, %v1995_v45 }
 0x42d   :  { %v1967_v57 = vld [vmem:[%s6858_s8 + $0x1d0] sm:$0xff]  ;;  %v2004_v38 = vrot.slane %v1973_v33, %v2003_v46 }
 0x42e   :  { %v1626_v0 = vadd.f32 %v3848_v55, %v1556_v62  ;;  %v1922_v62 = vld [vmem:[%s6858_s8 + $0x68] sm:$0xff] }
 0x42f   :  { %v1938_v55 = vld [vmem:[%s6858_s8 + $0xe8] sm:$0xff] }
 0x448   :  { %v3881_v3 = vpop.f32.mrb[8].mxu0 }
 0x449   :  { %v3882_v11 = vpop.f32.mrb[9].mxu0 }
 0x44a   :  { %v3883_v12 = vadd.f32 %v3882_v11, %v3881_v3  ;;  %v3916_v1 = vpop.f32.mrb[8].mxu1  ;;  %v1940_v3 = vld [vmem:[%s6858_s8 + $0xf8] sm:$0xff]  ;;  %v4347_v11 = vpack.c.bf16 %v1965_v25, %v1949_v39  ;;  %v2000_v39 = vrot.slane %v1973_v33, %v1999_v37  ;;  %v2008_v25 = vrot.slane %v1973_v33, %v2007_v35 }
 0x44b   :  { %v3917_v9 = vpop.f32.mrb[9].mxu1 }
 0x44c   :  { %v1696_v27 = vadd.f32 %v3883_v12, %v1626_v0  ;;  %v3918_v16 = vadd.f32 %v3917_v9, %v3916_v1  ;;  %v1924_v0 = vld [vmem:[%s6858_s8 + $0x78] sm:$0xff]  ;;  %v4355_v12 = vpack.c.bf16 %v1967_v57, %v1951_v28  ;;  %v1921_v1 = vld [vmem:[%s6858_s8 + $0x60] sm:$0xff] }
 0x44d   :  { %v1937_v9 = vld [vmem:[%s6858_s8 + $0xe0] sm:$0xff] }
 0x44e   :  { %v1766_v21 = vadd.f32 %v3918_v16, %v1696_v27  ;;  %v4357_v27 = vpack.c.bf16 %v1938_v55, %v1922_v62  ;;  %v4365_v16 = vpack.c.bf16 %v1940_v3, %v1924_v0 }
 0x468   :  { %v3951_v22 = vpop.f32.mrb[10].mxu0 }
 0x469   :  { %v3952_v49 = vpop.f32.mrb[11].mxu0 }
 0x46a   :  { %v3953_v26 = vadd.f32 %v3952_v49, %v3951_v22  ;;  %v3986_v2 = vpop.f32.mrb[10].mxu1  ;;  %v1939_v22 = vld [vmem:[%s6858_s8 + $0xf0] sm:$0xff]  ;;  %v1954_v49 = vld [vmem:[%s6858_s8 + $0x168] sm:$0xff] }
 0x46b   :  { %v3987_v48 = vpop.f32.mrb[11].mxu1  ;;  %v4361_v42 = vpack.c.bf16 %v1970_v51, %v1954_v49 }
 0x46c   :  { %v1836_v24 = vadd.f32 %v3953_v26, %v1766_v21  ;;  %v3988_v14 = vadd.f32 %v3987_v48, %v3986_v2  ;;  %v1923_v21 = vld [vmem:[%s6858_s8 + $0x70] sm:$0xff]  ;;  %v1972_v26 = vld [vmem:[%s6858_s8 + $0x1f8] sm:$0xff]  ;;  %v4359_v2 = vpack.c.bf16 %v1937_v9, %v1921_v1 }
 0x46d   :  { %v4367_v13 = vpack.c.bf16 %v1939_v22, %v1923_v21  ;;  %v4369_v48 = vpack.c.bf16 %v1972_v26, %v1956_v18 }
 0x46e   :  { %v6074_v50 = vadd.f32 %v3988_v14, %v1836_v24  ;;  %v4363_v24 = vpack.c.bf16 %v1969_v61, %v1953_v30  ;;  %v4371_v14 = vpack.c.bf16 %v1971_v17, %v1955_v31 }
 0x470   :  { %3697 = vmatmul.mubr.msk.f32.vlgmr.msra.gmra.mrb[12].mxu0 %vm2057_vm10, %v6074_v50  ;;  %3698 = vmatmul.mubr.msk.f32.vlgmr.msra.gmra.mrb[12].mxu1 %vm2057_vm10, %v6074_v50 }
 0x471   :  { %4328 = vmatpush1.bf16.msra.mxu0 %v4327_v15  ;;  %4336 = vmatpush1.bf16.msra.mxu1 %v4335_v5  ;;  %v1979_v15 = vsub.s32 0, %v5320_v19  ;;  %v1987_v5 = vsub.s32 2, %v5320_v19 }
 0x472   :  { %4330 = vmatprep.subr.bf16.mxu0 %v4329_v40  ;;  %4338 = vmatprep.subr.bf16.mxu1 %v4337_v54  ;;  %v1991_v40 = vsub.s32 3, %v5320_v19 }
 0x473   :  { %2267 = vmatprep.mubr.f32.mxu0 %v4487_v4  ;;  %2338 = vmatprep.mubr.f32.mxu1 %v4487_v4  ;;  %v1980_v54 = vrot.slane %v1973_v33, %v1979_v15  ;;  %v1988_v59 = vrot.slane %v1973_v33, %v1987_v5 }
 0x475   :  { %4332 = vmatpush1.bf16.msra.mxu0 %v4331_v6  ;;  %4340 = vmatpush1.bf16.msra.mxu1 %v4339_v44 }
 0x476   :  { %4342 = vmatprep.subr.bf16.mxu0 %v4341_v29  ;;  %4350 = vmatprep.subr.bf16.mxu1 %v4349_v34 }
 0x478   :  { %3699 = vmatmul.mubr.msk.f32.vlgmr.msra.gmra.mrb[14].mxu0 %vm2057_vm10, %v6074_v50  ;;  %3700 = vmatmul.mubr.msk.f32.vlgmr.msra.gmra.mrb[14].mxu1 %vm2057_vm10, %v6074_v50 }
 0x479   :  { %4344 = vmatpush1.bf16.msra.mxu0 %v4343_v36  ;;  %4352 = vmatpush1.bf16.msra.mxu1 %v4351_v20 }
 0x47a   :  { %4346 = vmatprep.subr.bf16.mxu0 %v4345_v43  ;;  %4354 = vmatprep.subr.bf16.mxu1 %v4353_v23 }
 0x47b   :  { %2409 = vmatprep.mubr.f32.mxu0 %v4487_v4  ;;  %2480 = vmatprep.mubr.f32.mxu1 %v4487_v4 }
 0x47d   :  { %4348 = vmatpush1.bf16.msra.mxu0 %v4347_v11  ;;  %4356 = vmatpush1.bf16.msra.mxu1 %v4355_v12 }
 0x47e   :  { %4358 = vmatprep.subr.bf16.mxu0 %v4357_v27  ;;  %4366 = vmatprep.subr.bf16.mxu1 %v4365_v16  ;;  %v1974_v16 = vld [vmem:[%s6859_s9 + $0x8] sm:$0xff] }
 0x47f   :  { %v2012_v49 = vrot.slane %v1974_v16, %v1979_v15  ;;  %v2020_v51 = vrot.slane %v1974_v16, %v1987_v5 }
 0x480   :  { %3701 = vmatmul.mubr.msk.f32.vlgmr.msra.gmra.mrb[16].mxu0 %vm2057_vm10, %v6074_v50  ;;  %3702 = vmatmul.mubr.msk.f32.vlgmr.msra.gmra.mrb[16].mxu1 %vm2057_vm10, %v6074_v50 }
 0x481   :  { %4360 = vmatpush1.bf16.msra.mxu0 %v4359_v2  ;;  %4368 = vmatpush1.bf16.msra.mxu1 %v4367_v13  ;;  %v2016_v2 = vrot.slane %v1974_v16, %v1983_v60  ;;  %v2024_v13 = vrot.slane %v1974_v16, %v1991_v40 }
 0x482   :  { %4362 = vmatprep.subr.bf16.mxu0 %v4361_v42  ;;  %4370 = vmatprep.subr.bf16.mxu1 %v4369_v48 }
 0x483   :  { %2551 = vmatprep.mubr.f32.mxu0 %v4487_v4  ;;  %2622 = vmatprep.mubr.f32.mxu1 %v4487_v4 }
 0x485   :  { %4364 = vmatpush1.bf16.msra.mxu0 %v4363_v24  ;;  %4372 = vmatpush1.bf16.msra.mxu1 %v4371_v14 }
 0x488   :  { %3703 = vmatmul.mubr.msk.f32.vlgmr.msra.gmra.mrb[18].mxu0 %vm2057_vm10, %v6074_v50  ;;  %3704 = vmatmul.mubr.msk.f32.vlgmr.msra.gmra.mrb[18].mxu1 %vm2057_vm10, %v6074_v50  ;;  %v1992_v50 = vrot.slane %v1973_v33, %v1991_v40 }
 0x489   :  { %3202 = vmatprep.mubr.f32.mxu0 %v4487_v4  ;;  %3273 = vmatprep.mubr.f32.mxu1 %v4487_v4 }
 0x543   :  { %v2127_v53 = vpop.f32.mrb[12].mxu0  ;;  %v2198_v7 = vpop.f32.mrb[12].mxu1 }
 0x544   :  { %v2128_v63 = vadd.f32 %v2127_v53, %v1980_v54  ;;  %v2199_v58 = vadd.f32 %v2198_v7, %v1988_v59  ;;  %v2129_v6 = vpop.f32.mrb[13].mxu0  ;;  %v2200_v44 = vpop.f32.mrb[13].mxu1  ;;  %v2036_v53 = vrot.slane %v1974_v16, %v2003_v46 }
 0x545   :  { %v2130_v29 = vadd.f32 %v2129_v6, %v1984_v52  ;;  %v2201_v34 = vadd.f32 %v2200_v44, %v1992_v50  ;;  %v2028_v50 = vrot.slane %v1974_v16, %v1995_v45  ;;  %v2040_v6 = vrot.slane %v1974_v16, %v2007_v35 }
 0x547   :  { %v2631_v56 = vcombine.low %v2128_v63, %v2130_v29  ;;  %v2651_v41 = vcombine.low %v2199_v58, %v2201_v34  ;;  %v2032_v58 = vrot.slane %v1974_v16, %v1999_v37  ;;  %v6350_v16 = vld [vmem:[%s6851_s1 + $0x8] sm:$0xff] }
 0x549   :  { %v2638_v36 = vrot.slane %v2631_v56, %v5323_v8  ;;  %v2658_v20 = vrot.slane %v2651_v41, %v5323_v8 }
 0x54b   :  { %v2645_v43 = vrot.slane %v2638_v36, %v5323_v8  ;;  %v2796_v23 = vcombine.high %v2638_v36, %v2638_v36  ;;  %v2665_v28 = vrot.slane %v2658_v20, %v5323_v8  ;;  %v2808_v57 = vcombine.high %v2658_v20, %v2658_v20  ;;  %v2269_v62 = vpop.f32.mrb[14].mxu0  ;;  %v2340_v55 = vpop.f32.mrb[14].mxu1 }
 0x54c   :  { %v2270_v0 = vadd.f32 %v2269_v62, %v1996_v47  ;;  %v2341_v19 = vadd.f32 %v2340_v55, %v2004_v38  ;;  %v2271_v3 = vpop.f32.mrb[15].mxu0  ;;  %v2342_v11 = vpop.f32.mrb[15].mxu1 }
 0x54d   :  { %2647 = vst.msk [vmem:[#allocation2] ss:$8 sm:$0x3] %vm5328_vm9, %v2645_v43  ;;  %v2803_v12 = vrot.slane %v2796_v23, %v5323_v8  ;;  %2668 = vst.msk [vmem:[#allocation2 + $0x1] ss:$8 sm:$0x3] %vm5328_vm9, %v2665_v28  ;;  %v2815_v1 = vrot.slane %v2808_v57, %v5323_v8  ;;  %v2272_v9 = vadd.f32 %v2271_v3, %v2000_v39 }
 0x54e   :  { %v2343_v27 = vadd.f32 %v2342_v11, %v2008_v25 }
 0x54f   :  { %2806 = vst.msk [vmem:[#allocation2 + $0x10] ss:$8 sm:$0x3] %vm5328_vm9, %v2803_v12  ;;  %2818 = vst.msk [vmem:[#allocation2 + $0x11] ss:$8 sm:$0x3] %vm5328_vm9, %v2815_v1  ;;  %v2672_v21 = vcombine.low %v2270_v0, %v2272_v9 }
 0x550   :  { %v2693_v22 = vcombine.low %v2341_v19, %v2343_v27  ;;  %v3129_v1 = vld [vmem:[%s6861_s11] sm:$0xff] }
 0x551   :  { %v2679_v18 = vrot.slane %v2672_v21, %v5323_v8 }
 0x552   :  { %v2700_v26 = vrot.slane %v2693_v22, %v5323_v8  ;;  %v6357_v22 = vld [vmem:[%s6851_s1 + $0x28] sm:$0xff] }
 0x553   :  { %v2686_v30 = vrot.slane %v2679_v18, %v5323_v8  ;;  %v2820_v42 = vcombine.high %v2679_v18, %v2679_v18  ;;  %v2411_v31 = vpop.f32.mrb[16].mxu0  ;;  %v2482_v17 = vpop.f32.mrb[16].mxu1 }
 0x554   :  { %v2707_v48 = vrot.slane %v2700_v26, %v5323_v8  ;;  %v2832_v61 = vcombine.high %v2700_v26, %v2700_v26  ;;  %v2412_v24 = vadd.f32 %v2411_v31, %v2012_v49  ;;  %v2483_v14 = vadd.f32 %v2482_v17, %v2020_v51  ;;  %v2413_v33 = vpop.f32.mrb[17].mxu0  ;;  %v2484_v54 = vpop.f32.mrb[17].mxu1 }
 0x555   :  { %2689 = vst.msk [vmem:[#allocation2 + $0x2] ss:$8 sm:$0x3] %vm5328_vm9, %v2686_v30  ;;  %v2827_v15 = vrot.slane %v2820_v42, %v5323_v8  ;;  %v2414_v60 = vadd.f32 %v2413_v33, %v2016_v2  ;;  %v2485_v40 = vadd.f32 %v2484_v54, %v2024_v13 }
 0x556   :  { %2710 = vst.msk [vmem:[#allocation2 + $0x3] ss:$8 sm:$0x3] %vm5328_vm9, %v2707_v48  ;;  %v2839_v5 = vrot.slane %v2832_v61, %v5323_v8 }
 0x557   :  { %2830 = vst.msk [vmem:[#allocation2 + $0x12] ss:$8 sm:$0x3] %vm5328_vm9, %v2827_v15  ;;  %v2714_v59 = vcombine.low %v2412_v24, %v2414_v60  ;;  %v2735_v52 = vcombine.low %v2483_v14, %v2485_v40  ;;  %v6380_v60 = vld [vmem:[%s6851_s1 + $0x68] sm:$0xff] }
 0x558   :  { %2842 = vst.msk [vmem:[#allocation2 + $0x13] ss:$8 sm:$0x3] %vm5328_vm9, %v2839_v5 }
 0x559   :  { %v2721_v7 = vrot.slane %v2714_v59, %v5323_v8  ;;  %v2742_v63 = vrot.slane %v2735_v52, %v5323_v8  ;;  %v6388_v59 = vld [vmem:[%s6851_s1] sm:$0xff] }
 0x55b   :  { %v2728_v44 = vrot.slane %v2721_v7, %v5323_v8  ;;  %v2844_v29 = vcombine.high %v2721_v7, %v2721_v7  ;;  %v2749_v34 = vrot.slane %v2742_v63, %v5323_v8  ;;  %v2856_v56 = vcombine.high %v2742_v63, %v2742_v63  ;;  %v2553_v41 = vpop.f32.mrb[18].mxu0  ;;  %v2624_v47 = vpop.f32.mrb[18].mxu1 }
 0x55c   :  { %v2554_v38 = vadd.f32 %v2553_v41, %v2028_v50  ;;  %v2625_v36 = vadd.f32 %v2624_v47, %v2036_v53  ;;  %v2555_v20 = vpop.f32.mrb[19].mxu0  ;;  %v2626_v39 = vpop.f32.mrb[19].mxu1  ;;  %v6395_v50 = vld [vmem:[%s6851_s1 + $0x10] sm:$0xff]  ;;  %v6400_v53 = vld [vmem:[%s6851_s1 + $0x18] sm:$0xff] }
 0x55d   :  { %2731 = vst.msk [vmem:[#allocation2 + $0x4] ss:$8 sm:$0x3] %vm5328_vm9, %v2728_v44  ;;  %v2851_v45 = vrot.slane %v2844_v29, %v5323_v8  ;;  %2752 = vst.msk [vmem:[#allocation2 + $0x5] ss:$8 sm:$0x3] %vm5328_vm9, %v2749_v34  ;;  %v2863_v46 = vrot.slane %v2856_v56, %v5323_v8  ;;  %v2556_v37 = vadd.f32 %v2555_v20, %v2032_v58 }
 0x55e   :  { %v2627_v35 = vadd.f32 %v2626_v39, %v2040_v6  ;;  %v6409_v58 = vld [vmem:[%s6851_s1 + $0x20] sm:$0xff]  ;;  %v6414_v6 = vld [vmem:[%s6851_s1 + $0x30] sm:$0xff]  ;;  %v6419_v44 = vld [vmem:[%s6851_s1 + $0x38] sm:$0xff] }
 0x55f   :  { %2854 = vst.msk [vmem:[#allocation2 + $0x14] ss:$8 sm:$0x3] %vm5328_vm9, %v2851_v45  ;;  %2866 = vst.msk [vmem:[#allocation2 + $0x15] ss:$8 sm:$0x3] %vm5328_vm9, %v2863_v46  ;;  %v2756_v25 = vcombine.low %v2554_v38, %v2556_v37 }
 0x560   :  { %v2777_v43 = vcombine.low %v2625_v36, %v2627_v35  ;;  %v6424_v29 = vld [vmem:[%s6851_s1 + $0x48] sm:$0xff] }
 0x561   :  { %v2763_v23 = vrot.slane %v2756_v25, %v5323_v8 }
 0x562   :  { %v2784_v28 = vrot.slane %v2777_v43, %v5323_v8 }
 0x563   :  { %v2770_v57 = vrot.slane %v2763_v23, %v5323_v8  ;;  %v2868_v62 = vcombine.high %v2763_v23, %v2763_v23 }
 0x564   :  { %v2791_v55 = vrot.slane %v2784_v28, %v5323_v8  ;;  %v2880_v0 = vcombine.high %v2784_v28, %v2784_v28 }
 0x565   :  { %2773 = vst.msk [vmem:[#allocation2 + $0x6] ss:$8 sm:$0x3] %vm5328_vm9, %v2770_v57  ;;  %v2875_v19 = vrot.slane %v2868_v62, %v5323_v8 }
 0x566   :  { %2794 = vst.msk [vmem:[#allocation2 + $0x7] ss:$8 sm:$0x3] %vm5328_vm9, %v2791_v55  ;;  %v2887_v3 = vrot.slane %v2880_v0, %v5323_v8  ;;  %v6445_v0 = vld [vmem:[%s6851_s1 + $0x40] sm:$0xff] }
 0x567   :  { %2878 = vst.msk [vmem:[#allocation2 + $0x16] ss:$8 sm:$0x3] %vm5328_vm9, %v2875_v19 }
 0x568   :  { %2890 = vst.msk [vmem:[#allocation2 + $0x17] ss:$8 sm:$0x3] %vm5328_vm9, %v2887_v3 }
 0x56d   :  { %v6272_v11 = vld [vmem:[#allocation2 + $0x8] sm:$0xff]  ;;  %v6274_v12 = vld [vmem:[#allocation2] sm:$0xff] }
 0x56e   :  { %2898 = vrot.lane.b32.xlu0 %v6272_v11, %s4480_s17  ;;  %2896 = vrot.lane.b32.xlu1 %v6274_v12, %s4480_s17 }
 0x56f   :  { %v6304_v8 = vld [vmem:[#allocation2 + $0x18] sm:$0xff]  ;;  %v6306_v32 = vld [vmem:[#allocation2 + $0x10] sm:$0xff] }
 0x572   :  { %2922 = vrot.lane.b32.xlu0 %v6272_v11, %s4481_s22  ;;  %2920 = vrot.lane.b32.xlu1 %v6274_v12, %s4481_s22 }
 0x576   :  { %2946 = vrot.lane.b32.xlu0 %v6272_v11, %s4482_s0  ;;  %2944 = vrot.lane.b32.xlu1 %v6274_v12, %s4482_s0 }
 0x57a   :  { %2970 = vrot.lane.b32.xlu0 %v6272_v11, %s4483_s23  ;;  %2968 = vrot.lane.b32.xlu1 %v6274_v12, %s4483_s23 }
 0x57e   :  { %2998 = vrot.lane.b32.xlu0 %v6272_v11, %s4484_s24  ;;  %2996 = vrot.lane.b32.xlu1 %v6274_v12, %s4484_s24 }
 0x582   :  { %3022 = vrot.lane.b32.xlu0 %v6272_v11, %s4485_s25  ;;  %3020 = vrot.lane.b32.xlu1 %v6274_v12, %s4485_s25 }
 0x586   :  { %3046 = vrot.lane.b32.xlu0 %v6272_v11, %s4486_s26  ;;  %3044 = vrot.lane.b32.xlu1 %v6274_v12, %s4486_s26 }
 0x58a   :  { %2902 = vrot.lane.b32.xlu0 %v6304_v8, %s4480_s17  ;;  %2900 = vrot.lane.b32.xlu1 %v6306_v32, %s4480_s17 }
 0x58e   :  { %2926 = vrot.lane.b32.xlu0 %v6304_v8, %s4481_s22  ;;  %2924 = vrot.lane.b32.xlu1 %v6306_v32, %s4481_s22 }
 0x592   :  { %2950 = vrot.lane.b32.xlu0 %v6304_v8, %s4482_s0  ;;  %2948 = vrot.lane.b32.xlu1 %v6306_v32, %s4482_s0 }
 0x596   :  { %2974 = vrot.lane.b32.xlu0 %v6304_v8, %s4483_s23  ;;  %2972 = vrot.lane.b32.xlu1 %v6306_v32, %s4483_s23 }
 0x59a   :  { %3002 = vrot.lane.b32.xlu0 %v6304_v8, %s4484_s24  ;;  %3000 = vrot.lane.b32.xlu1 %v6306_v32, %s4484_s24 }
 0x59e   :  { %3026 = vrot.lane.b32.xlu0 %v6304_v8, %s4485_s25  ;;  %3024 = vrot.lane.b32.xlu1 %v6306_v32, %s4485_s25 }
 0x5a2   :  { %3050 = vrot.lane.b32.xlu0 %v6304_v8, %s4486_s26  ;;  %3048 = vrot.lane.b32.xlu1 %v6306_v32, %s4486_s26 }
 0x5a6   :  { %3070 = vrot.lane.b32.xlu0 %v6272_v11, %s4489_s27  ;;  %3068 = vrot.lane.b32.xlu1 %v6274_v12, %s4489_s27 }
 0x5aa   :  { %3074 = vrot.lane.b32.xlu0 %v6304_v8, %s4489_s27  ;;  %3072 = vrot.lane.b32.xlu1 %v6306_v32, %s4489_s27 }
 0x5ae   :  { %3132 = vperm.xlu1 %4451, %v3129_v1   ;;  %v6452_v1 = vld [vmem:[%s6851_s1 + $0x50] sm:$0xff] }
 0x5e0   :  { %v2899_v9 = vpop.permute.xlu0 %2898  ;;  %v2897_v27 = vpop.permute.xlu1 %2896 }
 0x5e1   :  { %v2906_v21 = vsel %vm62_vm0, %v2897_v27, %v2899_v9 }
 0x5e2   :  { %v2913_v26 = vmul.f32 %v6350_v16, %v2906_v21 }
 0x5e4   :  { %v2923_v49 = vpop.permute.xlu0 %2922  ;;  %v2921_v51 = vpop.permute.xlu1 %2920 }
 0x5e5   :  { %v2930_v18 = vsel %vm87_vm1, %v2921_v51, %v2923_v49 }
 0x5e6   :  { %v2937_v2 = vmul.f32 %v6357_v22, %v2930_v18  ;;  %v6476_v18 = vld [vmem:[%s6851_s1 + $0x78] sm:$0xff] }
 0x5e8   :  { %v2947_v13 = vpop.permute.xlu0 %2946  ;;  %v2945_v30 = vpop.permute.xlu1 %2944  ;;  %v4373_v42 = vpack.c.bf16 %v2937_v2, %v2913_v26 }
 0x5e9   :  { %v2954_v34 = vsel %vm112_vm2, %v2945_v30, %v2947_v13 }
 0x5ea   :  { %4374 = vmatprep.subr.bf16.mxu0 %v4373_v42  ;;  %v2961_v43 = vmul.f32 %v6424_v29, %v2954_v34 }
 0x5ec   :  { %v6363_v48 = vpop.permute.xlu0 %2970  ;;  %v2969_v61 = vpop.permute.xlu1 %2968 }
 0x5ed   :  { %v2978_v40 = vsel %vm137_vm3, %v2969_v61, %v6363_v48 }
 0x5ee   :  { %v2985_v56 = vmul.f32 %v6380_v60, %v2978_v40 }
 0x5f0   :  { %v6365_v31 = vpop.permute.xlu0 %2998  ;;  %v6367_v17 = vpop.permute.xlu1 %2996  ;;  %v4377_v3 = vpack.c.bf16 %v2985_v56, %v2961_v43  ;;  %v6503_v56 = vld [vmem:[%s6851_s1 + $0xb8] sm:$0xff] }
 0x5f1   :  { %v3006_v26 = vsel %vm166_vm4, %v6367_v17, %v6365_v31 }
 0x5f4   :  { %v6369_v24 = vpop.permute.xlu0 %3022  ;;  %v6371_v14 = vpop.permute.xlu1 %3020 }
 0x5f8   :  { %v6373_v33 = vpop.permute.xlu0 %3046  ;;  %v6375_v54 = vpop.permute.xlu1 %3044 }
 0x5fc   :  { %v2903_v15 = vpop.permute.xlu0 %2902  ;;  %v2901_v5 = vpop.permute.xlu1 %2900 }
 0x5fd   :  { %v2907_v52 = vsel %vm62_vm0, %v2903_v15, %v2897_v27  ;;  %v2905_v7 = vsel %vm62_vm0, %v2899_v9, %v2901_v5  ;;  %v2904_v63 = vsel %vm62_vm0, %v2901_v5, %v2903_v15  ;;  %v6457_v9 = vld [vmem:[%s6851_s1 + $0x58] sm:$0xff] }
 0x5fe   :  { %v2912_v41 = vmul.f32 %v6388_v59, %v2907_v52  ;;  %v2914_v36 = vmul.f32 %v6395_v50, %v2905_v7  ;;  %v2915_v46 = vmul.f32 %v6400_v53, %v2904_v63  ;;  %v6494_v52 = vld [vmem:[%s6851_s1 + $0xa0] sm:$0xff] }
 0x600   :  { %v2927_v47 = vpop.permute.xlu0 %2926  ;;  %v2925_v38 = vpop.permute.xlu1 %2924 }
 0x601   :  { %v2931_v20 = vsel %vm87_vm1, %v2927_v47, %v2921_v51  ;;  %v2928_v39 = vsel %vm87_vm1, %v2925_v38, %v2927_v47  ;;  %v2929_v45 = vsel %vm87_vm1, %v2923_v49, %v2925_v38  ;;  %v6466_v49 = vld [vmem:[%s6851_s1 + $0x60] sm:$0xff]  ;;  %v6471_v51 = vld [vmem:[%s6851_s1 + $0x70] sm:$0xff] }
 0x602   :  { %v2936_v37 = vmul.f32 %v6409_v58, %v2931_v20  ;;  %v2938_v35 = vmul.f32 %v6414_v6, %v2929_v45  ;;  %v2939_v25 = vmul.f32 %v6419_v44, %v2928_v39  ;;  %v3012_v45 = vmul.f32 %v6494_v52, %v3006_v26  ;;  %v6566_v26 = vld [vmem:[%s6851_s1 + $0xf8] sm:$0xff] }
 0x604   :  { %v4375_v23 = vpack.c.bf16 %v2936_v37, %v2912_v41  ;;  %v4391_v28 = vpack.c.bf16 %v2938_v35, %v2914_v36  ;;  %v2951_v57 = vpop.permute.xlu0 %2950  ;;  %v2949_v62 = vpop.permute.xlu1 %2948  ;;  %v4389_v55 = vpack.c.bf16 %v2939_v25, %v2915_v46  ;;  %v6513_v41 = vld [vmem:[%s6851_s1 + $0xb0] sm:$0xff] }
 0x605   :  { %v2955_v19 = vsel %vm112_vm2, %v2951_v57, %v2945_v30  ;;  %v2953_v27 = vsel %vm112_vm2, %v2947_v13, %v2949_v62  ;;  %v2952_v21 = vsel %vm112_vm2, %v2949_v62, %v2951_v57 }
 0x606   :  { %4376 = vmatpush1.bf16.msra.mxu0 %v4375_v23  ;;  %4390 = vmatprep.subr.bf16.mxu1 %v4389_v55  ;;  %v2960_v2 = vmul.f32 %v6445_v0, %v2955_v19  ;;  %v2962_v42 = vmul.f32 %v6452_v1, %v2953_v27  ;;  %v2963_v7 = vmul.f32 %v6457_v9, %v2952_v21 }
 0x607   :  { %4378 = vmatprep.subr.bf16.mxu0 %v4377_v3  ;;  %4392 = vmatpush1.bf16.msra.mxu1 %v4391_v28  ;;  %v4383_v19 = vpack.c.bf16 %v3012_v45, %v6274_v12  ;;  %v3054_v3 = vsel %vm216_vm5, %v6375_v54, %v6373_v33  ;;  %v6551_v12 = vld [vmem:[%s6851_s1 + $0xc8] sm:$0xff] }
 0x608   :  { %v2975_v13 = vpop.permute.xlu0 %2974  ;;  %v2973_v30 = vpop.permute.xlu1 %2972 }
 0x609   :  { %v2979_v15 = vsel %vm137_vm3, %v2975_v13, %v2969_v61  ;;  %v2976_v5 = vsel %vm137_vm3, %v2973_v30, %v2975_v13  ;;  %v2977_v40 = vsel %vm137_vm3, %v6363_v48, %v2973_v30  ;;  %v6508_v48 = vld [vmem:[%s6851_s1 + $0xa8] sm:$0xff]  ;;  %v6576_v13 = vld [vmem:[%s6851_s1 + $0xf0] sm:$0xff]  ;;  %v6581_v30 = vld [vmem:[%s6851_s1 + $0xc0] sm:$0xff] }
 0x60a   :  { %v2984_v63 = vmul.f32 %v6466_v49, %v2979_v15  ;;  %v2986_v34 = vmul.f32 %v6471_v51, %v2977_v40  ;;  %v2987_v61 = vmul.f32 %v6476_v18, %v2976_v5 }
 0x60c   :  { %v4379_v47 = vpack.c.bf16 %v2984_v63, %v2960_v2  ;;  %v4395_v38 = vpack.c.bf16 %v2986_v34, %v2962_v42  ;;  %v3003_v36 = vpop.permute.xlu0 %3002  ;;  %v3001_v20 = vpop.permute.xlu1 %3000  ;;  %v4393_v39 = vpack.c.bf16 %v2987_v61, %v2963_v7  ;;  %v6571_v2 = vld [vmem:[%s6851_s1 + $0xe8] sm:$0xff]  ;;  %v3030_v42 = vsel %vm191_vm6, %v6371_v14, %v6369_v24 }
 0x60d   :  { %v3007_v46 = vsel %vm166_vm4, %v3003_v36, %v6367_v17  ;;  %v3004_v37 = vsel %vm166_vm4, %v3001_v20, %v3003_v36  ;;  %v3005_v35 = vsel %vm166_vm4, %v6365_v31, %v3001_v20  ;;  %v6534_v31 = vld [vmem:[%s6851_s1 + $0xe0] sm:$0xff]  ;;  %v3036_v20 = vmul.f32 %v6581_v30, %v3030_v42 }
 0x60e   :  { %v3015_v25 = vmul.f32 %v6503_v56, %v3007_v46  ;;  %v3013_v43 = vmul.f32 %v6508_v48, %v3005_v35  ;;  %v3014_v23 = vmul.f32 %v6513_v41, %v3004_v37  ;;  %4380 = vmatpush1.bf16.msra.mxu0 %v4379_v47  ;;  %4394 = vmatprep.subr.bf16.mxu1 %v4393_v39  ;;  %v3092_v42 = vld [vmem:[%s6860_s10] sm:$0xff] }
 0x60f   :  { %4396 = vmatpush1.bf16.msra.mxu1 %v4395_v38  ;;  %v3060_v15 = vmul.f32 %v6534_v31, %v3054_v3 }
 0x610   :  { %v4399_v28 = vpack.c.bf16 %v3014_v23, %v6306_v32  ;;  %v3027_v57 = vpop.permute.xlu0 %3026  ;;  %v3025_v17 = vpop.permute.xlu1 %3024  ;;  %v4381_v62 = vpack.c.bf16 %v3013_v43, %v6272_v11  ;;  %v4397_v55 = vpack.c.bf16 %v3015_v25, %v6304_v8  ;;  %v6543_v32 = vld [vmem:[%s6851_s1 + $0xd8] sm:$0xff]  ;;  %v6556_v8 = vld [vmem:[%s6851_s1 + $0xd0] sm:$0xff]  ;;  %v6611_v25 = vld [vmem:[%s6851_s1 + $0x108] sm:$0xff] }
 0x611   :  { %v3031_v11 = vsel %vm191_vm6, %v3027_v57, %v6371_v14  ;;  %v3029_v27 = vsel %vm191_vm6, %v6369_v24, %v3025_v17  ;;  %v3028_v21 = vsel %vm191_vm6, %v3025_v17, %v3027_v57  ;;  %v4387_v35 = vpack.c.bf16 %v3060_v15, %v3036_v20  ;;  %v6616_v43 = vld [vmem:[%s6851_s1 + $0x110] sm:$0xff]  ;;  %v6621_v23 = vld [vmem:[%s6851_s1 + $0x100] sm:$0xff] }
 0x612   :  { %4382 = vmatprep.subr.bf16.mxu0 %v4381_v62  ;;  %4398 = vmatprep.subr.bf16.mxu1 %v4397_v55  ;;  %v3039_v5 = vmul.f32 %v6543_v32, %v3031_v11  ;;  %v3037_v63 = vmul.f32 %v6551_v12, %v3029_v27  ;;  %v3038_v24 = vmul.f32 %v6556_v8, %v3028_v21  ;;  %v3517_v20 = vld [vmem:[%s6863_s13] sm:$0xf] }
 0x613   :  { %4384 = vmatpush1.bf16.msra.mxu0 %v4383_v19  ;;  %4400 = vmatpush1.bf16.msra.mxu1 %v4399_v28 }
 0x614   :  { %v3051_v40 = vpop.permute.xlu0 %3050  ;;  %v3049_v7 = vpop.permute.xlu1 %3048 }
 0x615   :  { %v3055_v34 = vsel %vm216_vm5, %v3051_v40, %v6375_v54  ;;  %v3052_v61 = vsel %vm216_vm5, %v3049_v7, %v3051_v40  ;;  %v3053_v47 = vsel %vm216_vm5, %v6373_v33, %v3049_v7  ;;  %v6606_v33 = vld [vmem:[%s6851_s1 + $0x118] sm:$0xff] }
 0x616   :  { %v3063_v14 = vmul.f32 %v6566_v26, %v3055_v34  ;;  %v3061_v38 = vmul.f32 %v6571_v2, %v3053_v47  ;;  %v3062_v36 = vmul.f32 %v6576_v13, %v3052_v61  ;;  %6868 = vst [vmem:[#allocation8_spill] sm:$0xff] %v6606_v33 }
 0x618   :  { %v4403_v39 = vpack.c.bf16 %v3062_v36, %v3038_v24  ;;  %v3071_v45 = vpop.permute.xlu0 %3070  ;;  %v3069_v54 = vpop.permute.xlu1 %3068  ;;  %v4385_v46 = vpack.c.bf16 %v3061_v38, %v3037_v63  ;;  %v4401_v37 = vpack.c.bf16 %v3063_v14, %v3039_v5 }
 0x619   :  { %v3078_v28 = vsel %vm241_vm7, %v3069_v54, %v3071_v45 }
 0x61a   :  { %4386 = vmatprep.subr.bf16.mxu0 %v4385_v46  ;;  %4402 = vmatprep.subr.bf16.mxu1 %v4401_v37  ;;  %v3084_v21 = vmul.f32 %v6621_v23, %v3078_v28 }
 0x61b   :  { %4388 = vmatpush1.bf16.msra.mxu0 %v4387_v35  ;;  %4404 = vmatpush1.bf16.msra.mxu1 %v4403_v39 }
 0x61c   :  { %v3075_v57 = vpop.permute.xlu0 %3074  ;;  %v3073_v17 = vpop.permute.xlu1 %3072 }
 0x61d   :  { %v3079_v62 = vsel %vm241_vm7, %v3075_v57, %v3069_v54  ;;  %v3076_v55 = vsel %vm241_vm7, %v3073_v17, %v3075_v57  ;;  %v3077_v19 = vsel %vm241_vm7, %v3071_v45, %v3073_v17 }
 0x61e   :  { %v3087_v3 = vmul.f32 %v6606_v33, %v3079_v62  ;;  %v3085_v11 = vmul.f32 %v6611_v25, %v3077_v19  ;;  %v3086_v27 = vmul.f32 %v6616_v43, %v3076_v55 }
 0x620   :  { %3154 = vmatprep.subr.mxu0 %v3085_v11  ;;  %3225 = vmatprep.subr.mxu1 %v3087_v3 }
 0x621   :  { %3155 = vmatpush1.msra.mxu0 %v3084_v21  ;;  %3226 = vmatpush1.msra.mxu1 %v3086_v27 }
 0x622   :  { %3705 = vmatmul.mubr.msk.f32.vlgmr.msra.gmra.mrb[20].mxu0 %vm301_vm8, %v3092_v42  ;;  %3706 = vmatmul.mubr.msk.f32.vlgmr.msra.gmra.mrb[20].mxu1 %vm301_vm8, %v3092_v42 }
 0x623   :  { %3590 = vmatprep.mubr.f32.mxu0 %v4487_v4  ;;  %3661 = vmatprep.mubr.f32.mxu1 %v4487_v4 }
 0x62d   :  { %v3133_v15 = vpop.permute.xlu1 %3132 }
 0x6f5   :  { %v3204_v5 = vpop.f32.mrb[20].mxu0  ;;  %v3275_v40 = vpop.f32.mrb[20].mxu1 }
 0x6f6   :  { %v3205_v7 = vadd.f32 %v3204_v5, %v3133_v15  ;;  %v3206_v63 = vpop.f32.mrb[21].mxu0  ;;  %v3277_v34 = vpop.f32.mrb[21].mxu1  ;;  %v3276_v4 = vadd.f32 %v3275_v40, %v3133_v15 }
 0x6f7   :  { %v3207_v61 = vadd.f32 %v3206_v63, %v3133_v15  ;;  %v3278_v14 = vadd.f32 %v3277_v34, %v3133_v15 }
 0x6f8   :  { %v6642_v47 = vmax.f32 %v3205_v7, 0.0  ;;  %v6674_v38 = vmax.f32 %v3276_v4, 0.0 }
 0x6f9   :  { %v6644_v24 = vmax.f32 %v3207_v61, 0.0  ;;  %v6676_v36 = vmax.f32 %v3278_v14, 0.0 }
 0x6fa   :  { %3284 = vrot.lane.b32.xlu0 %v6642_v47, %s4480_s17 }
 0x6fb   :  { %3286 = vrot.lane.b32.xlu1 %v6644_v24, %s4480_s17 }
 0x6fe   :  { %3308 = vrot.lane.b32.xlu0 %v6642_v47, %s4481_s22 }
 0x6ff   :  { %3310 = vrot.lane.b32.xlu1 %v6644_v24, %s4481_s22 }
 0x702   :  { %3332 = vrot.lane.b32.xlu0 %v6642_v47, %s4482_s0 }
 0x703   :  { %3334 = vrot.lane.b32.xlu1 %v6644_v24, %s4482_s0 }
 0x706   :  { %3356 = vrot.lane.b32.xlu0 %v6642_v47, %s4483_s23 }
 0x707   :  { %3358 = vrot.lane.b32.xlu1 %v6644_v24, %s4483_s23 }
 0x70a   :  { %3384 = vrot.lane.b32.xlu0 %v6642_v47, %s4484_s24 }
 0x70b   :  { %3386 = vrot.lane.b32.xlu1 %v6644_v24, %s4484_s24 }
 0x70e   :  { %3408 = vrot.lane.b32.xlu0 %v6642_v47, %s4485_s25 }
 0x70f   :  { %3410 = vrot.lane.b32.xlu1 %v6644_v24, %s4485_s25 }
 0x712   :  { %3432 = vrot.lane.b32.xlu0 %v6642_v47, %s4486_s26 }
 0x713   :  { %3434 = vrot.lane.b32.xlu1 %v6644_v24, %s4486_s26 }
 0x716   :  { %3288 = vrot.lane.b32.xlu0 %v6674_v38, %s4480_s17 }
 0x717   :  { %3290 = vrot.lane.b32.xlu1 %v6676_v36, %s4480_s17 }
 0x71a   :  { %3312 = vrot.lane.b32.xlu0 %v6674_v38, %s4481_s22 }
 0x71b   :  { %3314 = vrot.lane.b32.xlu1 %v6676_v36, %s4481_s22 }
 0x71e   :  { %3336 = vrot.lane.b32.xlu0 %v6674_v38, %s4482_s0 }
 0x71f   :  { %3338 = vrot.lane.b32.xlu1 %v6676_v36, %s4482_s0  ;;  %s4492_s0 = smov [#allocation5]  }
 0x722   :  { %3360 = vrot.lane.b32.xlu0 %v6674_v38, %s4483_s23 }
 0x723   :  { %3362 = vrot.lane.b32.xlu1 %v6676_v36, %s4483_s23  ;;  %s3684_s23 = sshll.u32 %s4492_s0, 4  ;;  %s3685_s23 = int_to_ptr.vmem [resolvable:$true] %s3684_s23 }
 0x724   :  { %p4461_p1 = scmp.lt.s32.totalorder %s3685_s23, %s3685_s23 }
 0x726   :  { %3388 = vrot.lane.b32.xlu0 %v6674_v38, %s4484_s24 }
 0x727   :  { %3390 = vrot.lane.b32.xlu1 %v6676_v36, %s4484_s24 }
 0x72a   :  { %3412 = vrot.lane.b32.xlu0 %v6674_v38, %s4485_s25 }
 0x72b   :  { %3414 = vrot.lane.b32.xlu1 %v6676_v36, %s4485_s25 }
 0x72e   :  { %3436 = vrot.lane.b32.xlu0 %v6674_v38, %s4486_s26 }
 0x72f   :  { %3438 = vrot.lane.b32.xlu1 %v6676_v36, %s4486_s26 }
 0x732   :  { %3456 = vrot.lane.b32.xlu0 %v6642_v47, %s4489_s27 }
 0x733   :  { %3458 = vrot.lane.b32.xlu1 %v6644_v24, %s4489_s27 }
 0x736   :  { %3460 = vrot.lane.b32.xlu0 %v6674_v38, %s4489_s27 }
 0x737   :  { %3462 = vrot.lane.b32.xlu1 %v6676_v36, %s4489_s27 }
 0x73a   :  { %3520 = vperm.xlu0 %4450, %v3517_v20  }
 0x76c   :  { %v3285_v39 = vpop.permute.xlu0 %3284 }
 0x76d   :  { %v3287_v45 = vpop.permute.xlu1 %3286 }
 0x76e   :  { %v3294_v54 = vsel %vm62_vm0, %v3285_v39, %v3287_v45 }
 0x76f   :  { %v3301_v28 = vmul.f32 %v3294_v54, %v6350_v16 }
 0x770   :  { %v3309_v46 = vpop.permute.xlu0 %3308 }
 0x771   :  { %v3311_v37 = vpop.permute.xlu1 %3310 }
 0x772   :  { %v3318_v35 = vsel %vm87_vm1, %v3309_v46, %v3311_v37 }
 0x773   :  { %v3325_v57 = vmul.f32 %v3318_v35, %v6357_v22 }
 0x774   :  { %v3333_v17 = vpop.permute.xlu0 %3332 }
 0x775   :  { %v3335_v62 = vpop.permute.xlu1 %3334  ;;  %v4405_v55 = vpack.c.bf16 %v3325_v57, %v3301_v28 }
 0x776   :  { %v3342_v61 = vsel %vm112_vm2, %v3333_v17, %v3335_v62 }
 0x777   :  { %4406 = vmatprep.subr.bf16.mxu0 %v4405_v55 }
 0x778   :  { %v3357_v19 = vpop.permute.xlu0 %3356 }
 0x779   :  { %v3359_v3 = vpop.permute.xlu1 %3358 }
 0x77a   :  { %v3366_v22 = vsel %vm137_vm3, %v3357_v19, %v3359_v3 }
 0x77b   :  { %v3373_v54 = vmul.f32 %v3366_v22, %v6380_v60 }
 0x77c   :  { %v3385_v11 = vpop.permute.xlu0 %3384 }
 0x77d   :  { %v3387_v27 = vpop.permute.xlu1 %3386 }
 0x780   :  { %v6723_v21 = vpop.permute.xlu0 %3408 }
 0x781   :  { %v6725_v42 = vpop.permute.xlu1 %3410 }
 0x784   :  { %v6727_v15 = vpop.permute.xlu0 %3432 }
 0x785   :  { %v6729_v5 = vpop.permute.xlu1 %3434 }
 0x788   :  { %v3289_v40 = vpop.permute.xlu0 %3288 }
 0x789   :  { %v3291_v16 = vpop.permute.xlu1 %3290  ;;  %v3293_v4 = vsel %vm62_vm0, %v3287_v45, %v3289_v40 }
 0x78a   :  { %v3292_v7 = vsel %vm62_vm0, %v3289_v40, %v3291_v16  ;;  %v3295_v63 = vsel %vm62_vm0, %v3291_v16, %v3285_v39  ;;  %v3302_v60 = vmul.f32 %v3293_v4, %v6395_v50 }
 0x78b   :  { %v3300_v57 = vmul.f32 %v3295_v63, %v6388_v59  ;;  %v3303_v55 = vmul.f32 %v3292_v7, %v6400_v53 }
 0x78c   :  { %v3313_v34 = vpop.permute.xlu0 %3312 }
 0x78d   :  { %v3317_v14 = vsel %vm87_vm1, %v3311_v37, %v3313_v34  ;;  %v3315_v20 = vpop.permute.xlu1 %3314  ;;  %v3349_v37 = vmul.f32 %v3342_v61, %v6424_v29 }
 0x78e   :  { %v3326_v35 = vmul.f32 %v3317_v14, %v6414_v6  ;;  %v3316_v28 = vsel %vm87_vm1, %v3313_v34, %v3315_v20  ;;  %v3319_v39 = vsel %vm87_vm1, %v3315_v20, %v3309_v46  ;;  %v3394_v46 = vsel %vm166_vm4, %v3385_v11, %v3387_v27 }
 0x78f   :  { %v3324_v45 = vmul.f32 %v3319_v39, %v6409_v58  ;;  %v3327_v40 = vmul.f32 %v3316_v28, %v6419_v44  ;;  %v4409_v33 = vpack.c.bf16 %v3373_v54, %v3349_v37  ;;  %v3400_v54 = vmul.f32 %v3394_v46, %v6494_v52  ;;  %v6869_v46 = vld [vmem:[#allocation8_spill] sm:$0xff] }
 0x790   :  { %v3337_v16 = vpop.permute.xlu0 %3336  ;;  %v4423_v34 = vpack.c.bf16 %v3326_v35, %v3302_v60 }
 0x791   :  { %v4407_v6 = vpack.c.bf16 %v3324_v45, %v3300_v57  ;;  %v3339_v22 = vpop.permute.xlu1 %3338  ;;  %v4421_v14 = vpack.c.bf16 %v3327_v40, %v3303_v55  ;;  %v3341_v50 = vsel %vm112_vm2, %v3335_v62, %v3337_v16  ;;  %v4415_v57 = vpack.c.bf16 %v3400_v54, %v6642_v47 }
 0x792   :  { %v3340_v59 = vsel %vm112_vm2, %v3337_v16, %v3339_v22  ;;  %v3343_v53 = vsel %vm112_vm2, %v3339_v22, %v3333_v17  ;;  %v3350_v4 = vmul.f32 %v3341_v50, %v6452_v1 }
 0x793   :  { %4408 = vmatpush1.bf16.msra.mxu0 %v4407_v6  ;;  %4422 = vmatprep.subr.bf16.mxu1 %v4421_v14  ;;  %v3348_v17 = vmul.f32 %v3343_v53, %v6445_v0  ;;  %v3351_v61 = vmul.f32 %v3340_v59, %v6457_v9 }
 0x794   :  { %4410 = vmatprep.subr.bf16.mxu0 %v4409_v33  ;;  %4424 = vmatpush1.bf16.msra.mxu1 %v4423_v34  ;;  %v3361_v58 = vpop.permute.xlu0 %3360 }
 0x795   :  { %v3365_v44 = vsel %vm137_vm3, %v3359_v3, %v3361_v58  ;;  %v3363_v29 = vpop.permute.xlu1 %3362 }
 0x796   :  { %v3374_v7 = vmul.f32 %v3365_v44, %v6471_v51  ;;  %v3364_v63 = vsel %vm137_vm3, %v3361_v58, %v3363_v29  ;;  %v3367_v33 = vsel %vm137_vm3, %v3363_v29, %v3357_v19 }
 0x797   :  { %v3372_v62 = vmul.f32 %v3367_v33, %v6466_v49  ;;  %v3375_v3 = vmul.f32 %v3364_v63, %v6476_v18  ;;  %v3480_v63 = vld [vmem:[%s6862_s12] sm:$0xf]  ;;  %s4456_s12 = scalar_lea.vmem %s3685_s23, 256 }
 0x798   :  { %v3389_v20 = vpop.permute.xlu0 %3388  ;;  %v4427_v19 = vpack.c.bf16 %v3374_v7, %v3350_v4  ;;  %p4457_p0 = scmp.ne.s32.totalorder %s3685_s23, %s4456_s12  ;;  %p4462_p2 = scmp.lt.s32.totalorder %s4456_s12, %s4456_s12 }
 0x799   :  { %v4411_v51 = vpack.c.bf16 %v3372_v62, %v3348_v17  ;;  %v3393_v35 = vsel %vm166_vm4, %v3387_v27, %v3389_v20  ;;  %v3391_v28 = vpop.permute.xlu1 %3390  ;;  %v4425_v39 = vpack.c.bf16 %v3375_v3, %v3351_v61 }
 0x79a   :  { %v3401_v0 = vmul.f32 %v3393_v35, %v6508_v48  ;;  %v3392_v9 = vsel %vm166_vm4, %v3389_v20, %v3391_v28  ;;  %v3395_v49 = vsel %vm166_vm4, %v3391_v28, %v3385_v11  ;;  %p4463_p3 = por %p4462_p2, %p4461_p1 }
 0x79b   :  { %v3402_v1 = vmul.f32 %v3392_v9, %v6513_v41  ;;  %v3403_v18 = vmul.f32 %v3395_v49, %v6503_v56  ;;  %4412 = vmatpush1.bf16.msra.mxu0 %v4411_v51  ;;  %4426 = vmatprep.subr.bf16.mxu1 %v4425_v39  ;;  %v3418_v41 = vsel %vm191_vm6, %v6723_v21, %v6725_v42 }
 0x79c   :  { %4428 = vmatpush1.bf16.msra.mxu1 %v4427_v19  ;;  %v3413_v52 = vpop.permute.xlu0 %3412  ;;  %v4413_v27 = vpack.c.bf16 %v3401_v0, %v6644_v24  ;;  %v3442_v56 = vsel %vm216_vm5, %v6727_v15, %v6729_v5  ;;  %v3424_v11 = vmul.f32 %v3418_v41, %v6581_v30  ;;  %p4464_p4 = pnand %p4463_p3, %p4457_p0 }
 0x79d   :  { %v4431_v48 = vpack.c.bf16 %v3402_v1, %v6674_v38  ;;  %v3415_v55 = vpop.permute.xlu1 %3414  ;;  %v4429_v45 = vpack.c.bf16 %v3403_v18, %v6676_v36  ;;  %v3417_v47 = vsel %vm191_vm6, %v6725_v42, %v3413_v52  ;;  %v3448_v40 = vmul.f32 %v3442_v56, %v6534_v31 }
 0x79e   :  { %4414 = vmatprep.subr.bf16.mxu0 %v4413_v27  ;;  %v3416_v24 = vsel %vm191_vm6, %v3413_v52, %v3415_v55  ;;  %v3419_v38 = vsel %vm191_vm6, %v3415_v55, %v6723_v21  ;;  %v3425_v60 = vmul.f32 %v3417_v47, %v6551_v12 }
 0x79f   :  { %4416 = vmatpush1.bf16.msra.mxu0 %v4415_v57  ;;  %4430 = vmatprep.subr.bf16.mxu1 %v4429_v45  ;;  %v3426_v30 = vmul.f32 %v3416_v24, %v6556_v8  ;;  %v3427_v31 = vmul.f32 %v3419_v38, %v6543_v32  ;;  %v4419_v12 = vpack.c.bf16 %v3448_v40, %v3424_v11 }
 0x7a0   :  { %4432 = vmatpush1.bf16.msra.mxu1 %v4431_v48  ;;  %v3437_v36 = vpop.permute.xlu0 %3436 }
 0x7a1   :  { %v3441_v37 = vsel %vm216_vm5, %v6729_v5, %v3437_v36  ;;  %v3439_v42 = vpop.permute.xlu1 %3438 }
 0x7a2   :  { %v3449_v16 = vmul.f32 %v3441_v37, %v6571_v2  ;;  %v3440_v6 = vsel %vm216_vm5, %v3437_v36, %v3439_v42  ;;  %v3443_v21 = vsel %vm216_vm5, %v3439_v42, %v6727_v15 }
 0x7a3   :  { %v3450_v22 = vmul.f32 %v3440_v6, %v6576_v13  ;;  %v3451_v5 = vmul.f32 %v3443_v21, %v6566_v26 }
 0x7a4   :  { %v3457_v14 = vpop.permute.xlu0 %3456  ;;  %v4417_v34 = vpack.c.bf16 %v3449_v16, %v3425_v60 }
 0x7a5   :  { %v4435_v59 = vpack.c.bf16 %v3450_v22, %v3426_v30  ;;  %v3459_v2 = vpop.permute.xlu1 %3458  ;;  %v4433_v53 = vpack.c.bf16 %v3451_v5, %v3427_v31 }
 0x7a6   :  { %4418 = vmatprep.subr.bf16.mxu0 %v4417_v34  ;;  %v3466_v15 = vsel %vm241_vm7, %v3457_v14, %v3459_v2 }
 0x7a7   :  { %4420 = vmatpush1.bf16.msra.mxu0 %v4419_v12  ;;  %4434 = vmatprep.subr.bf16.mxu1 %v4433_v53  ;;  %v3472_v44 = vmul.f32 %v3466_v15, %v6621_v23 }
 0x7a8   :  { %4436 = vmatpush1.bf16.msra.mxu1 %v4435_v59  ;;  %v3461_v8 = vpop.permute.xlu0 %3460 }
 0x7a9   :  { %v3465_v32 = vsel %vm241_vm7, %v3459_v2, %v3461_v8  ;;  %v3463_v13 = vpop.permute.xlu1 %3462 }
 0x7aa   :  { %v3473_v26 = vmul.f32 %v3465_v32, %v6611_v25  ;;  %v3464_v58 = vsel %vm241_vm7, %v3461_v8, %v3463_v13  ;;  %v3467_v50 = vsel %vm241_vm7, %v3463_v13, %v3457_v14 }
 0x7ab   :  { %v3474_v29 = vmul.f32 %v3464_v58, %v6616_v43  ;;  %v3475_v7 = vmul.f32 %v3467_v50, %v6869_v46 }
 0x7ac   :  { %3542 = vmatprep.subr.mxu0 %v3473_v26 }
 0x7ad   :  { %3543 = vmatpush1.msra.mxu0 %v3472_v44  ;;  %3613 = vmatprep.subr.mxu1 %v3475_v7 }
 0x7ae   :  { %3707 = vmatmul.mubr.msk.f32.vlgmr.msra.gmra.mrb[22].mxu0 %vm301_vm8, %v3480_v63  ;;  %3614 = vmatpush1.msra.mxu1 %v3474_v29 }
 0x7af   :  { %3708 = vmatmul.mubr.msk.f32.vlgmr.msra.gmra.mrb[22].mxu1 %vm301_vm8, %v3480_v63 }
 0x7b9   :  { %v3521_v10 = vpop.permute.xlu0 %3520 }
 0x881   :  { %v3592_v25 = vpop.f32.mrb[22].mxu0 }
 0x882   :  { %v3593_v33 = vadd.f32 %v3592_v25, %v3521_v10  ;;  %v3594_v23 = vpop.f32.mrb[23].mxu0  ;;  %v3663_v17 = vpop.f32.mrb[22].mxu1 }
 0x883   :  { %v3595_v43 = vadd.f32 %v3594_v23, %v3521_v10  ;;  %v3664_v61 = vadd.f32 %v3663_v17, %v3521_v10  ;;  %v3665_v62 = vpop.f32.mrb[23].mxu1 }
 0x884   :  { %v3666_v3 = vadd.f32 %v3665_v62, %v3521_v10 }
 0x885   :  { %v3672_v4 = vcombine.low %v3593_v33, %v3595_v43 }
 0x886   :  { %v3673_v20 = vcombine.low %v3664_v61, %v3666_v3 }
 0x887   :  { %3676 = vst [vmem:[#allocation5] sm:$0xff] %v3672_v4 }
 0x888   :  { %3677 = vst [vmem:[#allocation5 + $0x8] sm:$0xff] %v3673_v20 }
 0x889   :  { %4467 = shalt.err (!%p4464_p4)
}
 0x88a   :  { %s4468_s26 = scalar_lea.hbm %s6864_s14, 256 }
 0x88b   :  { %p4469_p5 = scmp.ne.s32.totalorder %s6864_s14, %s4468_s26  ;;  %p4472_p6 = scmp.lt.u32.totalorder %s4468_s26, %s6864_s14 }
 0x88d   :  { %p4474_p7 = pnand %p4472_p6, %p4469_p5 }
 0x88f   :  { %4477 = shalt.err (!%p4474_p7)
}
 0x890   :  { %3687 = dma.vmem_to_hbm [thread:$0]  %s3685_s23, 256, %s6864_s14, [#allocation6]  }
 0x891   :  { %4478 = dma.done.wait [#allocation6], 256  }
 0x892   :  { %4479 = vsyncadd [#allocation6], 4294967040 }
 0x893   :  { %3691 = vsyncpa [#allocation6], 1 }

</bundles_post_ra>
